<compile_context>
chip_gen: v7x
topology: tpu7x:2x2x1
jax: 0.10.0
libtpu: 0.0.40
codegen_flags: <defaults>
</compile_context>

<pallas_src>
import functools

import jax
import jax.numpy as jnp
from jax import lax
from jax.experimental import pallas as pl
from jax.experimental.pallas import tpu as pltpu


def _round_up(x, m):
    return (x + m - 1) // m * m


def _pad_gates(w, H, Hp):
    """Pad the last (4*H, gate-major [i,f,g,o]) dim to 4*Hp, per gate block."""
    if Hp == H:
        return w
    lead = w.shape[:-1]
    w = w.reshape(*lead, 4, H)
    w = jnp.pad(w, [(0, 0)] * len(lead) + [(0, 0), (0, Hp - H)])
    return w.reshape(*lead, 4 * Hp)


def _lstm_recurrent_kernel(g1_ref,     # (T, BB, 4*Hp) bf16: precomputed x @ Wih1 + b1
                           whh1_ref,   # (Hp, 4*Hp)    bf16
                           w2_ref,     # (2*Hp, 4*Hp)  bf16 fused [Wih2 ; Whh2]
                           b2_ref,     # (1, 4*Hp)     f32
                           h2seq_ref,  # (T, BB, Hp)   bf16 output: layer-2 hidden per t
                           h12,        # VMEM f32 (BB, 2*Hp): [:, :Hp]=h1, [:, Hp:]=h2
                           c1, c2,     # VMEM f32 (BB, Hp) each
                           *, unroll):
    t_chunk = pl.program_id(1)

    @pl.when(t_chunk == 0)
    def _():
        h12[...] = jnp.zeros_like(h12)
        c1[...] = jnp.zeros_like(c1)
        c2[...] = jnp.zeros_like(c2)

    BB, Hp = c1.shape
    T = g1_ref.shape[0]

    # Hoist the bias broadcast out of the inner time loop (JAX does not CSE it).
    b2b = jnp.broadcast_to(b2_ref[...], (BB, 4 * Hp))

    def sigmoid(x):
        # Single EUP push per gate (instead of exp + reciprocal); exact rewrite.
        return 0.5 * jnp.tanh(0.5 * x) + 0.5

    def gates(g):
        # PyTorch gate order: i, f, g, o.  Slices are 128-lane aligned (Hp % 128 == 0).
        i = sigmoid(g[:, 0 * Hp:1 * Hp])
        f = sigmoid(g[:, 1 * Hp:2 * Hp])
        gg = jnp.tanh(g[:, 2 * Hp:3 * Hp])
        o = sigmoid(g[:, 3 * Hp:4 * Hp])
        return i, f, gg, o

    def step(t, carry):
        # ----- layer 1: only the recurrent matmul is on the critical path -----
        g1 = g1_ref[t].astype(jnp.float32) + jnp.dot(
            h12[:, 0:Hp].astype(jnp.bfloat16), whh1_ref[...],
            preferred_element_type=jnp.float32)
        i1, f1, gg1, o1 = gates(g1)
        c1_new = f1 * c1[...] + i1 * gg1
        c1[...] = c1_new
        h12[:, 0:Hp] = o1 * jnp.tanh(c1_new)

        # ----- layer 2: single fused matmul  [h1 | h2] @ [Wih2 ; Whh2] -----
        g2 = jnp.dot(h12[...].astype(jnp.bfloat16), w2_ref[...],
                     preferred_element_type=jnp.float32) + b2b
        i2, f2, gg2, o2 = gates(g2)
        c2_new = f2 * c2[...] + i2 * gg2
        c2[...] = c2_new
        h2_new = o2 * jnp.tanh(c2_new)
        h12[:, Hp:2 * Hp] = h2_new
        h2seq_ref[t] = h2_new.astype(h2seq_ref.dtype)
        return carry

    lax.fori_loop(0, T, step, 0, unroll=unroll)


@functools.partial(jax.jit, static_argnames=("time_chunk",))
def lstm_forward(x, params, *, time_chunk=16):
    """x: (S, B, I) float32 (seq-first, PyTorch nn.LSTM default). Returns (S, B, O)."""
    S, B, I = x.shape
    wih1, whh1, b1, wih2, whh2, b2, wout, bout = params
    H = whh1.shape[0]
    O = wout.shape[1]

    f32, bf16 = jnp.float32, jnp.bfloat16

    Hp = _round_up(H, 128)                      # lane-aligned hidden size
    # Batch block: bf16-sublane aligned (16) and as large as possible up to 128 so the
    # MXU M dimension is filled; scratch sized accordingly.
    # TODO(synk): on v7x (2 TCs), when B is large pick BB = B_pad // 2 so each core
    # gets exactly one big batch block on the "parallel" grid axis.
    BB = min(_round_up(B, 16), 128)
    B_pad = _round_up(B, BB)
    T = min(int(time_chunk), S)                 # timesteps per grid step
    S_pad = _round_up(S, T)

    # ---- pad / fuse weights once; matmul operands stored in bf16 (f32 accum) ----
    # Zero-padded weights/biases keep padded hidden units identically zero.
    wih1_p = _pad_gates(wih1, H, Hp)                                       # (I, 4Hp) f32
    b1_p = _pad_gates(b1, H, Hp)                                           # (1, 4Hp) f32
    whh1_p = _pad_gates(jnp.pad(whh1, ((0, Hp - H), (0, 0))), H, Hp).astype(bf16)   # (Hp, 4Hp)
    w2 = jnp.concatenate([jnp.pad(wih2, ((0, Hp - H), (0, 0))),
                          jnp.pad(whh2, ((0, Hp - H), (0, 0)))], axis=0)   # (2Hp, 4H)
    w2_p = _pad_gates(w2, H, Hp).astype(bf16)                              # (2Hp, 4Hp)
    b2_p = _pad_gates(b2, H, Hp)                                           # (1, 4Hp) f32
    # TODO(synk): for very large H on v7x (64 MiB VMEM), single-buffer the weight
    # inputs (pipeline_mode=pl.Buffered(1) or a one-shot DMA into scratch at
    # t_chunk == 0) so the constant-index weights are not double-buffered.

    # ---- hoisted input projection: pad x's batch and gate-pad the *weights* first so
    # the einsum directly emits the padded (S, B_pad, 4Hp) layout — no extra full-size
    # pad pass over the largest tensor in HBM. Stream it to the kernel in bf16. ----
    x_p = jnp.pad(x, ((0, 0), (0, B_pad - B), (0, 0)))
    g1_pre = (jnp.einsum("sbi,ig->sbg", x_p, wih1_p,
                         preferred_element_type=jnp.float32) + b1_p).astype(bf16)
    if S_pad != S:
        g1_pre = jnp.pad(g1_pre, ((0, S_pad - S), (0, 0), (0, 0)))         # (S_pad, B_pad, 4Hp)

    grid = (B_pad // BB, S_pad // T)

    # VMEM budget: double-buffered streams + (double-buffered) weights + scratch.
    vmem_need = (2 * T * BB * 4 * Hp * 2                      # g1 blocks (bf16)
                 + 2 * T * BB * Hp * 2                        # h2seq blocks (bf16)
                 + 2 * (Hp * 4 * Hp + 2 * Hp * 4 * Hp) * 2    # weights (bf16, x2 buffers)
                 + 2 * 4 * Hp * 4                             # bias (f32, x2 buffers)
                 + (BB * 2 * Hp + 2 * BB * Hp) * 4)           # scratch (f32)
    vmem_limit = int(min(max(2 * vmem_need, 32 * 1024 * 1024), 100 * 1024 * 1024))
    # TODO(synk): cap vmem_limit at ~56 MiB on v7x (64 MiB physical per TC).

    flops = 2 * S_pad * B_pad * (Hp * 4 * Hp + 2 * Hp * 4 * Hp)
    transc = 10 * S_pad * B_pad * Hp
    bytes_acc = (S_pad * B_pad * 4 * Hp * 2 + S_pad * B_pad * Hp * 2
                 + (Hp * 4 * Hp + 2 * Hp * 4 * Hp) * 2 + 4 * Hp * 4)

    # Fully unroll only for small batch blocks; big (BB, 4Hp) gate tensors would spill
    # vregs under a full unroll.
    unroll = True if BB <= 32 else 2
    kernel = functools.partial(_lstm_recurrent_kernel, unroll=unroll)

    h2_seq = pl.pallas_call(
        kernel,
        out_shape=jax.ShapeDtypeStruct((S_pad, B_pad, Hp), bf16),
        grid_spec=pltpu.PrefetchScalarGridSpec(
            num_scalar_prefetch=0,
            grid=grid,
            in_specs=[
                pl.BlockSpec((T, BB, 4 * Hp), lambda b, t: (t, b, 0)),
                pl.BlockSpec((Hp, 4 * Hp), lambda b, t: (0, 0)),
                pl.BlockSpec((2 * Hp, 4 * Hp), lambda b, t: (0, 0)),
                pl.BlockSpec((1, 4 * Hp), lambda b, t: (0, 0)),
            ],
            out_specs=pl.BlockSpec((T, BB, Hp), lambda b, t: (t, b, 0)),
            scratch_shapes=[
                pltpu.VMEM((BB, 2 * Hp), jnp.float32),   # [h1 | h2]
                pltpu.VMEM((BB, Hp), jnp.float32),       # c1
                pltpu.VMEM((BB, Hp), jnp.float32),       # c2
            ],
        ),
        compiler_params=pltpu.CompilerParams(
            dimension_semantics=("parallel", "arbitrary"),  # batch blocks parallel, time sequential
            vmem_limit_bytes=vmem_limit,
        ),
        cost_estimate=pl.CostEstimate(flops=int(flops),
                                      transcendentals=int(transc),
                                      bytes_accessed=int(bytes_acc)),
    )(g1_pre, whh1_p, w2_p, b2_p)

    # ---- hoisted output Linear: one lane-dense (S*B, H) @ (H, O) GEMM ----
    h2 = h2_seq[:S, :B, :H].reshape(S * B, H)
    y = jnp.dot(h2, wout.astype(bf16), preferred_element_type=jnp.float32) + bout
    return y.reshape(S, B, O)


def init_params(key, input_size, hidden_size, output_size):
    """Deterministic init matching PyTorch shapes (weights stored pre-transposed)."""
    H = hidden_size
    k_lstm = 1.0 / jnp.sqrt(H)
    k_out = 1.0 / jnp.sqrt(H)
    keys = jax.random.split(key, 10)
    u = lambda k, shape, s: jax.random.uniform(k, shape, jnp.float32, -s, s)

    # layer 1: weight_ih_l0 (4H, I), weight_hh_l0 (4H, H), biases (4H,)
    wih1 = u(keys[0], (4 * H, input_size), k_lstm).T          # (I, 4H)
    whh1 = u(keys[1], (4 * H, H), k_lstm).T                   # (H, 4H)
    b1 = (u(keys[2], (4 * H,), k_lstm) + u(keys[3], (4 * H,), k_lstm)).reshape(1, 4 * H)
    # layer 2: weight_ih_l1 (4H, H), weight_hh_l1 (4H, H)
    wih2 = u(keys[4], (4 * H, H), k_lstm).T                   # (H, 4H)
    whh2 = u(keys[5], (4 * H, H), k_lstm).T                   # (H, 4H)
    b2 = (u(keys[6], (4 * H,), k_lstm) + u(keys[7], (4 * H,), k_lstm)).reshape(1, 4 * H)
    # output Linear: weight (O, H), bias (O,)
    wout = u(keys[8], (output_size, H), k_out).T              # (H, O)
    bout = u(keys[9], (output_size,), k_out).reshape(1, output_size)
    return (wih1, whh1, b1, wih2, whh2, b2, wout, bout)


def reference_forward(x, params):
    """Pure-JAX f32 reference of the same 2-layer LSTM + Linear, for verification."""
    wih1, whh1, b1, wih2, whh2, b2, wout, bout = params
    H = whh1.shape[0]
    B = x.shape[1]

    def cell(h, c, g):
        i = jax.nn.sigmoid(g[:, 0 * H:1 * H])
        f = jax.nn.sigmoid(g[:, 1 * H:2 * H])
        gg = jnp.tanh(g[:, 2 * H:3 * H])
        o = jax.nn.sigmoid(g[:, 3 * H:4 * H])
        c = f * c + i * gg
        h = o * jnp.tanh(c)
        return h, c

    def step(carry, x_t):
        h1, c1, h2, c2 = carry
        h1, c1 = cell(h1, c1, x_t @ wih1 + h1 @ whh1 + b1)
        h2, c2 = cell(h2, c2, h1 @ wih2 + h2 @ whh2 + b2)
        y = h2 @ wout + bout
        return (h1, c1, h2, c2), y

    z = jnp.zeros((B, H), jnp.float32)
    _, ys = jax.lax.scan(step, (z, z, z, z), x)
    return ys


if __name__ == "__main__":
    SEQ, BATCH, INPUT, HIDDEN, OUT = 8, 4, 16, 32, 1

    key = jax.random.PRNGKey(0)
    kx, kp = jax.random.split(key)
    x = jax.random.normal(kx, (SEQ, BATCH, INPUT), jnp.float32)
    params = init_params(kp, INPUT, HIDDEN, OUT)

    y = lstm_forward(x, params)
    y = jax.block_until_ready(y)

    y_ref = reference_forward(x, params)
    assert y.shape == (SEQ, BATCH, OUT)
    # bf16 matmul operands / bf16 HBM streams (f32 accumulation) => looser tolerance.
    assert jnp.allclose(y, y_ref, atol=3e-2, rtol=3e-2), "mismatch vs reference"

    print("KERNEL_OK")
</pallas_src>

<mosaic_0001>
module attributes {stable_mosaic.version = 11 : i64} {
  func.func @_lstm_recurrent_kernel(%arg0: i32, %arg1: i32, %arg2: memref<8x16x512xbf16, #tpu.memory_space<vmem>>, %arg3: memref<128x512xbf16, #tpu.memory_space<vmem>>, %arg4: memref<256x512xbf16, #tpu.memory_space<vmem>>, %arg5: memref<1x512xf32, #tpu.memory_space<vmem>>, %arg6: memref<8x16x128xbf16, #tpu.memory_space<vmem>>, %arg7: memref<16x256xf32, #tpu.memory_space<vmem>>, %arg8: memref<16x128xf32, #tpu.memory_space<vmem>>, %arg9: memref<16x128xf32, #tpu.memory_space<vmem>>) attributes {dimension_semantics = [#tpu.dimension_semantics<parallel>, #tpu.dimension_semantics<arbitrary>], iteration_bounds = array<i64: 1, 1>, scalar_prefetch = 0 : i64, scratch_operands = 3 : i64, tpu.core_type = #tpu.core_type<tc>, window_params = [{transform_indices = @transform_0, window_bounds = array<i64: 8, 16, 512>}, {pipeline_mode = #tpu.pipeline_mode<synchronous>, transform_indices = @transform_1, window_bounds = array<i64: 128, 512>}, {pipeline_mode = #tpu.pipeline_mode<synchronous>, transform_indices = @transform_2, window_bounds = array<i64: 256, 512>}, {pipeline_mode = #tpu.pipeline_mode<synchronous>, transform_indices = @transform_3, window_bounds = array<i64: 1, 512>}, {transform_indices = @transform_4, window_bounds = array<i64: 8, 16, 128>}]} {
    %c0_i32 = arith.constant 0 : i32
    %0 = arith.cmpi eq, %arg1, %c0_i32 : i32
    %1 = arith.extui %0 : i1 to i32
    %c0_i32_0 = arith.constant 0 : i32
    %2 = arith.cmpi ne, %1, %c0_i32_0 : i32
    scf.if %2 {
      %cst_353 = arith.constant 0.000000e+00 : f32
      %702 = vector.broadcast %cst_353 : f32 to vector<16x256xf32>
      %c0_354 = arith.constant 0 : index
      %c0_355 = arith.constant 0 : index
      %703 = vector.load %arg7[%c0_354, %c0_355] : memref<16x256xf32, #tpu.memory_space<vmem>>, vector<16x256xf32>
      tpu.vector_store %arg7[%c0_354, %c0_355], %702 {strides = array<i32>} : memref<16x256xf32, #tpu.memory_space<vmem>>, vector<16x256xf32>,
      %cst_356 = arith.constant 0.000000e+00 : f32
      %704 = vector.broadcast %cst_356 : f32 to vector<16x128xf32>
      %c0_357 = arith.constant 0 : index
      %c0_358 = arith.constant 0 : index
      %705 = vector.load %arg8[%c0_357, %c0_358] : memref<16x128xf32, #tpu.memory_space<vmem>>, vector<16x128xf32>
      tpu.vector_store %arg8[%c0_357, %c0_358], %704 {strides = array<i32>} : memref<16x128xf32, #tpu.memory_space<vmem>>, vector<16x128xf32>,
      %cst_359 = arith.constant 0.000000e+00 : f32
      %706 = vector.broadcast %cst_359 : f32 to vector<16x128xf32>
      %c0_360 = arith.constant 0 : index
      %c0_361 = arith.constant 0 : index
      %707 = vector.load %arg9[%c0_360, %c0_361] : memref<16x128xf32, #tpu.memory_space<vmem>>, vector<16x128xf32>
      tpu.vector_store %arg9[%c0_360, %c0_361], %706 {strides = array<i32>} : memref<16x128xf32, #tpu.memory_space<vmem>>, vector<16x128xf32>,
    } else {
    }
    %c0 = arith.constant 0 : index
    %c0_1 = arith.constant 0 : index
    %3 = vector.load %arg5[%c0, %c0_1] : memref<1x512xf32, #tpu.memory_space<vmem>>, vector<1x512xf32>
    %4 = vector.shape_cast %3 : vector<1x512xf32> to vector<1x512xf32>
    %5 = vector.broadcast %4 : vector<1x512xf32> to vector<16x512xf32>
    %c0_i32_2 = arith.constant 0 : i32
    %6 = arith.index_cast %c0_i32_2 : i32 to index
    %c0_3 = arith.constant 0 : index
    %c0_4 = arith.constant 0 : index
    %7 = vector.load %arg2[%6, %c0_3, %c0_4] : memref<8x16x512xbf16, #tpu.memory_space<vmem>>, vector<1x16x512xbf16>
    %8 = vector.shape_cast %7 : vector<1x16x512xbf16> to vector<16x512xbf16>
    %9 = arith.extf %8 : vector<16x512xbf16> to vector<16x512xf32>
    %c0_5 = arith.constant 0 : index
    %c0_6 = arith.constant 0 : index
    %10 = vector.load %arg7[%c0_5, %c0_6] : memref<16x256xf32, #tpu.memory_space<vmem>>, vector<16x128xf32>
    %11 = arith.truncf %10 : vector<16x128xf32> to vector<16x128xbf16>
    %c0_7 = arith.constant 0 : index
    %c0_8 = arith.constant 0 : index
    %12 = vector.load %arg3[%c0_7, %c0_8] : memref<128x512xbf16, #tpu.memory_space<vmem>>, vector<128x512xbf16>
    %cst = arith.constant dense<0.000000e+00> : vector<16x512xf32>
    %13 = tpu.matmul %11, %12, %cst {dimension_numbers = #tpu.dot_dimension_numbers<[1], [0], [0], [1], [0, 0, 1, 1], [], []>} : vector<16x128xbf16>, vector<128x512xbf16>, vector<16x512xf32> -> vector<16x512xf32>
    %14 = arith.addf %9, %13 : vector<16x512xf32>
    %15 = vector.extract_strided_slice %14 {offsets = [0, 0], sizes = [16, 128], strides = [1, 1]} : vector<16x512xf32> to vector<16x128xf32>
    %cst_9 = arith.constant 5.000000e-01 : f32
    %16 = vector.broadcast %cst_9 : f32 to vector<16x128xf32>
    %17 = arith.mulf %16, %15 : vector<16x128xf32>
    %18 = math.tanh %17 : vector<16x128xf32>
    %cst_10 = arith.constant 5.000000e-01 : f32
    %19 = vector.broadcast %cst_10 : f32 to vector<16x128xf32>
    %20 = arith.mulf %19, %18 : vector<16x128xf32>
    %cst_11 = arith.constant 5.000000e-01 : f32
    %21 = vector.broadcast %cst_11 : f32 to vector<16x128xf32>
    %22 = arith.addf %20, %21 : vector<16x128xf32>
    %23 = vector.extract_strided_slice %14 {offsets = [0, 128], sizes = [16, 128], strides = [1, 1]} : vector<16x512xf32> to vector<16x128xf32>
    %cst_12 = arith.constant 5.000000e-01 : f32
    %24 = vector.broadcast %cst_12 : f32 to vector<16x128xf32>
    %25 = arith.mulf %24, %23 : vector<16x128xf32>
    %26 = math.tanh %25 : vector<16x128xf32>
    %cst_13 = arith.constant 5.000000e-01 : f32
    %27 = vector.broadcast %cst_13 : f32 to vector<16x128xf32>
    %28 = arith.mulf %27, %26 : vector<16x128xf32>
    %cst_14 = arith.constant 5.000000e-01 : f32
    %29 = vector.broadcast %cst_14 : f32 to vector<16x128xf32>
    %30 = arith.addf %28, %29 : vector<16x128xf32>
    %31 = vector.extract_strided_slice %14 {offsets = [0, 256], sizes = [16, 128], strides = [1, 1]} : vector<16x512xf32> to vector<16x128xf32>
    %32 = math.tanh %31 : vector<16x128xf32>
    %33 = vector.extract_strided_slice %14 {offsets = [0, 384], sizes = [16, 128], strides = [1, 1]} : vector<16x512xf32> to vector<16x128xf32>
    %cst_15 = arith.constant 5.000000e-01 : f32
    %34 = vector.broadcast %cst_15 : f32 to vector<16x128xf32>
    %35 = arith.mulf %34, %33 : vector<16x128xf32>
    %36 = math.tanh %35 : vector<16x128xf32>
    %cst_16 = arith.constant 5.000000e-01 : f32
    %37 = vector.broadcast %cst_16 : f32 to vector<16x128xf32>
    %38 = arith.mulf %37, %36 : vector<16x128xf32>
    %cst_17 = arith.constant 5.000000e-01 : f32
    %39 = vector.broadcast %cst_17 : f32 to vector<16x128xf32>
    %40 = arith.addf %38, %39 : vector<16x128xf32>
    %c0_18 = arith.constant 0 : index
    %c0_19 = arith.constant 0 : index
    %41 = vector.load %arg8[%c0_18, %c0_19] : memref<16x128xf32, #tpu.memory_space<vmem>>, vector<16x128xf32>
    %42 = arith.mulf %30, %41 : vector<16x128xf32>
    %43 = arith.mulf %22, %32 : vector<16x128xf32>
    %44 = arith.addf %42, %43 : vector<16x128xf32>
    %c0_20 = arith.constant 0 : index
    %c0_21 = arith.constant 0 : index
    %45 = vector.load %arg8[%c0_20, %c0_21] : memref<16x128xf32, #tpu.memory_space<vmem>>, vector<16x128xf32>
    tpu.vector_store %arg8[%c0_20, %c0_21], %44 {strides = array<i32>} : memref<16x128xf32, #tpu.memory_space<vmem>>, vector<16x128xf32>,
    %46 = math.tanh %44 : vector<16x128xf32>
    %47 = arith.mulf %40, %46 : vector<16x128xf32>
    %c0_22 = arith.constant 0 : index
    %c0_23 = arith.constant 0 : index
    %48 = vector.load %arg7[%c0_22, %c0_23] : memref<16x256xf32, #tpu.memory_space<vmem>>, vector<16x128xf32>
    tpu.vector_store %arg7[%c0_22, %c0_23], %47 {strides = array<i32>} : memref<16x256xf32, #tpu.memory_space<vmem>>, vector<16x128xf32>,
    %c0_24 = arith.constant 0 : index
    %c0_25 = arith.constant 0 : index
    %49 = vector.load %arg7[%c0_24, %c0_25] : memref<16x256xf32, #tpu.memory_space<vmem>>, vector<16x256xf32>
    %50 = arith.truncf %49 : vector<16x256xf32> to vector<16x256xbf16>
    %c0_26 = arith.constant 0 : index
    %c0_27 = arith.constant 0 : index
    %51 = vector.load %arg4[%c0_26, %c0_27] : memref<256x512xbf16, #tpu.memory_space<vmem>>, vector<256x512xbf16>
    %cst_28 = arith.constant dense<0.000000e+00> : vector<16x512xf32>
    %52 = tpu.matmul %50, %51, %cst_28 {dimension_numbers = #tpu.dot_dimension_numbers<[1], [0], [0], [1], [0, 0, 1, 1], [], []>} : vector<16x256xbf16>, vector<256x512xbf16>, vector<16x512xf32> -> vector<16x512xf32>
    %53 = arith.addf %52, %5 : vector<16x512xf32>
    %54 = vector.extract_strided_slice %53 {offsets = [0, 0], sizes = [16, 128], strides = [1, 1]} : vector<16x512xf32> to vector<16x128xf32>
    %cst_29 = arith.constant 5.000000e-01 : f32
    %55 = vector.broadcast %cst_29 : f32 to vector<16x128xf32>
    %56 = arith.mulf %55, %54 : vector<16x128xf32>
    %57 = math.tanh %56 : vector<16x128xf32>
    %cst_30 = arith.constant 5.000000e-01 : f32
    %58 = vector.broadcast %cst_30 : f32 to vector<16x128xf32>
    %59 = arith.mulf %58, %57 : vector<16x128xf32>
    %cst_31 = arith.constant 5.000000e-01 : f32
    %60 = vector.broadcast %cst_31 : f32 to vector<16x128xf32>
    %61 = arith.addf %59, %60 : vector<16x128xf32>
    %62 = vector.extract_strided_slice %53 {offsets = [0, 128], sizes = [16, 128], strides = [1, 1]} : vector<16x512xf32> to vector<16x128xf32>
    %cst_32 = arith.constant 5.000000e-01 : f32
    %63 = vector.broadcast %cst_32 : f32 to vector<16x128xf32>
    %64 = arith.mulf %63, %62 : vector<16x128xf32>
    %65 = math.tanh %64 : vector<16x128xf32>
    %cst_33 = arith.constant 5.000000e-01 : f32
    %66 = vector.broadcast %cst_33 : f32 to vector<16x128xf32>
    %67 = arith.mulf %66, %65 : vector<16x128xf32>
    %cst_34 = arith.constant 5.000000e-01 : f32
    %68 = vector.broadcast %cst_34 : f32 to vector<16x128xf32>
    %69 = arith.addf %67, %68 : vector<16x128xf32>
    %70 = vector.extract_strided_slice %53 {offsets = [0, 256], sizes = [16, 128], strides = [1, 1]} : vector<16x512xf32> to vector<16x128xf32>
    %71 = math.tanh %70 : vector<16x128xf32>
    %72 = vector.extract_strided_slice %53 {offsets = [0, 384], sizes = [16, 128], strides = [1, 1]} : vector<16x512xf32> to vector<16x128xf32>
    %cst_35 = arith.constant 5.000000e-01 : f32
    %73 = vector.broadcast %cst_35 : f32 to vector<16x128xf32>
    %74 = arith.mulf %73, %72 : vector<16x128xf32>
    %75 = math.tanh %74 : vector<16x128xf32>
    %cst_36 = arith.constant 5.000000e-01 : f32
    %76 = vector.broadcast %cst_36 : f32 to vector<16x128xf32>
    %77 = arith.mulf %76, %75 : vector<16x128xf32>
    %cst_37 = arith.constant 5.000000e-01 : f32
    %78 = vector.broadcast %cst_37 : f32 to vector<16x128xf32>
    %79 = arith.addf %77, %78 : vector<16x128xf32>
    %c0_38 = arith.constant 0 : index
    %c0_39 = arith.constant 0 : index
    %80 = vector.load %arg9[%c0_38, %c0_39] : memref<16x128xf32, #tpu.memory_space<vmem>>, vector<16x128xf32>
    %81 = arith.mulf %69, %80 : vector<16x128xf32>
    %82 = arith.mulf %61, %71 : vector<16x128xf32>
    %83 = arith.addf %81, %82 : vector<16x128xf32>
    %c0_40 = arith.constant 0 : index
    %c0_41 = arith.constant 0 : index
    %84 = vector.load %arg9[%c0_40, %c0_41] : memref<16x128xf32, #tpu.memory_space<vmem>>, vector<16x128xf32>
    tpu.vector_store %arg9[%c0_40, %c0_41], %83 {strides = array<i32>} : memref<16x128xf32, #tpu.memory_space<vmem>>, vector<16x128xf32>,
    %85 = math.tanh %83 : vector<16x128xf32>
    %86 = arith.mulf %79, %85 : vector<16x128xf32>
    %c0_42 = arith.constant 0 : index
    %c128 = arith.constant 128 : index
    %87 = vector.load %arg7[%c0_42, %c128] : memref<16x256xf32, #tpu.memory_space<vmem>>, vector<16x128xf32>
    tpu.vector_store %arg7[%c0_42, %c128], %86 {strides = array<i32>} : memref<16x256xf32, #tpu.memory_space<vmem>>, vector<16x128xf32>,
    %88 = arith.truncf %86 : vector<16x128xf32> to vector<16x128xbf16>
    %89 = arith.index_cast %c0_i32_2 : i32 to index
    %c0_43 = arith.constant 0 : index
    %c0_44 = arith.constant 0 : index
    %90 = vector.load %arg6[%89, %c0_43, %c0_44] : memref<8x16x128xbf16, #tpu.memory_space<vmem>>, vector<1x16x128xbf16>
    %91 = vector.shape_cast %90 : vector<1x16x128xbf16> to vector<16x128xbf16>
    %92 = vector.shape_cast %88 : vector<16x128xbf16> to vector<1x16x128xbf16>
    tpu.vector_store %arg6[%89, %c0_43, %c0_44], %92 {strides = array<i32>} : memref<8x16x128xbf16, #tpu.memory_space<vmem>>, vector<1x16x128xbf16>,
    %c1_i32 = arith.constant 1 : i32
    %93 = arith.index_cast %c1_i32 : i32 to index
    %c0_45 = arith.constant 0 : index
    %c0_46 = arith.constant 0 : index
    %94 = vector.load %arg2[%93, %c0_45, %c0_46] : memref<8x16x512xbf16, #tpu.memory_space<vmem>>, vector<1x16x512xbf16>
    %95 = vector.shape_cast %94 : vector<1x16x512xbf16> to vector<16x512xbf16>
    %96 = arith.extf %95 : vector<16x512xbf16> to vector<16x512xf32>
    %c0_47 = arith.constant 0 : index
    %c0_48 = arith.constant 0 : index
    %97 = vector.load %arg7[%c0_47, %c0_48] : memref<16x256xf32, #tpu.memory_space<vmem>>, vector<16x128xf32>
    %98 = arith.truncf %97 : vector<16x128xf32> to vector<16x128xbf16>
    %c0_49 = arith.constant 0 : index
    %c0_50 = arith.constant 0 : index
    %99 = vector.load %arg3[%c0_49, %c0_50] : memref<128x512xbf16, #tpu.memory_space<vmem>>, vector<128x512xbf16>
    %cst_51 = arith.constant dense<0.000000e+00> : vector<16x512xf32>
    %100 = tpu.matmul %98, %99, %cst_51 {dimension_numbers = #tpu.dot_dimension_numbers<[1], [0], [0], [1], [0, 0, 1, 1], [], []>} : vector<16x128xbf16>, vector<128x512xbf16>, vector<16x512xf32> -> vector<16x512xf32>
    %101 = arith.addf %96, %100 : vector<16x512xf32>
    %102 = vector.extract_strided_slice %101 {offsets = [0, 0], sizes = [16, 128], strides = [1, 1]} : vector<16x512xf32> to vector<16x128xf32>
    %cst_52 = arith.constant 5.000000e-01 : f32
    %103 = vector.broadcast %cst_52 : f32 to vector<16x128xf32>
    %104 = arith.mulf %103, %102 : vector<16x128xf32>
    %105 = math.tanh %104 : vector<16x128xf32>
    %cst_53 = arith.constant 5.000000e-01 : f32
    %106 = vector.broadcast %cst_53 : f32 to vector<16x128xf32>
    %107 = arith.mulf %106, %105 : vector<16x128xf32>
    %cst_54 = arith.constant 5.000000e-01 : f32
    %108 = vector.broadcast %cst_54 : f32 to vector<16x128xf32>
    %109 = arith.addf %107, %108 : vector<16x128xf32>
    %110 = vector.extract_strided_slice %101 {offsets = [0, 128], sizes = [16, 128], strides = [1, 1]} : vector<16x512xf32> to vector<16x128xf32>
    %cst_55 = arith.constant 5.000000e-01 : f32
    %111 = vector.broadcast %cst_55 : f32 to vector<16x128xf32>
    %112 = arith.mulf %111, %110 : vector<16x128xf32>
    %113 = math.tanh %112 : vector<16x128xf32>
    %cst_56 = arith.constant 5.000000e-01 : f32
    %114 = vector.broadcast %cst_56 : f32 to vector<16x128xf32>
    %115 = arith.mulf %114, %113 : vector<16x128xf32>
    %cst_57 = arith.constant 5.000000e-01 : f32
    %116 = vector.broadcast %cst_57 : f32 to vector<16x128xf32>
    %117 = arith.addf %115, %116 : vector<16x128xf32>
    %118 = vector.extract_strided_slice %101 {offsets = [0, 256], sizes = [16, 128], strides = [1, 1]} : vector<16x512xf32> to vector<16x128xf32>
    %119 = math.tanh %118 : vector<16x128xf32>
    %120 = vector.extract_strided_slice %101 {offsets = [0, 384], sizes = [16, 128], strides = [1, 1]} : vector<16x512xf32> to vector<16x128xf32>
    %cst_58 = arith.constant 5.000000e-01 : f32
    %121 = vector.broadcast %cst_58 : f32 to vector<16x128xf32>
    %122 = arith.mulf %121, %120 : vector<16x128xf32>
    %123 = math.tanh %122 : vector<16x128xf32>
    %cst_59 = arith.constant 5.000000e-01 : f32
    %124 = vector.broadcast %cst_59 : f32 to vector<16x128xf32>
    %125 = arith.mulf %124, %123 : vector<16x128xf32>
    %cst_60 = arith.constant 5.000000e-01 : f32
    %126 = vector.broadcast %cst_60 : f32 to vector<16x128xf32>
    %127 = arith.addf %125, %126 : vector<16x128xf32>
    %c0_61 = arith.constant 0 : index
    %c0_62 = arith.constant 0 : index
    %128 = vector.load %arg8[%c0_61, %c0_62] : memref<16x128xf32, #tpu.memory_space<vmem>>, vector<16x128xf32>
    %129 = arith.mulf %117, %128 : vector<16x128xf32>
    %130 = arith.mulf %109, %119 : vector<16x128xf32>
    %131 = arith.addf %129, %130 : vector<16x128xf32>
    %c0_63 = arith.constant 0 : index
    %c0_64 = arith.constant 0 : index
    %132 = vector.load %arg8[%c0_63, %c0_64] : memref<16x128xf32, #tpu.memory_space<vmem>>, vector<16x128xf32>
    tpu.vector_store %arg8[%c0_63, %c0_64], %131 {strides = array<i32>} : memref<16x128xf32, #tpu.memory_space<vmem>>, vector<16x128xf32>,
    %133 = math.tanh %131 : vector<16x128xf32>
    %134 = arith.mulf %127, %133 : vector<16x128xf32>
    %c0_65 = arith.constant 0 : index
    %c0_66 = arith.constant 0 : index
    %135 = vector.load %arg7[%c0_65, %c0_66] : memref<16x256xf32, #tpu.memory_space<vmem>>, vector<16x128xf32>
    tpu.vector_store %arg7[%c0_65, %c0_66], %134 {strides = array<i32>} : memref<16x256xf32, #tpu.memory_space<vmem>>, vector<16x128xf32>,
    %c0_67 = arith.constant 0 : index
    %c0_68 = arith.constant 0 : index
    %136 = vector.load %arg7[%c0_67, %c0_68] : memref<16x256xf32, #tpu.memory_space<vmem>>, vector<16x256xf32>
    %137 = arith.truncf %136 : vector<16x256xf32> to vector<16x256xbf16>
    %c0_69 = arith.constant 0 : index
    %c0_70 = arith.constant 0 : index
    %138 = vector.load %arg4[%c0_69, %c0_70] : memref<256x512xbf16, #tpu.memory_space<vmem>>, vector<256x512xbf16>
    %cst_71 = arith.constant dense<0.000000e+00> : vector<16x512xf32>
    %139 = tpu.matmul %137, %138, %cst_71 {dimension_numbers = #tpu.dot_dimension_numbers<[1], [0], [0], [1], [0, 0, 1, 1], [], []>} : vector<16x256xbf16>, vector<256x512xbf16>, vector<16x512xf32> -> vector<16x512xf32>
    %140 = arith.addf %139, %5 : vector<16x512xf32>
    %141 = vector.extract_strided_slice %140 {offsets = [0, 0], sizes = [16, 128], strides = [1, 1]} : vector<16x512xf32> to vector<16x128xf32>
    %cst_72 = arith.constant 5.000000e-01 : f32
    %142 = vector.broadcast %cst_72 : f32 to vector<16x128xf32>
    %143 = arith.mulf %142, %141 : vector<16x128xf32>
    %144 = math.tanh %143 : vector<16x128xf32>
    %cst_73 = arith.constant 5.000000e-01 : f32
    %145 = vector.broadcast %cst_73 : f32 to vector<16x128xf32>
    %146 = arith.mulf %145, %144 : vector<16x128xf32>
    %cst_74 = arith.constant 5.000000e-01 : f32
    %147 = vector.broadcast %cst_74 : f32 to vector<16x128xf32>
    %148 = arith.addf %146, %147 : vector<16x128xf32>
    %149 = vector.extract_strided_slice %140 {offsets = [0, 128], sizes = [16, 128], strides = [1, 1]} : vector<16x512xf32> to vector<16x128xf32>
    %cst_75 = arith.constant 5.000000e-01 : f32
    %150 = vector.broadcast %cst_75 : f32 to vector<16x128xf32>
    %151 = arith.mulf %150, %149 : vector<16x128xf32>
    %152 = math.tanh %151 : vector<16x128xf32>
    %cst_76 = arith.constant 5.000000e-01 : f32
    %153 = vector.broadcast %cst_76 : f32 to vector<16x128xf32>
    %154 = arith.mulf %153, %152 : vector<16x128xf32>
    %cst_77 = arith.constant 5.000000e-01 : f32
    %155 = vector.broadcast %cst_77 : f32 to vector<16x128xf32>
    %156 = arith.addf %154, %155 : vector<16x128xf32>
    %157 = vector.extract_strided_slice %140 {offsets = [0, 256], sizes = [16, 128], strides = [1, 1]} : vector<16x512xf32> to vector<16x128xf32>
    %158 = math.tanh %157 : vector<16x128xf32>
    %159 = vector.extract_strided_slice %140 {offsets = [0, 384], sizes = [16, 128], strides = [1, 1]} : vector<16x512xf32> to vector<16x128xf32>
    %cst_78 = arith.constant 5.000000e-01 : f32
    %160 = vector.broadcast %cst_78 : f32 to vector<16x128xf32>
    %161 = arith.mulf %160, %159 : vector<16x128xf32>
    %162 = math.tanh %161 : vector<16x128xf32>
    %cst_79 = arith.constant 5.000000e-01 : f32
    %163 = vector.broadcast %cst_79 : f32 to vector<16x128xf32>
    %164 = arith.mulf %163, %162 : vector<16x128xf32>
    %cst_80 = arith.constant 5.000000e-01 : f32
    %165 = vector.broadcast %cst_80 : f32 to vector<16x128xf32>
    %166 = arith.addf %164, %165 : vector<16x128xf32>
    %c0_81 = arith.constant 0 : index
    %c0_82 = arith.constant 0 : index
    %167 = vector.load %arg9[%c0_81, %c0_82] : memref<16x128xf32, #tpu.memory_space<vmem>>, vector<16x128xf32>
    %168 = arith.mulf %156, %167 : vector<16x128xf32>
    %169 = arith.mulf %148, %158 : vector<16x128xf32>
    %170 = arith.addf %168, %169 : vector<16x128xf32>
    %c0_83 = arith.constant 0 : index
    %c0_84 = arith.constant 0 : index
    %171 = vector.load %arg9[%c0_83, %c0_84] : memref<16x128xf32, #tpu.memory_space<vmem>>, vector<16x128xf32>
    tpu.vector_store %arg9[%c0_83, %c0_84], %170 {strides = array<i32>} : memref<16x128xf32, #tpu.memory_space<vmem>>, vector<16x128xf32>,
    %172 = math.tanh %170 : vector<16x128xf32>
    %173 = arith.mulf %166, %172 : vector<16x128xf32>
    %c0_85 = arith.constant 0 : index
    %c128_86 = arith.constant 128 : index
    %174 = vector.load %arg7[%c0_85, %c128_86] : memref<16x256xf32, #tpu.memory_space<vmem>>, vector<16x128xf32>
    tpu.vector_store %arg7[%c0_85, %c128_86], %173 {strides = array<i32>} : memref<16x256xf32, #tpu.memory_space<vmem>>, vector<16x128xf32>,
    %175 = arith.truncf %173 : vector<16x128xf32> to vector<16x128xbf16>
    %176 = arith.index_cast %c1_i32 : i32 to index
    %c0_87 = arith.constant 0 : index
    %c0_88 = arith.constant 0 : index
    %177 = vector.load %arg6[%176, %c0_87, %c0_88] : memref<8x16x128xbf16, #tpu.memory_space<vmem>>, vector<1x16x128xbf16>
    %178 = vector.shape_cast %177 : vector<1x16x128xbf16> to vector<16x128xbf16>
    %179 = vector.shape_cast %175 : vector<16x128xbf16> to vector<1x16x128xbf16>
    tpu.vector_store %arg6[%176, %c0_87, %c0_88], %179 {strides = array<i32>} : memref<8x16x128xbf16, #tpu.memory_space<vmem>>, vector<1x16x128xbf16>,
    %c2_i32 = arith.constant 2 : i32
    %180 = arith.index_cast %c2_i32 : i32 to index
    %c0_89 = arith.constant 0 : index
    %c0_90 = arith.constant 0 : index
    %181 = vector.load %arg2[%180, %c0_89, %c0_90] : memref<8x16x512xbf16, #tpu.memory_space<vmem>>, vector<1x16x512xbf16>
    %182 = vector.shape_cast %181 : vector<1x16x512xbf16> to vector<16x512xbf16>
    %183 = arith.extf %182 : vector<16x512xbf16> to vector<16x512xf32>
    %c0_91 = arith.constant 0 : index
    %c0_92 = arith.constant 0 : index
    %184 = vector.load %arg7[%c0_91, %c0_92] : memref<16x256xf32, #tpu.memory_space<vmem>>, vector<16x128xf32>
    %185 = arith.truncf %184 : vector<16x128xf32> to vector<16x128xbf16>
    %c0_93 = arith.constant 0 : index
    %c0_94 = arith.constant 0 : index
    %186 = vector.load %arg3[%c0_93, %c0_94] : memref<128x512xbf16, #tpu.memory_space<vmem>>, vector<128x512xbf16>
    %cst_95 = arith.constant dense<0.000000e+00> : vector<16x512xf32>
    %187 = tpu.matmul %185, %186, %cst_95 {dimension_numbers = #tpu.dot_dimension_numbers<[1], [0], [0], [1], [0, 0, 1, 1], [], []>} : vector<16x128xbf16>, vector<128x512xbf16>, vector<16x512xf32> -> vector<16x512xf32>
    %188 = arith.addf %183, %187 : vector<16x512xf32>
    %189 = vector.extract_strided_slice %188 {offsets = [0, 0], sizes = [16, 128], strides = [1, 1]} : vector<16x512xf32> to vector<16x128xf32>
    %cst_96 = arith.constant 5.000000e-01 : f32
    %190 = vector.broadcast %cst_96 : f32 to vector<16x128xf32>
    %191 = arith.mulf %190, %189 : vector<16x128xf32>
    %192 = math.tanh %191 : vector<16x128xf32>
    %cst_97 = arith.constant 5.000000e-01 : f32
    %193 = vector.broadcast %cst_97 : f32 to vector<16x128xf32>
    %194 = arith.mulf %193, %192 : vector<16x128xf32>
    %cst_98 = arith.constant 5.000000e-01 : f32
    %195 = vector.broadcast %cst_98 : f32 to vector<16x128xf32>
    %196 = arith.addf %194, %195 : vector<16x128xf32>
    %197 = vector.extract_strided_slice %188 {offsets = [0, 128], sizes = [16, 128], strides = [1, 1]} : vector<16x512xf32> to vector<16x128xf32>
    %cst_99 = arith.constant 5.000000e-01 : f32
    %198 = vector.broadcast %cst_99 : f32 to vector<16x128xf32>
    %199 = arith.mulf %198, %197 : vector<16x128xf32>
    %200 = math.tanh %199 : vector<16x128xf32>
    %cst_100 = arith.constant 5.000000e-01 : f32
    %201 = vector.broadcast %cst_100 : f32 to vector<16x128xf32>
    %202 = arith.mulf %201, %200 : vector<16x128xf32>
    %cst_101 = arith.constant 5.000000e-01 : f32
    %203 = vector.broadcast %cst_101 : f32 to vector<16x128xf32>
    %204 = arith.addf %202, %203 : vector<16x128xf32>
    %205 = vector.extract_strided_slice %188 {offsets = [0, 256], sizes = [16, 128], strides = [1, 1]} : vector<16x512xf32> to vector<16x128xf32>
    %206 = math.tanh %205 : vector<16x128xf32>
    %207 = vector.extract_strided_slice %188 {offsets = [0, 384], sizes = [16, 128], strides = [1, 1]} : vector<16x512xf32> to vector<16x128xf32>
    %cst_102 = arith.constant 5.000000e-01 : f32
    %208 = vector.broadcast %cst_102 : f32 to vector<16x128xf32>
    %209 = arith.mulf %208, %207 : vector<16x128xf32>
    %210 = math.tanh %209 : vector<16x128xf32>
    %cst_103 = arith.constant 5.000000e-01 : f32
    %211 = vector.broadcast %cst_103 : f32 to vector<16x128xf32>
    %212 = arith.mulf %211, %210 : vector<16x128xf32>
    %cst_104 = arith.constant 5.000000e-01 : f32
    %213 = vector.broadcast %cst_104 : f32 to vector<16x128xf32>
    %214 = arith.addf %212, %213 : vector<16x128xf32>
    %c0_105 = arith.constant 0 : index
    %c0_106 = arith.constant 0 : index
    %215 = vector.load %arg8[%c0_105, %c0_106] : memref<16x128xf32, #tpu.memory_space<vmem>>, vector<16x128xf32>
    %216 = arith.mulf %204, %215 : vector<16x128xf32>
    %217 = arith.mulf %196, %206 : vector<16x128xf32>
    %218 = arith.addf %216, %217 : vector<16x128xf32>
    %c0_107 = arith.constant 0 : index
    %c0_108 = arith.constant 0 : index
    %219 = vector.load %arg8[%c0_107, %c0_108] : memref<16x128xf32, #tpu.memory_space<vmem>>, vector<16x128xf32>
    tpu.vector_store %arg8[%c0_107, %c0_108], %218 {strides = array<i32>} : memref<16x128xf32, #tpu.memory_space<vmem>>, vector<16x128xf32>,
    %220 = math.tanh %218 : vector<16x128xf32>
    %221 = arith.mulf %214, %220 : vector<16x128xf32>
    %c0_109 = arith.constant 0 : index
    %c0_110 = arith.constant 0 : index
    %222 = vector.load %arg7[%c0_109, %c0_110] : memref<16x256xf32, #tpu.memory_space<vmem>>, vector<16x128xf32>
    tpu.vector_store %arg7[%c0_109, %c0_110], %221 {strides = array<i32>} : memref<16x256xf32, #tpu.memory_space<vmem>>, vector<16x128xf32>,
    %c0_111 = arith.constant 0 : index
    %c0_112 = arith.constant 0 : index
    %223 = vector.load %arg7[%c0_111, %c0_112] : memref<16x256xf32, #tpu.memory_space<vmem>>, vector<16x256xf32>
    %224 = arith.truncf %223 : vector<16x256xf32> to vector<16x256xbf16>
    %c0_113 = arith.constant 0 : index
    %c0_114 = arith.constant 0 : index
    %225 = vector.load %arg4[%c0_113, %c0_114] : memref<256x512xbf16, #tpu.memory_space<vmem>>, vector<256x512xbf16>
    %cst_115 = arith.constant dense<0.000000e+00> : vector<16x512xf32>
    %226 = tpu.matmul %224, %225, %cst_115 {dimension_numbers = #tpu.dot_dimension_numbers<[1], [0], [0], [1], [0, 0, 1, 1], [], []>} : vector<16x256xbf16>, vector<256x512xbf16>, vector<16x512xf32> -> vector<16x512xf32>
    %227 = arith.addf %226, %5 : vector<16x512xf32>
    %228 = vector.extract_strided_slice %227 {offsets = [0, 0], sizes = [16, 128], strides = [1, 1]} : vector<16x512xf32> to vector<16x128xf32>
    %cst_116 = arith.constant 5.000000e-01 : f32
    %229 = vector.broadcast %cst_116 : f32 to vector<16x128xf32>
    %230 = arith.mulf %229, %228 : vector<16x128xf32>
    %231 = math.tanh %230 : vector<16x128xf32>
    %cst_117 = arith.constant 5.000000e-01 : f32
    %232 = vector.broadcast %cst_117 : f32 to vector<16x128xf32>
    %233 = arith.mulf %232, %231 : vector<16x128xf32>
    %cst_118 = arith.constant 5.000000e-01 : f32
    %234 = vector.broadcast %cst_118 : f32 to vector<16x128xf32>
    %235 = arith.addf %233, %234 : vector<16x128xf32>
    %236 = vector.extract_strided_slice %227 {offsets = [0, 128], sizes = [16, 128], strides = [1, 1]} : vector<16x512xf32> to vector<16x128xf32>
    %cst_119 = arith.constant 5.000000e-01 : f32
    %237 = vector.broadcast %cst_119 : f32 to vector<16x128xf32>
    %238 = arith.mulf %237, %236 : vector<16x128xf32>
    %239 = math.tanh %238 : vector<16x128xf32>
    %cst_120 = arith.constant 5.000000e-01 : f32
    %240 = vector.broadcast %cst_120 : f32 to vector<16x128xf32>
    %241 = arith.mulf %240, %239 : vector<16x128xf32>
    %cst_121 = arith.constant 5.000000e-01 : f32
    %242 = vector.broadcast %cst_121 : f32 to vector<16x128xf32>
    %243 = arith.addf %241, %242 : vector<16x128xf32>
    %244 = vector.extract_strided_slice %227 {offsets = [0, 256], sizes = [16, 128], strides = [1, 1]} : vector<16x512xf32> to vector<16x128xf32>
    %245 = math.tanh %244 : vector<16x128xf32>
    %246 = vector.extract_strided_slice %227 {offsets = [0, 384], sizes = [16, 128], strides = [1, 1]} : vector<16x512xf32> to vector<16x128xf32>
    %cst_122 = arith.constant 5.000000e-01 : f32
    %247 = vector.broadcast %cst_122 : f32 to vector<16x128xf32>
    %248 = arith.mulf %247, %246 : vector<16x128xf32>
    %249 = math.tanh %248 : vector<16x128xf32>
    %cst_123 = arith.constant 5.000000e-01 : f32
    %250 = vector.broadcast %cst_123 : f32 to vector<16x128xf32>
    %251 = arith.mulf %250, %249 : vector<16x128xf32>
    %cst_124 = arith.constant 5.000000e-01 : f32
    %252 = vector.broadcast %cst_124 : f32 to vector<16x128xf32>
    %253 = arith.addf %251, %252 : vector<16x128xf32>
    %c0_125 = arith.constant 0 : index
    %c0_126 = arith.constant 0 : index
    %254 = vector.load %arg9[%c0_125, %c0_126] : memref<16x128xf32, #tpu.memory_space<vmem>>, vector<16x128xf32>
    %255 = arith.mulf %243, %254 : vector<16x128xf32>
    %256 = arith.mulf %235, %245 : vector<16x128xf32>
    %257 = arith.addf %255, %256 : vector<16x128xf32>
    %c0_127 = arith.constant 0 : index
    %c0_128 = arith.constant 0 : index
    %258 = vector.load %arg9[%c0_127, %c0_128] : memref<16x128xf32, #tpu.memory_space<vmem>>, vector<16x128xf32>
    tpu.vector_store %arg9[%c0_127, %c0_128], %257 {strides = array<i32>} : memref<16x128xf32, #tpu.memory_space<vmem>>, vector<16x128xf32>,
    %259 = math.tanh %257 : vector<16x128xf32>
    %260 = arith.mulf %253, %259 : vector<16x128xf32>
    %c0_129 = arith.constant 0 : index
    %c128_130 = arith.constant 128 : index
    %261 = vector.load %arg7[%c0_129, %c128_130] : memref<16x256xf32, #tpu.memory_space<vmem>>, vector<16x128xf32>
    tpu.vector_store %arg7[%c0_129, %c128_130], %260 {strides = array<i32>} : memref<16x256xf32, #tpu.memory_space<vmem>>, vector<16x128xf32>,
    %262 = arith.truncf %260 : vector<16x128xf32> to vector<16x128xbf16>
    %263 = arith.index_cast %c2_i32 : i32 to index
    %c0_131 = arith.constant 0 : index
    %c0_132 = arith.constant 0 : index
    %264 = vector.load %arg6[%263, %c0_131, %c0_132] : memref<8x16x128xbf16, #tpu.memory_space<vmem>>, vector<1x16x128xbf16>
    %265 = vector.shape_cast %264 : vector<1x16x128xbf16> to vector<16x128xbf16>
    %266 = vector.shape_cast %262 : vector<16x128xbf16> to vector<1x16x128xbf16>
    tpu.vector_store %arg6[%263, %c0_131, %c0_132], %266 {strides = array<i32>} : memref<8x16x128xbf16, #tpu.memory_space<vmem>>, vector<1x16x128xbf16>,
    %c3_i32 = arith.constant 3 : i32
    %267 = arith.index_cast %c3_i32 : i32 to index
    %c0_133 = arith.constant 0 : index
    %c0_134 = arith.constant 0 : index
    %268 = vector.load %arg2[%267, %c0_133, %c0_134] : memref<8x16x512xbf16, #tpu.memory_space<vmem>>, vector<1x16x512xbf16>
    %269 = vector.shape_cast %268 : vector<1x16x512xbf16> to vector<16x512xbf16>
    %270 = arith.extf %269 : vector<16x512xbf16> to vector<16x512xf32>
    %c0_135 = arith.constant 0 : index
    %c0_136 = arith.constant 0 : index
    %271 = vector.load %arg7[%c0_135, %c0_136] : memref<16x256xf32, #tpu.memory_space<vmem>>, vector<16x128xf32>
    %272 = arith.truncf %271 : vector<16x128xf32> to vector<16x128xbf16>
    %c0_137 = arith.constant 0 : index
    %c0_138 = arith.constant 0 : index
    %273 = vector.load %arg3[%c0_137, %c0_138] : memref<128x512xbf16, #tpu.memory_space<vmem>>, vector<128x512xbf16>
    %cst_139 = arith.constant dense<0.000000e+00> : vector<16x512xf32>
    %274 = tpu.matmul %272, %273, %cst_139 {dimension_numbers = #tpu.dot_dimension_numbers<[1], [0], [0], [1], [0, 0, 1, 1], [], []>} : vector<16x128xbf16>, vector<128x512xbf16>, vector<16x512xf32> -> vector<16x512xf32>
    %275 = arith.addf %270, %274 : vector<16x512xf32>
    %276 = vector.extract_strided_slice %275 {offsets = [0, 0], sizes = [16, 128], strides = [1, 1]} : vector<16x512xf32> to vector<16x128xf32>
    %cst_140 = arith.constant 5.000000e-01 : f32
    %277 = vector.broadcast %cst_140 : f32 to vector<16x128xf32>
    %278 = arith.mulf %277, %276 : vector<16x128xf32>
    %279 = math.tanh %278 : vector<16x128xf32>
    %cst_141 = arith.constant 5.000000e-01 : f32
    %280 = vector.broadcast %cst_141 : f32 to vector<16x128xf32>
    %281 = arith.mulf %280, %279 : vector<16x128xf32>
    %cst_142 = arith.constant 5.000000e-01 : f32
    %282 = vector.broadcast %cst_142 : f32 to vector<16x128xf32>
    %283 = arith.addf %281, %282 : vector<16x128xf32>
    %284 = vector.extract_strided_slice %275 {offsets = [0, 128], sizes = [16, 128], strides = [1, 1]} : vector<16x512xf32> to vector<16x128xf32>
    %cst_143 = arith.constant 5.000000e-01 : f32
    %285 = vector.broadcast %cst_143 : f32 to vector<16x128xf32>
    %286 = arith.mulf %285, %284 : vector<16x128xf32>
    %287 = math.tanh %286 : vector<16x128xf32>
    %cst_144 = arith.constant 5.000000e-01 : f32
    %288 = vector.broadcast %cst_144 : f32 to vector<16x128xf32>
    %289 = arith.mulf %288, %287 : vector<16x128xf32>
    %cst_145 = arith.constant 5.000000e-01 : f32
    %290 = vector.broadcast %cst_145 : f32 to vector<16x128xf32>
    %291 = arith.addf %289, %290 : vector<16x128xf32>
    %292 = vector.extract_strided_slice %275 {offsets = [0, 256], sizes = [16, 128], strides = [1, 1]} : vector<16x512xf32> to vector<16x128xf32>
    %293 = math.tanh %292 : vector<16x128xf32>
    %294 = vector.extract_strided_slice %275 {offsets = [0, 384], sizes = [16, 128], strides = [1, 1]} : vector<16x512xf32> to vector<16x128xf32>
    %cst_146 = arith.constant 5.000000e-01 : f32
    %295 = vector.broadcast %cst_146 : f32 to vector<16x128xf32>
    %296 = arith.mulf %295, %294 : vector<16x128xf32>
    %297 = math.tanh %296 : vector<16x128xf32>
    %cst_147 = arith.constant 5.000000e-01 : f32
    %298 = vector.broadcast %cst_147 : f32 to vector<16x128xf32>
    %299 = arith.mulf %298, %297 : vector<16x128xf32>
    %cst_148 = arith.constant 5.000000e-01 : f32
    %300 = vector.broadcast %cst_148 : f32 to vector<16x128xf32>
    %301 = arith.addf %299, %300 : vector<16x128xf32>
    %c0_149 = arith.constant 0 : index
    %c0_150 = arith.constant 0 : index
    %302 = vector.load %arg8[%c0_149, %c0_150] : memref<16x128xf32, #tpu.memory_space<vmem>>, vector<16x128xf32>
    %303 = arith.mulf %291, %302 : vector<16x128xf32>
    %304 = arith.mulf %283, %293 : vector<16x128xf32>
    %305 = arith.addf %303, %304 : vector<16x128xf32>
    %c0_151 = arith.constant 0 : index
    %c0_152 = arith.constant 0 : index
    %306 = vector.load %arg8[%c0_151, %c0_152] : memref<16x128xf32, #tpu.memory_space<vmem>>, vector<16x128xf32>
    tpu.vector_store %arg8[%c0_151, %c0_152], %305 {strides = array<i32>} : memref<16x128xf32, #tpu.memory_space<vmem>>, vector<16x128xf32>,
    %307 = math.tanh %305 : vector<16x128xf32>
    %308 = arith.mulf %301, %307 : vector<16x128xf32>
    %c0_153 = arith.constant 0 : index
    %c0_154 = arith.constant 0 : index
    %309 = vector.load %arg7[%c0_153, %c0_154] : memref<16x256xf32, #tpu.memory_space<vmem>>, vector<16x128xf32>
    tpu.vector_store %arg7[%c0_153, %c0_154], %308 {strides = array<i32>} : memref<16x256xf32, #tpu.memory_space<vmem>>, vector<16x128xf32>,
    %c0_155 = arith.constant 0 : index
    %c0_156 = arith.constant 0 : index
    %310 = vector.load %arg7[%c0_155, %c0_156] : memref<16x256xf32, #tpu.memory_space<vmem>>, vector<16x256xf32>
    %311 = arith.truncf %310 : vector<16x256xf32> to vector<16x256xbf16>
    %c0_157 = arith.constant 0 : index
    %c0_158 = arith.constant 0 : index
    %312 = vector.load %arg4[%c0_157, %c0_158] : memref<256x512xbf16, #tpu.memory_space<vmem>>, vector<256x512xbf16>
    %cst_159 = arith.constant dense<0.000000e+00> : vector<16x512xf32>
    %313 = tpu.matmul %311, %312, %cst_159 {dimension_numbers = #tpu.dot_dimension_numbers<[1], [0], [0], [1], [0, 0, 1, 1], [], []>} : vector<16x256xbf16>, vector<256x512xbf16>, vector<16x512xf32> -> vector<16x512xf32>
    %314 = arith.addf %313, %5 : vector<16x512xf32>
    %315 = vector.extract_strided_slice %314 {offsets = [0, 0], sizes = [16, 128], strides = [1, 1]} : vector<16x512xf32> to vector<16x128xf32>
    %cst_160 = arith.constant 5.000000e-01 : f32
    %316 = vector.broadcast %cst_160 : f32 to vector<16x128xf32>
    %317 = arith.mulf %316, %315 : vector<16x128xf32>
    %318 = math.tanh %317 : vector<16x128xf32>
    %cst_161 = arith.constant 5.000000e-01 : f32
    %319 = vector.broadcast %cst_161 : f32 to vector<16x128xf32>
    %320 = arith.mulf %319, %318 : vector<16x128xf32>
    %cst_162 = arith.constant 5.000000e-01 : f32
    %321 = vector.broadcast %cst_162 : f32 to vector<16x128xf32>
    %322 = arith.addf %320, %321 : vector<16x128xf32>
    %323 = vector.extract_strided_slice %314 {offsets = [0, 128], sizes = [16, 128], strides = [1, 1]} : vector<16x512xf32> to vector<16x128xf32>
    %cst_163 = arith.constant 5.000000e-01 : f32
    %324 = vector.broadcast %cst_163 : f32 to vector<16x128xf32>
    %325 = arith.mulf %324, %323 : vector<16x128xf32>
    %326 = math.tanh %325 : vector<16x128xf32>
    %cst_164 = arith.constant 5.000000e-01 : f32
    %327 = vector.broadcast %cst_164 : f32 to vector<16x128xf32>
    %328 = arith.mulf %327, %326 : vector<16x128xf32>
    %cst_165 = arith.constant 5.000000e-01 : f32
    %329 = vector.broadcast %cst_165 : f32 to vector<16x128xf32>
    %330 = arith.addf %328, %329 : vector<16x128xf32>
    %331 = vector.extract_strided_slice %314 {offsets = [0, 256], sizes = [16, 128], strides = [1, 1]} : vector<16x512xf32> to vector<16x128xf32>
    %332 = math.tanh %331 : vector<16x128xf32>
    %333 = vector.extract_strided_slice %314 {offsets = [0, 384], sizes = [16, 128], strides = [1, 1]} : vector<16x512xf32> to vector<16x128xf32>
    %cst_166 = arith.constant 5.000000e-01 : f32
    %334 = vector.broadcast %cst_166 : f32 to vector<16x128xf32>
    %335 = arith.mulf %334, %333 : vector<16x128xf32>
    %336 = math.tanh %335 : vector<16x128xf32>
    %cst_167 = arith.constant 5.000000e-01 : f32
    %337 = vector.broadcast %cst_167 : f32 to vector<16x128xf32>
    %338 = arith.mulf %337, %336 : vector<16x128xf32>
    %cst_168 = arith.constant 5.000000e-01 : f32
    %339 = vector.broadcast %cst_168 : f32 to vector<16x128xf32>
    %340 = arith.addf %338, %339 : vector<16x128xf32>
    %c0_169 = arith.constant 0 : index
    %c0_170 = arith.constant 0 : index
    %341 = vector.load %arg9[%c0_169, %c0_170] : memref<16x128xf32, #tpu.memory_space<vmem>>, vector<16x128xf32>
    %342 = arith.mulf %330, %341 : vector<16x128xf32>
    %343 = arith.mulf %322, %332 : vector<16x128xf32>
    %344 = arith.addf %342, %343 : vector<16x128xf32>
    %c0_171 = arith.constant 0 : index
    %c0_172 = arith.constant 0 : index
    %345 = vector.load %arg9[%c0_171, %c0_172] : memref<16x128xf32, #tpu.memory_space<vmem>>, vector<16x128xf32>
    tpu.vector_store %arg9[%c0_171, %c0_172], %344 {strides = array<i32>} : memref<16x128xf32, #tpu.memory_space<vmem>>, vector<16x128xf32>,
    %346 = math.tanh %344 : vector<16x128xf32>
    %347 = arith.mulf %340, %346 : vector<16x128xf32>
    %c0_173 = arith.constant 0 : index
    %c128_174 = arith.constant 128 : index
    %348 = vector.load %arg7[%c0_173, %c128_174] : memref<16x256xf32, #tpu.memory_space<vmem>>, vector<16x128xf32>
    tpu.vector_store %arg7[%c0_173, %c128_174], %347 {strides = array<i32>} : memref<16x256xf32, #tpu.memory_space<vmem>>, vector<16x128xf32>,
    %349 = arith.truncf %347 : vector<16x128xf32> to vector<16x128xbf16>
    %350 = arith.index_cast %c3_i32 : i32 to index
    %c0_175 = arith.constant 0 : index
    %c0_176 = arith.constant 0 : index
    %351 = vector.load %arg6[%350, %c0_175, %c0_176] : memref<8x16x128xbf16, #tpu.memory_space<vmem>>, vector<1x16x128xbf16>
    %352 = vector.shape_cast %351 : vector<1x16x128xbf16> to vector<16x128xbf16>
    %353 = vector.shape_cast %349 : vector<16x128xbf16> to vector<1x16x128xbf16>
    tpu.vector_store %arg6[%350, %c0_175, %c0_176], %353 {strides = array<i32>} : memref<8x16x128xbf16, #tpu.memory_space<vmem>>, vector<1x16x128xbf16>,
    %c4_i32 = arith.constant 4 : i32
    %354 = arith.index_cast %c4_i32 : i32 to index
    %c0_177 = arith.constant 0 : index
    %c0_178 = arith.constant 0 : index
    %355 = vector.load %arg2[%354, %c0_177, %c0_178] : memref<8x16x512xbf16, #tpu.memory_space<vmem>>, vector<1x16x512xbf16>
    %356 = vector.shape_cast %355 : vector<1x16x512xbf16> to vector<16x512xbf16>
    %357 = arith.extf %356 : vector<16x512xbf16> to vector<16x512xf32>
    %c0_179 = arith.constant 0 : index
    %c0_180 = arith.constant 0 : index
    %358 = vector.load %arg7[%c0_179, %c0_180] : memref<16x256xf32, #tpu.memory_space<vmem>>, vector<16x128xf32>
    %359 = arith.truncf %358 : vector<16x128xf32> to vector<16x128xbf16>
    %c0_181 = arith.constant 0 : index
    %c0_182 = arith.constant 0 : index
    %360 = vector.load %arg3[%c0_181, %c0_182] : memref<128x512xbf16, #tpu.memory_space<vmem>>, vector<128x512xbf16>
    %cst_183 = arith.constant dense<0.000000e+00> : vector<16x512xf32>
    %361 = tpu.matmul %359, %360, %cst_183 {dimension_numbers = #tpu.dot_dimension_numbers<[1], [0], [0], [1], [0, 0, 1, 1], [], []>} : vector<16x128xbf16>, vector<128x512xbf16>, vector<16x512xf32> -> vector<16x512xf32>
    %362 = arith.addf %357, %361 : vector<16x512xf32>
    %363 = vector.extract_strided_slice %362 {offsets = [0, 0], sizes = [16, 128], strides = [1, 1]} : vector<16x512xf32> to vector<16x128xf32>
    %cst_184 = arith.constant 5.000000e-01 : f32
    %364 = vector.broadcast %cst_184 : f32 to vector<16x128xf32>
    %365 = arith.mulf %364, %363 : vector<16x128xf32>
    %366 = math.tanh %365 : vector<16x128xf32>
    %cst_185 = arith.constant 5.000000e-01 : f32
    %367 = vector.broadcast %cst_185 : f32 to vector<16x128xf32>
    %368 = arith.mulf %367, %366 : vector<16x128xf32>
    %cst_186 = arith.constant 5.000000e-01 : f32
    %369 = vector.broadcast %cst_186 : f32 to vector<16x128xf32>
    %370 = arith.addf %368, %369 : vector<16x128xf32>
    %371 = vector.extract_strided_slice %362 {offsets = [0, 128], sizes = [16, 128], strides = [1, 1]} : vector<16x512xf32> to vector<16x128xf32>
    %cst_187 = arith.constant 5.000000e-01 : f32
    %372 = vector.broadcast %cst_187 : f32 to vector<16x128xf32>
    %373 = arith.mulf %372, %371 : vector<16x128xf32>
    %374 = math.tanh %373 : vector<16x128xf32>
    %cst_188 = arith.constant 5.000000e-01 : f32
    %375 = vector.broadcast %cst_188 : f32 to vector<16x128xf32>
    %376 = arith.mulf %375, %374 : vector<16x128xf32>
    %cst_189 = arith.constant 5.000000e-01 : f32
    %377 = vector.broadcast %cst_189 : f32 to vector<16x128xf32>
    %378 = arith.addf %376, %377 : vector<16x128xf32>
    %379 = vector.extract_strided_slice %362 {offsets = [0, 256], sizes = [16, 128], strides = [1, 1]} : vector<16x512xf32> to vector<16x128xf32>
    %380 = math.tanh %379 : vector<16x128xf32>
    %381 = vector.extract_strided_slice %362 {offsets = [0, 384], sizes = [16, 128], strides = [1, 1]} : vector<16x512xf32> to vector<16x128xf32>
    %cst_190 = arith.constant 5.000000e-01 : f32
    %382 = vector.broadcast %cst_190 : f32 to vector<16x128xf32>
    %383 = arith.mulf %382, %381 : vector<16x128xf32>
    %384 = math.tanh %383 : vector<16x128xf32>
    %cst_191 = arith.constant 5.000000e-01 : f32
    %385 = vector.broadcast %cst_191 : f32 to vector<16x128xf32>
    %386 = arith.mulf %385, %384 : vector<16x128xf32>
    %cst_192 = arith.constant 5.000000e-01 : f32
    %387 = vector.broadcast %cst_192 : f32 to vector<16x128xf32>
    %388 = arith.addf %386, %387 : vector<16x128xf32>
    %c0_193 = arith.constant 0 : index
    %c0_194 = arith.constant 0 : index
    %389 = vector.load %arg8[%c0_193, %c0_194] : memref<16x128xf32, #tpu.memory_space<vmem>>, vector<16x128xf32>
    %390 = arith.mulf %378, %389 : vector<16x128xf32>
    %391 = arith.mulf %370, %380 : vector<16x128xf32>
    %392 = arith.addf %390, %391 : vector<16x128xf32>
    %c0_195 = arith.constant 0 : index
    %c0_196 = arith.constant 0 : index
    %393 = vector.load %arg8[%c0_195, %c0_196] : memref<16x128xf32, #tpu.memory_space<vmem>>, vector<16x128xf32>
    tpu.vector_store %arg8[%c0_195, %c0_196], %392 {strides = array<i32>} : memref<16x128xf32, #tpu.memory_space<vmem>>, vector<16x128xf32>,
    %394 = math.tanh %392 : vector<16x128xf32>
    %395 = arith.mulf %388, %394 : vector<16x128xf32>
    %c0_197 = arith.constant 0 : index
    %c0_198 = arith.constant 0 : index
    %396 = vector.load %arg7[%c0_197, %c0_198] : memref<16x256xf32, #tpu.memory_space<vmem>>, vector<16x128xf32>
    tpu.vector_store %arg7[%c0_197, %c0_198], %395 {strides = array<i32>} : memref<16x256xf32, #tpu.memory_space<vmem>>, vector<16x128xf32>,
    %c0_199 = arith.constant 0 : index
    %c0_200 = arith.constant 0 : index
    %397 = vector.load %arg7[%c0_199, %c0_200] : memref<16x256xf32, #tpu.memory_space<vmem>>, vector<16x256xf32>
    %398 = arith.truncf %397 : vector<16x256xf32> to vector<16x256xbf16>
    %c0_201 = arith.constant 0 : index
    %c0_202 = arith.constant 0 : index
    %399 = vector.load %arg4[%c0_201, %c0_202] : memref<256x512xbf16, #tpu.memory_space<vmem>>, vector<256x512xbf16>
    %cst_203 = arith.constant dense<0.000000e+00> : vector<16x512xf32>
    %400 = tpu.matmul %398, %399, %cst_203 {dimension_numbers = #tpu.dot_dimension_numbers<[1], [0], [0], [1], [0, 0, 1, 1], [], []>} : vector<16x256xbf16>, vector<256x512xbf16>, vector<16x512xf32> -> vector<16x512xf32>
    %401 = arith.addf %400, %5 : vector<16x512xf32>
    %402 = vector.extract_strided_slice %401 {offsets = [0, 0], sizes = [16, 128], strides = [1, 1]} : vector<16x512xf32> to vector<16x128xf32>
    %cst_204 = arith.constant 5.000000e-01 : f32
    %403 = vector.broadcast %cst_204 : f32 to vector<16x128xf32>
    %404 = arith.mulf %403, %402 : vector<16x128xf32>
    %405 = math.tanh %404 : vector<16x128xf32>
    %cst_205 = arith.constant 5.000000e-01 : f32
    %406 = vector.broadcast %cst_205 : f32 to vector<16x128xf32>
    %407 = arith.mulf %406, %405 : vector<16x128xf32>
    %cst_206 = arith.constant 5.000000e-01 : f32
    %408 = vector.broadcast %cst_206 : f32 to vector<16x128xf32>
    %409 = arith.addf %407, %408 : vector<16x128xf32>
    %410 = vector.extract_strided_slice %401 {offsets = [0, 128], sizes = [16, 128], strides = [1, 1]} : vector<16x512xf32> to vector<16x128xf32>
    %cst_207 = arith.constant 5.000000e-01 : f32
    %411 = vector.broadcast %cst_207 : f32 to vector<16x128xf32>
    %412 = arith.mulf %411, %410 : vector<16x128xf32>
    %413 = math.tanh %412 : vector<16x128xf32>
    %cst_208 = arith.constant 5.000000e-01 : f32
    %414 = vector.broadcast %cst_208 : f32 to vector<16x128xf32>
    %415 = arith.mulf %414, %413 : vector<16x128xf32>
    %cst_209 = arith.constant 5.000000e-01 : f32
    %416 = vector.broadcast %cst_209 : f32 to vector<16x128xf32>
    %417 = arith.addf %415, %416 : vector<16x128xf32>
    %418 = vector.extract_strided_slice %401 {offsets = [0, 256], sizes = [16, 128], strides = [1, 1]} : vector<16x512xf32> to vector<16x128xf32>
    %419 = math.tanh %418 : vector<16x128xf32>
    %420 = vector.extract_strided_slice %401 {offsets = [0, 384], sizes = [16, 128], strides = [1, 1]} : vector<16x512xf32> to vector<16x128xf32>
    %cst_210 = arith.constant 5.000000e-01 : f32
    %421 = vector.broadcast %cst_210 : f32 to vector<16x128xf32>
    %422 = arith.mulf %421, %420 : vector<16x128xf32>
    %423 = math.tanh %422 : vector<16x128xf32>
    %cst_211 = arith.constant 5.000000e-01 : f32
    %424 = vector.broadcast %cst_211 : f32 to vector<16x128xf32>
    %425 = arith.mulf %424, %423 : vector<16x128xf32>
    %cst_212 = arith.constant 5.000000e-01 : f32
    %426 = vector.broadcast %cst_212 : f32 to vector<16x128xf32>
    %427 = arith.addf %425, %426 : vector<16x128xf32>
    %c0_213 = arith.constant 0 : index
    %c0_214 = arith.constant 0 : index
    %428 = vector.load %arg9[%c0_213, %c0_214] : memref<16x128xf32, #tpu.memory_space<vmem>>, vector<16x128xf32>
    %429 = arith.mulf %417, %428 : vector<16x128xf32>
    %430 = arith.mulf %409, %419 : vector<16x128xf32>
    %431 = arith.addf %429, %430 : vector<16x128xf32>
    %c0_215 = arith.constant 0 : index
    %c0_216 = arith.constant 0 : index
    %432 = vector.load %arg9[%c0_215, %c0_216] : memref<16x128xf32, #tpu.memory_space<vmem>>, vector<16x128xf32>
    tpu.vector_store %arg9[%c0_215, %c0_216], %431 {strides = array<i32>} : memref<16x128xf32, #tpu.memory_space<vmem>>, vector<16x128xf32>,
    %433 = math.tanh %431 : vector<16x128xf32>
    %434 = arith.mulf %427, %433 : vector<16x128xf32>
    %c0_217 = arith.constant 0 : index
    %c128_218 = arith.constant 128 : index
    %435 = vector.load %arg7[%c0_217, %c128_218] : memref<16x256xf32, #tpu.memory_space<vmem>>, vector<16x128xf32>
    tpu.vector_store %arg7[%c0_217, %c128_218], %434 {strides = array<i32>} : memref<16x256xf32, #tpu.memory_space<vmem>>, vector<16x128xf32>,
    %436 = arith.truncf %434 : vector<16x128xf32> to vector<16x128xbf16>
    %437 = arith.index_cast %c4_i32 : i32 to index
    %c0_219 = arith.constant 0 : index
    %c0_220 = arith.constant 0 : index
    %438 = vector.load %arg6[%437, %c0_219, %c0_220] : memref<8x16x128xbf16, #tpu.memory_space<vmem>>, vector<1x16x128xbf16>
    %439 = vector.shape_cast %438 : vector<1x16x128xbf16> to vector<16x128xbf16>
    %440 = vector.shape_cast %436 : vector<16x128xbf16> to vector<1x16x128xbf16>
    tpu.vector_store %arg6[%437, %c0_219, %c0_220], %440 {strides = array<i32>} : memref<8x16x128xbf16, #tpu.memory_space<vmem>>, vector<1x16x128xbf16>,
    %c5_i32 = arith.constant 5 : i32
    %441 = arith.index_cast %c5_i32 : i32 to index
    %c0_221 = arith.constant 0 : index
    %c0_222 = arith.constant 0 : index
    %442 = vector.load %arg2[%441, %c0_221, %c0_222] : memref<8x16x512xbf16, #tpu.memory_space<vmem>>, vector<1x16x512xbf16>
    %443 = vector.shape_cast %442 : vector<1x16x512xbf16> to vector<16x512xbf16>
    %444 = arith.extf %443 : vector<16x512xbf16> to vector<16x512xf32>
    %c0_223 = arith.constant 0 : index
    %c0_224 = arith.constant 0 : index
    %445 = vector.load %arg7[%c0_223, %c0_224] : memref<16x256xf32, #tpu.memory_space<vmem>>, vector<16x128xf32>
    %446 = arith.truncf %445 : vector<16x128xf32> to vector<16x128xbf16>
    %c0_225 = arith.constant 0 : index
    %c0_226 = arith.constant 0 : index
    %447 = vector.load %arg3[%c0_225, %c0_226] : memref<128x512xbf16, #tpu.memory_space<vmem>>, vector<128x512xbf16>
    %cst_227 = arith.constant dense<0.000000e+00> : vector<16x512xf32>
    %448 = tpu.matmul %446, %447, %cst_227 {dimension_numbers = #tpu.dot_dimension_numbers<[1], [0], [0], [1], [0, 0, 1, 1], [], []>} : vector<16x128xbf16>, vector<128x512xbf16>, vector<16x512xf32> -> vector<16x512xf32>
    %449 = arith.addf %444, %448 : vector<16x512xf32>
    %450 = vector.extract_strided_slice %449 {offsets = [0, 0], sizes = [16, 128], strides = [1, 1]} : vector<16x512xf32> to vector<16x128xf32>
    %cst_228 = arith.constant 5.000000e-01 : f32
    %451 = vector.broadcast %cst_228 : f32 to vector<16x128xf32>
    %452 = arith.mulf %451, %450 : vector<16x128xf32>
    %453 = math.tanh %452 : vector<16x128xf32>
    %cst_229 = arith.constant 5.000000e-01 : f32
    %454 = vector.broadcast %cst_229 : f32 to vector<16x128xf32>
    %455 = arith.mulf %454, %453 : vector<16x128xf32>
    %cst_230 = arith.constant 5.000000e-01 : f32
    %456 = vector.broadcast %cst_230 : f32 to vector<16x128xf32>
    %457 = arith.addf %455, %456 : vector<16x128xf32>
    %458 = vector.extract_strided_slice %449 {offsets = [0, 128], sizes = [16, 128], strides = [1, 1]} : vector<16x512xf32> to vector<16x128xf32>
    %cst_231 = arith.constant 5.000000e-01 : f32
    %459 = vector.broadcast %cst_231 : f32 to vector<16x128xf32>
    %460 = arith.mulf %459, %458 : vector<16x128xf32>
    %461 = math.tanh %460 : vector<16x128xf32>
    %cst_232 = arith.constant 5.000000e-01 : f32
    %462 = vector.broadcast %cst_232 : f32 to vector<16x128xf32>
    %463 = arith.mulf %462, %461 : vector<16x128xf32>
    %cst_233 = arith.constant 5.000000e-01 : f32
    %464 = vector.broadcast %cst_233 : f32 to vector<16x128xf32>
    %465 = arith.addf %463, %464 : vector<16x128xf32>
    %466 = vector.extract_strided_slice %449 {offsets = [0, 256], sizes = [16, 128], strides = [1, 1]} : vector<16x512xf32> to vector<16x128xf32>
    %467 = math.tanh %466 : vector<16x128xf32>
    %468 = vector.extract_strided_slice %449 {offsets = [0, 384], sizes = [16, 128], strides = [1, 1]} : vector<16x512xf32> to vector<16x128xf32>
    %cst_234 = arith.constant 5.000000e-01 : f32
    %469 = vector.broadcast %cst_234 : f32 to vector<16x128xf32>
    %470 = arith.mulf %469, %468 : vector<16x128xf32>
    %471 = math.tanh %470 : vector<16x128xf32>
    %cst_235 = arith.constant 5.000000e-01 : f32
    %472 = vector.broadcast %cst_235 : f32 to vector<16x128xf32>
    %473 = arith.mulf %472, %471 : vector<16x128xf32>
    %cst_236 = arith.constant 5.000000e-01 : f32
    %474 = vector.broadcast %cst_236 : f32 to vector<16x128xf32>
    %475 = arith.addf %473, %474 : vector<16x128xf32>
    %c0_237 = arith.constant 0 : index
    %c0_238 = arith.constant 0 : index
    %476 = vector.load %arg8[%c0_237, %c0_238] : memref<16x128xf32, #tpu.memory_space<vmem>>, vector<16x128xf32>
    %477 = arith.mulf %465, %476 : vector<16x128xf32>
    %478 = arith.mulf %457, %467 : vector<16x128xf32>
    %479 = arith.addf %477, %478 : vector<16x128xf32>
    %c0_239 = arith.constant 0 : index
    %c0_240 = arith.constant 0 : index
    %480 = vector.load %arg8[%c0_239, %c0_240] : memref<16x128xf32, #tpu.memory_space<vmem>>, vector<16x128xf32>
    tpu.vector_store %arg8[%c0_239, %c0_240], %479 {strides = array<i32>} : memref<16x128xf32, #tpu.memory_space<vmem>>, vector<16x128xf32>,
    %481 = math.tanh %479 : vector<16x128xf32>
    %482 = arith.mulf %475, %481 : vector<16x128xf32>
    %c0_241 = arith.constant 0 : index
    %c0_242 = arith.constant 0 : index
    %483 = vector.load %arg7[%c0_241, %c0_242] : memref<16x256xf32, #tpu.memory_space<vmem>>, vector<16x128xf32>
    tpu.vector_store %arg7[%c0_241, %c0_242], %482 {strides = array<i32>} : memref<16x256xf32, #tpu.memory_space<vmem>>, vector<16x128xf32>,
    %c0_243 = arith.constant 0 : index
    %c0_244 = arith.constant 0 : index
    %484 = vector.load %arg7[%c0_243, %c0_244] : memref<16x256xf32, #tpu.memory_space<vmem>>, vector<16x256xf32>
    %485 = arith.truncf %484 : vector<16x256xf32> to vector<16x256xbf16>
    %c0_245 = arith.constant 0 : index
    %c0_246 = arith.constant 0 : index
    %486 = vector.load %arg4[%c0_245, %c0_246] : memref<256x512xbf16, #tpu.memory_space<vmem>>, vector<256x512xbf16>
    %cst_247 = arith.constant dense<0.000000e+00> : vector<16x512xf32>
    %487 = tpu.matmul %485, %486, %cst_247 {dimension_numbers = #tpu.dot_dimension_numbers<[1], [0], [0], [1], [0, 0, 1, 1], [], []>} : vector<16x256xbf16>, vector<256x512xbf16>, vector<16x512xf32> -> vector<16x512xf32>
    %488 = arith.addf %487, %5 : vector<16x512xf32>
    %489 = vector.extract_strided_slice %488 {offsets = [0, 0], sizes = [16, 128], strides = [1, 1]} : vector<16x512xf32> to vector<16x128xf32>
    %cst_248 = arith.constant 5.000000e-01 : f32
    %490 = vector.broadcast %cst_248 : f32 to vector<16x128xf32>
    %491 = arith.mulf %490, %489 : vector<16x128xf32>
    %492 = math.tanh %491 : vector<16x128xf32>
    %cst_249 = arith.constant 5.000000e-01 : f32
    %493 = vector.broadcast %cst_249 : f32 to vector<16x128xf32>
    %494 = arith.mulf %493, %492 : vector<16x128xf32>
    %cst_250 = arith.constant 5.000000e-01 : f32
    %495 = vector.broadcast %cst_250 : f32 to vector<16x128xf32>
    %496 = arith.addf %494, %495 : vector<16x128xf32>
    %497 = vector.extract_strided_slice %488 {offsets = [0, 128], sizes = [16, 128], strides = [1, 1]} : vector<16x512xf32> to vector<16x128xf32>
    %cst_251 = arith.constant 5.000000e-01 : f32
    %498 = vector.broadcast %cst_251 : f32 to vector<16x128xf32>
    %499 = arith.mulf %498, %497 : vector<16x128xf32>
    %500 = math.tanh %499 : vector<16x128xf32>
    %cst_252 = arith.constant 5.000000e-01 : f32
    %501 = vector.broadcast %cst_252 : f32 to vector<16x128xf32>
    %502 = arith.mulf %501, %500 : vector<16x128xf32>
    %cst_253 = arith.constant 5.000000e-01 : f32
    %503 = vector.broadcast %cst_253 : f32 to vector<16x128xf32>
    %504 = arith.addf %502, %503 : vector<16x128xf32>
    %505 = vector.extract_strided_slice %488 {offsets = [0, 256], sizes = [16, 128], strides = [1, 1]} : vector<16x512xf32> to vector<16x128xf32>
    %506 = math.tanh %505 : vector<16x128xf32>
    %507 = vector.extract_strided_slice %488 {offsets = [0, 384], sizes = [16, 128], strides = [1, 1]} : vector<16x512xf32> to vector<16x128xf32>
    %cst_254 = arith.constant 5.000000e-01 : f32
    %508 = vector.broadcast %cst_254 : f32 to vector<16x128xf32>
    %509 = arith.mulf %508, %507 : vector<16x128xf32>
    %510 = math.tanh %509 : vector<16x128xf32>
    %cst_255 = arith.constant 5.000000e-01 : f32
    %511 = vector.broadcast %cst_255 : f32 to vector<16x128xf32>
    %512 = arith.mulf %511, %510 : vector<16x128xf32>
    %cst_256 = arith.constant 5.000000e-01 : f32
    %513 = vector.broadcast %cst_256 : f32 to vector<16x128xf32>
    %514 = arith.addf %512, %513 : vector<16x128xf32>
    %c0_257 = arith.constant 0 : index
    %c0_258 = arith.constant 0 : index
    %515 = vector.load %arg9[%c0_257, %c0_258] : memref<16x128xf32, #tpu.memory_space<vmem>>, vector<16x128xf32>
    %516 = arith.mulf %504, %515 : vector<16x128xf32>
    %517 = arith.mulf %496, %506 : vector<16x128xf32>
    %518 = arith.addf %516, %517 : vector<16x128xf32>
    %c0_259 = arith.constant 0 : index
    %c0_260 = arith.constant 0 : index
    %519 = vector.load %arg9[%c0_259, %c0_260] : memref<16x128xf32, #tpu.memory_space<vmem>>, vector<16x128xf32>
    tpu.vector_store %arg9[%c0_259, %c0_260], %518 {strides = array<i32>} : memref<16x128xf32, #tpu.memory_space<vmem>>, vector<16x128xf32>,
    %520 = math.tanh %518 : vector<16x128xf32>
    %521 = arith.mulf %514, %520 : vector<16x128xf32>
    %c0_261 = arith.constant 0 : index
    %c128_262 = arith.constant 128 : index
    %522 = vector.load %arg7[%c0_261, %c128_262] : memref<16x256xf32, #tpu.memory_space<vmem>>, vector<16x128xf32>
    tpu.vector_store %arg7[%c0_261, %c128_262], %521 {strides = array<i32>} : memref<16x256xf32, #tpu.memory_space<vmem>>, vector<16x128xf32>,
    %523 = arith.truncf %521 : vector<16x128xf32> to vector<16x128xbf16>
    %524 = arith.index_cast %c5_i32 : i32 to index
    %c0_263 = arith.constant 0 : index
    %c0_264 = arith.constant 0 : index
    %525 = vector.load %arg6[%524, %c0_263, %c0_264] : memref<8x16x128xbf16, #tpu.memory_space<vmem>>, vector<1x16x128xbf16>
    %526 = vector.shape_cast %525 : vector<1x16x128xbf16> to vector<16x128xbf16>
    %527 = vector.shape_cast %523 : vector<16x128xbf16> to vector<1x16x128xbf16>
    tpu.vector_store %arg6[%524, %c0_263, %c0_264], %527 {strides = array<i32>} : memref<8x16x128xbf16, #tpu.memory_space<vmem>>, vector<1x16x128xbf16>,
    %c6_i32 = arith.constant 6 : i32
    %528 = arith.index_cast %c6_i32 : i32 to index
    %c0_265 = arith.constant 0 : index
    %c0_266 = arith.constant 0 : index
    %529 = vector.load %arg2[%528, %c0_265, %c0_266] : memref<8x16x512xbf16, #tpu.memory_space<vmem>>, vector<1x16x512xbf16>
    %530 = vector.shape_cast %529 : vector<1x16x512xbf16> to vector<16x512xbf16>
    %531 = arith.extf %530 : vector<16x512xbf16> to vector<16x512xf32>
    %c0_267 = arith.constant 0 : index
    %c0_268 = arith.constant 0 : index
    %532 = vector.load %arg7[%c0_267, %c0_268] : memref<16x256xf32, #tpu.memory_space<vmem>>, vector<16x128xf32>
    %533 = arith.truncf %532 : vector<16x128xf32> to vector<16x128xbf16>
    %c0_269 = arith.constant 0 : index
    %c0_270 = arith.constant 0 : index
    %534 = vector.load %arg3[%c0_269, %c0_270] : memref<128x512xbf16, #tpu.memory_space<vmem>>, vector<128x512xbf16>
    %cst_271 = arith.constant dense<0.000000e+00> : vector<16x512xf32>
    %535 = tpu.matmul %533, %534, %cst_271 {dimension_numbers = #tpu.dot_dimension_numbers<[1], [0], [0], [1], [0, 0, 1, 1], [], []>} : vector<16x128xbf16>, vector<128x512xbf16>, vector<16x512xf32> -> vector<16x512xf32>
    %536 = arith.addf %531, %535 : vector<16x512xf32>
    %537 = vector.extract_strided_slice %536 {offsets = [0, 0], sizes = [16, 128], strides = [1, 1]} : vector<16x512xf32> to vector<16x128xf32>
    %cst_272 = arith.constant 5.000000e-01 : f32
    %538 = vector.broadcast %cst_272 : f32 to vector<16x128xf32>
    %539 = arith.mulf %538, %537 : vector<16x128xf32>
    %540 = math.tanh %539 : vector<16x128xf32>
    %cst_273 = arith.constant 5.000000e-01 : f32
    %541 = vector.broadcast %cst_273 : f32 to vector<16x128xf32>
    %542 = arith.mulf %541, %540 : vector<16x128xf32>
    %cst_274 = arith.constant 5.000000e-01 : f32
    %543 = vector.broadcast %cst_274 : f32 to vector<16x128xf32>
    %544 = arith.addf %542, %543 : vector<16x128xf32>
    %545 = vector.extract_strided_slice %536 {offsets = [0, 128], sizes = [16, 128], strides = [1, 1]} : vector<16x512xf32> to vector<16x128xf32>
    %cst_275 = arith.constant 5.000000e-01 : f32
    %546 = vector.broadcast %cst_275 : f32 to vector<16x128xf32>
    %547 = arith.mulf %546, %545 : vector<16x128xf32>
    %548 = math.tanh %547 : vector<16x128xf32>
    %cst_276 = arith.constant 5.000000e-01 : f32
    %549 = vector.broadcast %cst_276 : f32 to vector<16x128xf32>
    %550 = arith.mulf %549, %548 : vector<16x128xf32>
    %cst_277 = arith.constant 5.000000e-01 : f32
    %551 = vector.broadcast %cst_277 : f32 to vector<16x128xf32>
    %552 = arith.addf %550, %551 : vector<16x128xf32>
    %553 = vector.extract_strided_slice %536 {offsets = [0, 256], sizes = [16, 128], strides = [1, 1]} : vector<16x512xf32> to vector<16x128xf32>
    %554 = math.tanh %553 : vector<16x128xf32>
    %555 = vector.extract_strided_slice %536 {offsets = [0, 384], sizes = [16, 128], strides = [1, 1]} : vector<16x512xf32> to vector<16x128xf32>
    %cst_278 = arith.constant 5.000000e-01 : f32
    %556 = vector.broadcast %cst_278 : f32 to vector<16x128xf32>
    %557 = arith.mulf %556, %555 : vector<16x128xf32>
    %558 = math.tanh %557 : vector<16x128xf32>
    %cst_279 = arith.constant 5.000000e-01 : f32
    %559 = vector.broadcast %cst_279 : f32 to vector<16x128xf32>
    %560 = arith.mulf %559, %558 : vector<16x128xf32>
    %cst_280 = arith.constant 5.000000e-01 : f32
    %561 = vector.broadcast %cst_280 : f32 to vector<16x128xf32>
    %562 = arith.addf %560, %561 : vector<16x128xf32>
    %c0_281 = arith.constant 0 : index
    %c0_282 = arith.constant 0 : index
    %563 = vector.load %arg8[%c0_281, %c0_282] : memref<16x128xf32, #tpu.memory_space<vmem>>, vector<16x128xf32>
    %564 = arith.mulf %552, %563 : vector<16x128xf32>
    %565 = arith.mulf %544, %554 : vector<16x128xf32>
    %566 = arith.addf %564, %565 : vector<16x128xf32>
    %c0_283 = arith.constant 0 : index
    %c0_284 = arith.constant 0 : index
    %567 = vector.load %arg8[%c0_283, %c0_284] : memref<16x128xf32, #tpu.memory_space<vmem>>, vector<16x128xf32>
    tpu.vector_store %arg8[%c0_283, %c0_284], %566 {strides = array<i32>} : memref<16x128xf32, #tpu.memory_space<vmem>>, vector<16x128xf32>,
    %568 = math.tanh %566 : vector<16x128xf32>
    %569 = arith.mulf %562, %568 : vector<16x128xf32>
    %c0_285 = arith.constant 0 : index
    %c0_286 = arith.constant 0 : index
    %570 = vector.load %arg7[%c0_285, %c0_286] : memref<16x256xf32, #tpu.memory_space<vmem>>, vector<16x128xf32>
    tpu.vector_store %arg7[%c0_285, %c0_286], %569 {strides = array<i32>} : memref<16x256xf32, #tpu.memory_space<vmem>>, vector<16x128xf32>,
    %c0_287 = arith.constant 0 : index
    %c0_288 = arith.constant 0 : index
    %571 = vector.load %arg7[%c0_287, %c0_288] : memref<16x256xf32, #tpu.memory_space<vmem>>, vector<16x256xf32>
    %572 = arith.truncf %571 : vector<16x256xf32> to vector<16x256xbf16>
    %c0_289 = arith.constant 0 : index
    %c0_290 = arith.constant 0 : index
    %573 = vector.load %arg4[%c0_289, %c0_290] : memref<256x512xbf16, #tpu.memory_space<vmem>>, vector<256x512xbf16>
    %cst_291 = arith.constant dense<0.000000e+00> : vector<16x512xf32>
    %574 = tpu.matmul %572, %573, %cst_291 {dimension_numbers = #tpu.dot_dimension_numbers<[1], [0], [0], [1], [0, 0, 1, 1], [], []>} : vector<16x256xbf16>, vector<256x512xbf16>, vector<16x512xf32> -> vector<16x512xf32>
    %575 = arith.addf %574, %5 : vector<16x512xf32>
    %576 = vector.extract_strided_slice %575 {offsets = [0, 0], sizes = [16, 128], strides = [1, 1]} : vector<16x512xf32> to vector<16x128xf32>
    %cst_292 = arith.constant 5.000000e-01 : f32
    %577 = vector.broadcast %cst_292 : f32 to vector<16x128xf32>
    %578 = arith.mulf %577, %576 : vector<16x128xf32>
    %579 = math.tanh %578 : vector<16x128xf32>
    %cst_293 = arith.constant 5.000000e-01 : f32
    %580 = vector.broadcast %cst_293 : f32 to vector<16x128xf32>
    %581 = arith.mulf %580, %579 : vector<16x128xf32>
    %cst_294 = arith.constant 5.000000e-01 : f32
    %582 = vector.broadcast %cst_294 : f32 to vector<16x128xf32>
    %583 = arith.addf %581, %582 : vector<16x128xf32>
    %584 = vector.extract_strided_slice %575 {offsets = [0, 128], sizes = [16, 128], strides = [1, 1]} : vector<16x512xf32> to vector<16x128xf32>
    %cst_295 = arith.constant 5.000000e-01 : f32
    %585 = vector.broadcast %cst_295 : f32 to vector<16x128xf32>
    %586 = arith.mulf %585, %584 : vector<16x128xf32>
    %587 = math.tanh %586 : vector<16x128xf32>
    %cst_296 = arith.constant 5.000000e-01 : f32
    %588 = vector.broadcast %cst_296 : f32 to vector<16x128xf32>
    %589 = arith.mulf %588, %587 : vector<16x128xf32>
    %cst_297 = arith.constant 5.000000e-01 : f32
    %590 = vector.broadcast %cst_297 : f32 to vector<16x128xf32>
    %591 = arith.addf %589, %590 : vector<16x128xf32>
    %592 = vector.extract_strided_slice %575 {offsets = [0, 256], sizes = [16, 128], strides = [1, 1]} : vector<16x512xf32> to vector<16x128xf32>
    %593 = math.tanh %592 : vector<16x128xf32>
    %594 = vector.extract_strided_slice %575 {offsets = [0, 384], sizes = [16, 128], strides = [1, 1]} : vector<16x512xf32> to vector<16x128xf32>
    %cst_298 = arith.constant 5.000000e-01 : f32
    %595 = vector.broadcast %cst_298 : f32 to vector<16x128xf32>
    %596 = arith.mulf %595, %594 : vector<16x128xf32>
    %597 = math.tanh %596 : vector<16x128xf32>
    %cst_299 = arith.constant 5.000000e-01 : f32
    %598 = vector.broadcast %cst_299 : f32 to vector<16x128xf32>
    %599 = arith.mulf %598, %597 : vector<16x128xf32>
    %cst_300 = arith.constant 5.000000e-01 : f32
    %600 = vector.broadcast %cst_300 : f32 to vector<16x128xf32>
    %601 = arith.addf %599, %600 : vector<16x128xf32>
    %c0_301 = arith.constant 0 : index
    %c0_302 = arith.constant 0 : index
    %602 = vector.load %arg9[%c0_301, %c0_302] : memref<16x128xf32, #tpu.memory_space<vmem>>, vector<16x128xf32>
    %603 = arith.mulf %591, %602 : vector<16x128xf32>
    %604 = arith.mulf %583, %593 : vector<16x128xf32>
    %605 = arith.addf %603, %604 : vector<16x128xf32>
    %c0_303 = arith.constant 0 : index
    %c0_304 = arith.constant 0 : index
    %606 = vector.load %arg9[%c0_303, %c0_304] : memref<16x128xf32, #tpu.memory_space<vmem>>, vector<16x128xf32>
    tpu.vector_store %arg9[%c0_303, %c0_304], %605 {strides = array<i32>} : memref<16x128xf32, #tpu.memory_space<vmem>>, vector<16x128xf32>,
    %607 = math.tanh %605 : vector<16x128xf32>
    %608 = arith.mulf %601, %607 : vector<16x128xf32>
    %c0_305 = arith.constant 0 : index
    %c128_306 = arith.constant 128 : index
    %609 = vector.load %arg7[%c0_305, %c128_306] : memref<16x256xf32, #tpu.memory_space<vmem>>, vector<16x128xf32>
    tpu.vector_store %arg7[%c0_305, %c128_306], %608 {strides = array<i32>} : memref<16x256xf32, #tpu.memory_space<vmem>>, vector<16x128xf32>,
    %610 = arith.truncf %608 : vector<16x128xf32> to vector<16x128xbf16>
    %611 = arith.index_cast %c6_i32 : i32 to index
    %c0_307 = arith.constant 0 : index
    %c0_308 = arith.constant 0 : index
    %612 = vector.load %arg6[%611, %c0_307, %c0_308] : memref<8x16x128xbf16, #tpu.memory_space<vmem>>, vector<1x16x128xbf16>
    %613 = vector.shape_cast %612 : vector<1x16x128xbf16> to vector<16x128xbf16>
    %614 = vector.shape_cast %610 : vector<16x128xbf16> to vector<1x16x128xbf16>
    tpu.vector_store %arg6[%611, %c0_307, %c0_308], %614 {strides = array<i32>} : memref<8x16x128xbf16, #tpu.memory_space<vmem>>, vector<1x16x128xbf16>,
    %c7_i32 = arith.constant 7 : i32
    %615 = arith.index_cast %c7_i32 : i32 to index
    %c0_309 = arith.constant 0 : index
    %c0_310 = arith.constant 0 : index
    %616 = vector.load %arg2[%615, %c0_309, %c0_310] : memref<8x16x512xbf16, #tpu.memory_space<vmem>>, vector<1x16x512xbf16>
    %617 = vector.shape_cast %616 : vector<1x16x512xbf16> to vector<16x512xbf16>
    %618 = arith.extf %617 : vector<16x512xbf16> to vector<16x512xf32>
    %c0_311 = arith.constant 0 : index
    %c0_312 = arith.constant 0 : index
    %619 = vector.load %arg7[%c0_311, %c0_312] : memref<16x256xf32, #tpu.memory_space<vmem>>, vector<16x128xf32>
    %620 = arith.truncf %619 : vector<16x128xf32> to vector<16x128xbf16>
    %c0_313 = arith.constant 0 : index
    %c0_314 = arith.constant 0 : index
    %621 = vector.load %arg3[%c0_313, %c0_314] : memref<128x512xbf16, #tpu.memory_space<vmem>>, vector<128x512xbf16>
    %cst_315 = arith.constant dense<0.000000e+00> : vector<16x512xf32>
    %622 = tpu.matmul %620, %621, %cst_315 {dimension_numbers = #tpu.dot_dimension_numbers<[1], [0], [0], [1], [0, 0, 1, 1], [], []>} : vector<16x128xbf16>, vector<128x512xbf16>, vector<16x512xf32> -> vector<16x512xf32>
    %623 = arith.addf %618, %622 : vector<16x512xf32>
    %624 = vector.extract_strided_slice %623 {offsets = [0, 0], sizes = [16, 128], strides = [1, 1]} : vector<16x512xf32> to vector<16x128xf32>
    %cst_316 = arith.constant 5.000000e-01 : f32
    %625 = vector.broadcast %cst_316 : f32 to vector<16x128xf32>
    %626 = arith.mulf %625, %624 : vector<16x128xf32>
    %627 = math.tanh %626 : vector<16x128xf32>
    %cst_317 = arith.constant 5.000000e-01 : f32
    %628 = vector.broadcast %cst_317 : f32 to vector<16x128xf32>
    %629 = arith.mulf %628, %627 : vector<16x128xf32>
    %cst_318 = arith.constant 5.000000e-01 : f32
    %630 = vector.broadcast %cst_318 : f32 to vector<16x128xf32>
    %631 = arith.addf %629, %630 : vector<16x128xf32>
    %632 = vector.extract_strided_slice %623 {offsets = [0, 128], sizes = [16, 128], strides = [1, 1]} : vector<16x512xf32> to vector<16x128xf32>
    %cst_319 = arith.constant 5.000000e-01 : f32
    %633 = vector.broadcast %cst_319 : f32 to vector<16x128xf32>
    %634 = arith.mulf %633, %632 : vector<16x128xf32>
    %635 = math.tanh %634 : vector<16x128xf32>
    %cst_320 = arith.constant 5.000000e-01 : f32
    %636 = vector.broadcast %cst_320 : f32 to vector<16x128xf32>
    %637 = arith.mulf %636, %635 : vector<16x128xf32>
    %cst_321 = arith.constant 5.000000e-01 : f32
    %638 = vector.broadcast %cst_321 : f32 to vector<16x128xf32>
    %639 = arith.addf %637, %638 : vector<16x128xf32>
    %640 = vector.extract_strided_slice %623 {offsets = [0, 256], sizes = [16, 128], strides = [1, 1]} : vector<16x512xf32> to vector<16x128xf32>
    %641 = math.tanh %640 : vector<16x128xf32>
    %642 = vector.extract_strided_slice %623 {offsets = [0, 384], sizes = [16, 128], strides = [1, 1]} : vector<16x512xf32> to vector<16x128xf32>
    %cst_322 = arith.constant 5.000000e-01 : f32
    %643 = vector.broadcast %cst_322 : f32 to vector<16x128xf32>
    %644 = arith.mulf %643, %642 : vector<16x128xf32>
    %645 = math.tanh %644 : vector<16x128xf32>
    %cst_323 = arith.constant 5.000000e-01 : f32
    %646 = vector.broadcast %cst_323 : f32 to vector<16x128xf32>
    %647 = arith.mulf %646, %645 : vector<16x128xf32>
    %cst_324 = arith.constant 5.000000e-01 : f32
    %648 = vector.broadcast %cst_324 : f32 to vector<16x128xf32>
    %649 = arith.addf %647, %648 : vector<16x128xf32>
    %c0_325 = arith.constant 0 : index
    %c0_326 = arith.constant 0 : index
    %650 = vector.load %arg8[%c0_325, %c0_326] : memref<16x128xf32, #tpu.memory_space<vmem>>, vector<16x128xf32>
    %651 = arith.mulf %639, %650 : vector<16x128xf32>
    %652 = arith.mulf %631, %641 : vector<16x128xf32>
    %653 = arith.addf %651, %652 : vector<16x128xf32>
    %c0_327 = arith.constant 0 : index
    %c0_328 = arith.constant 0 : index
    %654 = vector.load %arg8[%c0_327, %c0_328] : memref<16x128xf32, #tpu.memory_space<vmem>>, vector<16x128xf32>
    tpu.vector_store %arg8[%c0_327, %c0_328], %653 {strides = array<i32>} : memref<16x128xf32, #tpu.memory_space<vmem>>, vector<16x128xf32>,
    %655 = math.tanh %653 : vector<16x128xf32>
    %656 = arith.mulf %649, %655 : vector<16x128xf32>
    %c0_329 = arith.constant 0 : index
    %c0_330 = arith.constant 0 : index
    %657 = vector.load %arg7[%c0_329, %c0_330] : memref<16x256xf32, #tpu.memory_space<vmem>>, vector<16x128xf32>
    tpu.vector_store %arg7[%c0_329, %c0_330], %656 {strides = array<i32>} : memref<16x256xf32, #tpu.memory_space<vmem>>, vector<16x128xf32>,
    %c0_331 = arith.constant 0 : index
    %c0_332 = arith.constant 0 : index
    %658 = vector.load %arg7[%c0_331, %c0_332] : memref<16x256xf32, #tpu.memory_space<vmem>>, vector<16x256xf32>
    %659 = arith.truncf %658 : vector<16x256xf32> to vector<16x256xbf16>
    %c0_333 = arith.constant 0 : index
    %c0_334 = arith.constant 0 : index
    %660 = vector.load %arg4[%c0_333, %c0_334] : memref<256x512xbf16, #tpu.memory_space<vmem>>, vector<256x512xbf16>
    %cst_335 = arith.constant dense<0.000000e+00> : vector<16x512xf32>
    %661 = tpu.matmul %659, %660, %cst_335 {dimension_numbers = #tpu.dot_dimension_numbers<[1], [0], [0], [1], [0, 0, 1, 1], [], []>} : vector<16x256xbf16>, vector<256x512xbf16>, vector<16x512xf32> -> vector<16x512xf32>
    %662 = arith.addf %661, %5 : vector<16x512xf32>
    %663 = vector.extract_strided_slice %662 {offsets = [0, 0], sizes = [16, 128], strides = [1, 1]} : vector<16x512xf32> to vector<16x128xf32>
    %cst_336 = arith.constant 5.000000e-01 : f32
    %664 = vector.broadcast %cst_336 : f32 to vector<16x128xf32>
    %665 = arith.mulf %664, %663 : vector<16x128xf32>
    %666 = math.tanh %665 : vector<16x128xf32>
    %cst_337 = arith.constant 5.000000e-01 : f32
    %667 = vector.broadcast %cst_337 : f32 to vector<16x128xf32>
    %668 = arith.mulf %667, %666 : vector<16x128xf32>
    %cst_338 = arith.constant 5.000000e-01 : f32
    %669 = vector.broadcast %cst_338 : f32 to vector<16x128xf32>
    %670 = arith.addf %668, %669 : vector<16x128xf32>
    %671 = vector.extract_strided_slice %662 {offsets = [0, 128], sizes = [16, 128], strides = [1, 1]} : vector<16x512xf32> to vector<16x128xf32>
    %cst_339 = arith.constant 5.000000e-01 : f32
    %672 = vector.broadcast %cst_339 : f32 to vector<16x128xf32>
    %673 = arith.mulf %672, %671 : vector<16x128xf32>
    %674 = math.tanh %673 : vector<16x128xf32>
    %cst_340 = arith.constant 5.000000e-01 : f32
    %675 = vector.broadcast %cst_340 : f32 to vector<16x128xf32>
    %676 = arith.mulf %675, %674 : vector<16x128xf32>
    %cst_341 = arith.constant 5.000000e-01 : f32
    %677 = vector.broadcast %cst_341 : f32 to vector<16x128xf32>
    %678 = arith.addf %676, %677 : vector<16x128xf32>
    %679 = vector.extract_strided_slice %662 {offsets = [0, 256], sizes = [16, 128], strides = [1, 1]} : vector<16x512xf32> to vector<16x128xf32>
    %680 = math.tanh %679 : vector<16x128xf32>
    %681 = vector.extract_strided_slice %662 {offsets = [0, 384], sizes = [16, 128], strides = [1, 1]} : vector<16x512xf32> to vector<16x128xf32>
    %cst_342 = arith.constant 5.000000e-01 : f32
    %682 = vector.broadcast %cst_342 : f32 to vector<16x128xf32>
    %683 = arith.mulf %682, %681 : vector<16x128xf32>
    %684 = math.tanh %683 : vector<16x128xf32>
    %cst_343 = arith.constant 5.000000e-01 : f32
    %685 = vector.broadcast %cst_343 : f32 to vector<16x128xf32>
    %686 = arith.mulf %685, %684 : vector<16x128xf32>
    %cst_344 = arith.constant 5.000000e-01 : f32
    %687 = vector.broadcast %cst_344 : f32 to vector<16x128xf32>
    %688 = arith.addf %686, %687 : vector<16x128xf32>
    %c0_345 = arith.constant 0 : index
    %c0_346 = arith.constant 0 : index
    %689 = vector.load %arg9[%c0_345, %c0_346] : memref<16x128xf32, #tpu.memory_space<vmem>>, vector<16x128xf32>
    %690 = arith.mulf %678, %689 : vector<16x128xf32>
    %691 = arith.mulf %670, %680 : vector<16x128xf32>
    %692 = arith.addf %690, %691 : vector<16x128xf32>
    %c0_347 = arith.constant 0 : index
    %c0_348 = arith.constant 0 : index
    %693 = vector.load %arg9[%c0_347, %c0_348] : memref<16x128xf32, #tpu.memory_space<vmem>>, vector<16x128xf32>
    tpu.vector_store %arg9[%c0_347, %c0_348], %692 {strides = array<i32>} : memref<16x128xf32, #tpu.memory_space<vmem>>, vector<16x128xf32>,
    %694 = math.tanh %692 : vector<16x128xf32>
    %695 = arith.mulf %688, %694 : vector<16x128xf32>
    %c0_349 = arith.constant 0 : index
    %c128_350 = arith.constant 128 : index
    %696 = vector.load %arg7[%c0_349, %c128_350] : memref<16x256xf32, #tpu.memory_space<vmem>>, vector<16x128xf32>
    tpu.vector_store %arg7[%c0_349, %c128_350], %695 {strides = array<i32>} : memref<16x256xf32, #tpu.memory_space<vmem>>, vector<16x128xf32>,
    %697 = arith.truncf %695 : vector<16x128xf32> to vector<16x128xbf16>
    %698 = arith.index_cast %c7_i32 : i32 to index
    %c0_351 = arith.constant 0 : index
    %c0_352 = arith.constant 0 : index
    %699 = vector.load %arg6[%698, %c0_351, %c0_352] : memref<8x16x128xbf16, #tpu.memory_space<vmem>>, vector<1x16x128xbf16>
    %700 = vector.shape_cast %699 : vector<1x16x128xbf16> to vector<16x128xbf16>
    %701 = vector.shape_cast %697 : vector<16x128xbf16> to vector<1x16x128xbf16>
    tpu.vector_store %arg6[%698, %c0_351, %c0_352], %701 {strides = array<i32>} : memref<8x16x128xbf16, #tpu.memory_space<vmem>>, vector<1x16x128xbf16>,
    %c8_i32 = arith.constant 8 : i32
    return
  }
  func.func @transform_0(%arg0: i32, %arg1: i32) -> (i32, i32, i32) {
    %c0_i32 = arith.constant 0 : i32
    %c0_i32_0 = arith.constant 0 : i32
    return %arg1, %arg0, %c0_i32 : i32, i32, i32
  }
  func.func @transform_1(%arg0: i32, %arg1: i32) -> (i32, i32) {
    %c0_i32 = arith.constant 0 : i32
    %c0_i32_0 = arith.constant 0 : i32
    %c0_i32_1 = arith.constant 0 : i32
    return %c0_i32, %c0_i32_0 : i32, i32
  }
  func.func @transform_2(%arg0: i32, %arg1: i32) -> (i32, i32) {
    %c0_i32 = arith.constant 0 : i32
    %c0_i32_0 = arith.constant 0 : i32
    %c0_i32_1 = arith.constant 0 : i32
    return %c0_i32, %c0_i32_0 : i32, i32
  }
  func.func @transform_3(%arg0: i32, %arg1: i32) -> (i32, i32) {
    %c0_i32 = arith.constant 0 : i32
    %c0_i32_0 = arith.constant 0 : i32
    %c0_i32_1 = arith.constant 0 : i32
    return %c0_i32, %c0_i32_0 : i32, i32
  }
  func.func @transform_4(%arg0: i32, %arg1: i32) -> (i32, i32, i32) {
    %c0_i32 = arith.constant 0 : i32
    %c0_i32_0 = arith.constant 0 : i32
    return %arg1, %arg0, %c0_i32 : i32, i32, i32
  }
}

</mosaic_0001>

<bundles_post_ra>
// kernel: lstm_forward.1
= control target key start
LH: loop header
LB: loop body
LE: loop exit
PB: predicated region body
PF: predicated region fallthrough
CT: control target
= control target key end

     0   :  { %v11892_v1 = vmov 0   ;;  %v8881_v37 = vmov 0.0|0.0   ;;  %s11887_s1 = inlined_call_operand.vmem [shape: bf16[128,512], index: 1, kind: input, shape index: {}]   ;;  %s11888_s2 = inlined_call_operand.vmem [shape: bf16[256,512], index: 2, kind: input, shape index: {}]   ;;  %s11889_s0 = inlined_call_operand.vmem [shape: bf16[8,16,512], index: 0, kind: input, shape index: {}]   ;;  %s11890_s3 = inlined_call_operand.vmem [shape: f32[1,512], index: 3, kind: input, shape index: {}]   ;;  %s11891_s4 = inlined_call_operand.vmem [shape: bf16[8,16,128], index: 4, kind: output, shape index: {}]  }
   0x1   :  { %v7929_v0 = vld [vmem:[%s11887_s1 + $0x4] ss:$16 sps:$4 sm:$0xff]   ;;  %291 = vmatprep.mubr.bf16.mxu0 %v11892_v1  ;;  %334 = vmatprep.mubr.bf16.mxu1 %v11892_v1  ;;  %v7931_v2 = vld [vmem:[%s11887_s1] ss:$16 sps:$4 sm:$0xff]   ;;  %v7934_v4 = vld [vmem:[%s11887_s1 + $0xc] ss:$16 sps:$4 sm:$0xff]  }
   0x2   :  { %259 = vmatprep.subr.bf16.mxu0 %v7929_v0  ;;  %v7932_v3 = vld [vmem:[%s11887_s1 + $0x24] ss:$16 sps:$4 sm:$0xff]   ;;  %v7936_v5 = vld [vmem:[%s11887_s1 + $0x20] ss:$16 sps:$4 sm:$0xff]   ;;  %v7937_v6 = vld [vmem:[%s11887_s1 + $0x8] ss:$16 sps:$4 sm:$0xff]   ;;  %302 = vmatprep.subr.bf16.mxu1 %v7934_v4 }
   0x3   :  { %260 = vmatpush1.bf16.msra.mxu0 %v7931_v2  ;;  %v7938_v7 = vld [vmem:[%s11887_s1 + $0x44] ss:$16 sps:$4 sm:$0xff]   ;;  %v7940_v8 = vld [vmem:[%s11887_s1 + $0x2c] ss:$16 sps:$4 sm:$0xff]   ;;  %303 = vmatpush1.bf16.msra.mxu1 %v7937_v6  ;;  %v7943_v9 = vld [vmem:[%s11887_s1 + $0x28] ss:$16 sps:$4 sm:$0xff]  }
   0x4   :  { %261 = vmatprep.subr.bf16.mxu0 %v7932_v3  ;;  %304 = vmatprep.subr.bf16.mxu1 %v7940_v8  ;;  %v7942_v10 = vld [vmem:[%s11887_s1 + $0x40] ss:$16 sps:$4 sm:$0xff]   ;;  %v7944_v11 = vld [vmem:[%s11887_s1 + $0x64] ss:$16 sps:$4 sm:$0xff]   ;;  %v7946_v12 = vld [vmem:[%s11887_s1 + $0x4c] ss:$16 sps:$4 sm:$0xff]  }
   0x5   :  { %v7949_v13 = vld [vmem:[%s11887_s1 + $0x48] ss:$16 sps:$4 sm:$0xff]   ;;  %v7948_v14 = vld [vmem:[%s11887_s1 + $0x60] ss:$16 sps:$4 sm:$0xff]   ;;  %v7952_v15 = vld [vmem:[%s11887_s1 + $0x6c] ss:$16 sps:$4 sm:$0xff]  }
   0x6   :  { %v7950_v16 = vld [vmem:[%s11887_s1 + $0x84] ss:$16 sps:$4 sm:$0xff]   ;;  %v7954_v17 = vld [vmem:[%s11887_s1 + $0x80] ss:$16 sps:$4 sm:$0xff]   ;;  %v7955_v18 = vld [vmem:[%s11887_s1 + $0x68] ss:$16 sps:$4 sm:$0xff]  }
   0x7   :  { %262 = vmatpush1.bf16.msra.mxu0 %v7936_v5  ;;  %305 = vmatpush1.bf16.msra.mxu1 %v7943_v9  ;;  %v7958_v19 = vld [vmem:[%s11887_s1 + $0x8c] ss:$16 sps:$4 sm:$0xff]   ;;  %v7956_v20 = vld [vmem:[%s11887_s1 + $0xa4] ss:$16 sps:$4 sm:$0xff]   ;;  %v7961_v21 = vld [vmem:[%s11887_s1 + $0x88] ss:$16 sps:$4 sm:$0xff]  }
   0x8   :  { %263 = vmatprep.subr.bf16.mxu0 %v7938_v7  ;;  %306 = vmatprep.subr.bf16.mxu1 %v7946_v12  ;;  %v7960_v22 = vld [vmem:[%s11887_s1 + $0xa0] ss:$16 sps:$4 sm:$0xff]   ;;  %v7964_v23 = vld [vmem:[%s11887_s1 + $0xac] ss:$16 sps:$4 sm:$0xff]   ;;  %v7962_v24 = vld [vmem:[%s11887_s1 + $0xc4] ss:$16 sps:$4 sm:$0xff]  }
   0x9   :  { %v7967_v25 = vld [vmem:[%s11887_s1 + $0xa8] ss:$16 sps:$4 sm:$0xff]   ;;  %v7966_v26 = vld [vmem:[%s11887_s1 + $0xc0] ss:$16 sps:$4 sm:$0xff]   ;;  %v7970_v27 = vld [vmem:[%s11887_s1 + $0xcc] ss:$16 sps:$4 sm:$0xff]  }
   0xa   :  { %v7968_v28 = vld [vmem:[%s11887_s1 + $0xe4] ss:$16 sps:$4 sm:$0xff]   ;;  %v7973_v29 = vld [vmem:[%s11887_s1 + $0xc8] ss:$16 sps:$4 sm:$0xff]   ;;  %v7972_v30 = vld [vmem:[%s11887_s1 + $0xe0] ss:$16 sps:$4 sm:$0xff]  }
   0xb   :  { %264 = vmatpush1.bf16.msra.mxu0 %v7942_v10  ;;  %307 = vmatpush1.bf16.msra.mxu1 %v7949_v13  ;;  %v7974_v31 = vld [vmem:[%s11887_s1 + $0xec] ss:$16 sps:$4 sm:$0xff]   ;;  %v7979_v32 = vld [vmem:[%s11888_s2 + $0x4] ss:$16 sps:$4 sm:$0xff]   ;;  %v7976_v33 = vld [vmem:[%s11887_s1 + $0xe8] ss:$16 sps:$4 sm:$0xff]  }
   0xc   :  { %265 = vmatprep.subr.bf16.mxu0 %v7944_v11  ;;  %308 = vmatprep.subr.bf16.mxu1 %v7952_v15  ;;  %v7977_v34 = vld [vmem:[%s11888_s2] ss:$16 sps:$4 sm:$0xff]   ;;  %v7982_v35 = vld [vmem:[%s11888_s2 + $0xc] ss:$16 sps:$4 sm:$0xff]   ;;  %v7985_v36 = vld [vmem:[%s11888_s2 + $0x24] ss:$16 sps:$4 sm:$0xff]  }
   0xd   :  { %v7980_v38 = vld [vmem:[%s11888_s2 + $0x8] ss:$16 sps:$4 sm:$0xff]   ;;  %v7983_v39 = vld [vmem:[%s11888_s2 + $0x20] ss:$16 sps:$4 sm:$0xff]   ;;  %v7988_v40 = vld [vmem:[%s11888_s2 + $0x2c] ss:$16 sps:$4 sm:$0xff]  }
   0xe   :  { %v7986_v41 = vld [vmem:[%s11888_s2 + $0x28] ss:$16 sps:$4 sm:$0xff]   ;;  %v7991_v42 = vld [vmem:[%s11888_s2 + $0x44] ss:$16 sps:$4 sm:$0xff]   ;;  %v7989_v43 = vld [vmem:[%s11888_s2 + $0x40] ss:$16 sps:$4 sm:$0xff]  }
   0xf   :  { %266 = vmatpush1.bf16.msra.mxu0 %v7948_v14  ;;  %309 = vmatpush1.bf16.msra.mxu1 %v7955_v18  ;;  %v7994_v44 = vld [vmem:[%s11888_s2 + $0x4c] ss:$16 sps:$4 sm:$0xff]   ;;  %v7997_v45 = vld [vmem:[%s11888_s2 + $0x64] ss:$16 sps:$4 sm:$0xff]   ;;  %v7992_v46 = vld [vmem:[%s11888_s2 + $0x48] ss:$16 sps:$4 sm:$0xff]  }
  0x10   :  { %267 = vmatprep.subr.bf16.mxu0 %v7950_v16  ;;  %310 = vmatprep.subr.bf16.mxu1 %v7958_v19  ;;  %v7995_v47 = vld [vmem:[%s11888_s2 + $0x60] ss:$16 sps:$4 sm:$0xff]   ;;  %v8000_v48 = vld [vmem:[%s11888_s2 + $0x6c] ss:$16 sps:$4 sm:$0xff]   ;;  %v8003_v49 = vld [vmem:[%s11888_s2 + $0x84] ss:$16 sps:$4 sm:$0xff]  }
  0x11   :  { %v7998_v50 = vld [vmem:[%s11888_s2 + $0x68] ss:$16 sps:$4 sm:$0xff]   ;;  %v8001_v51 = vld [vmem:[%s11888_s2 + $0x80] ss:$16 sps:$4 sm:$0xff]   ;;  %v8006_v52 = vld [vmem:[%s11888_s2 + $0x8c] ss:$16 sps:$4 sm:$0xff]  }
  0x12   :  { %v8009_v53 = vld [vmem:[%s11888_s2 + $0xa4] ss:$16 sps:$4 sm:$0xff]   ;;  %v8004_v54 = vld [vmem:[%s11888_s2 + $0x88] ss:$16 sps:$4 sm:$0xff]   ;;  %v8007_v55 = vld [vmem:[%s11888_s2 + $0xa0] ss:$16 sps:$4 sm:$0xff]  }
  0x13   :  { %268 = vmatpush1.bf16.msra.mxu0 %v7954_v17  ;;  %311 = vmatpush1.bf16.msra.mxu1 %v7961_v21  ;;  %v8012_v56 = vld [vmem:[%s11888_s2 + $0xac] ss:$16 sps:$4 sm:$0xff]   ;;  %v9077_v57 = vld [vmem:[%s11888_s2 + $0xa8] ss:$16 sps:$4 sm:$0xff]   ;;  %v9083_v58 = vld [vmem:[%s11888_s2 + $0xc4] ss:$16 sps:$4 sm:$0xff]  }
  0x14   :  { %269 = vmatprep.subr.bf16.mxu0 %v7956_v20  ;;  %312 = vmatprep.subr.bf16.mxu1 %v7964_v23  ;;  %v9088_v59 = vld [vmem:[%s11888_s2 + $0xcc] ss:$16 sps:$4 sm:$0xff]   ;;  %v9093_v60 = vld [vmem:[%s11888_s2 + $0xc0] ss:$16 sps:$4 sm:$0xff]   ;;  %v9098_v61 = vld [vmem:[%s11888_s2 + $0xc8] ss:$16 sps:$4 sm:$0xff]  }
  0x15   :  { %v9107_v62 = vld [vmem:[%s11888_s2 + $0xe4] ss:$16 sps:$4 sm:$0xff]   ;;  %v9112_v63 = vld [vmem:[%s11888_s2 + $0xec] ss:$16 sps:$4 sm:$0xff]   ;;  %v9117_v0 = vld [vmem:[%s11888_s2 + $0xe0] ss:$16 sps:$4 sm:$0xff]  }
  0x16   :  { %v9122_v2 = vld [vmem:[%s11888_s2 + $0xe8] ss:$16 sps:$4 sm:$0xff]   ;;  %v9131_v3 = vld [vmem:[%s11888_s2 + $0x104] ss:$16 sps:$4 sm:$0xff]   ;;  %v9136_v4 = vld [vmem:[%s11888_s2 + $0x10c] ss:$16 sps:$4 sm:$0xff]  }
  0x17   :  { %270 = vmatpush1.bf16.msra.mxu0 %v7960_v22  ;;  %313 = vmatpush1.bf16.msra.mxu1 %v7967_v25  ;;  %v9141_v5 = vld [vmem:[%s11888_s2 + $0x100] ss:$16 sps:$4 sm:$0xff]   ;;  %v9146_v6 = vld [vmem:[%s11888_s2 + $0x108] ss:$16 sps:$4 sm:$0xff]   ;;  %v9155_v7 = vld [vmem:[%s11888_s2 + $0x124] ss:$16 sps:$4 sm:$0xff]  }
  0x18   :  { %271 = vmatprep.subr.bf16.mxu0 %v7962_v24  ;;  %314 = vmatprep.subr.bf16.mxu1 %v7970_v27  ;;  %v9160_v8 = vld [vmem:[%s11888_s2 + $0x12c] ss:$16 sps:$4 sm:$0xff]   ;;  %v9165_v9 = vld [vmem:[%s11888_s2 + $0x120] ss:$16 sps:$4 sm:$0xff]   ;;  %v9170_v10 = vld [vmem:[%s11888_s2 + $0x128] ss:$16 sps:$4 sm:$0xff]  }
  0x19   :  { %v9179_v11 = vld [vmem:[%s11888_s2 + $0x144] ss:$16 sps:$4 sm:$0xff]   ;;  %v9184_v12 = vld [vmem:[%s11888_s2 + $0x14c] ss:$16 sps:$4 sm:$0xff]   ;;  %v9189_v13 = vld [vmem:[%s11888_s2 + $0x140] ss:$16 sps:$4 sm:$0xff]  }
  0x1a   :  { %v9194_v14 = vld [vmem:[%s11888_s2 + $0x148] ss:$16 sps:$4 sm:$0xff]   ;;  %v9203_v15 = vld [vmem:[%s11888_s2 + $0x164] ss:$16 sps:$4 sm:$0xff]   ;;  %v9208_v16 = vld [vmem:[%s11888_s2 + $0x16c] ss:$16 sps:$4 sm:$0xff]  }
  0x1b   :  { %272 = vmatpush1.bf16.msra.mxu0 %v7966_v26  ;;  %315 = vmatpush1.bf16.msra.mxu1 %v7973_v29  ;;  %v9213_v17 = vld [vmem:[%s11888_s2 + $0x160] ss:$16 sps:$4 sm:$0xff]   ;;  %v9218_v18 = vld [vmem:[%s11888_s2 + $0x168] ss:$16 sps:$4 sm:$0xff]   ;;  %v9227_v19 = vld [vmem:[%s11888_s2 + $0x184] ss:$16 sps:$4 sm:$0xff]  }
  0x1c   :  { %273 = vmatprep.subr.bf16.mxu0 %v7968_v28  ;;  %316 = vmatprep.subr.bf16.mxu1 %v7974_v31  ;;  %v9232_v20 = vld [vmem:[%s11888_s2 + $0x18c] ss:$16 sps:$4 sm:$0xff]   ;;  %v9237_v21 = vld [vmem:[%s11888_s2 + $0x180] ss:$16 sps:$4 sm:$0xff]   ;;  %v9242_v22 = vld [vmem:[%s11888_s2 + $0x188] ss:$16 sps:$4 sm:$0xff]  }
  0x1d   :  { %v9251_v23 = vld [vmem:[%s11888_s2 + $0x1a4] ss:$16 sps:$4 sm:$0xff]   ;;  %v9256_v24 = vld [vmem:[%s11888_s2 + $0x1ac] ss:$16 sps:$4 sm:$0xff]   ;;  %v9261_v25 = vld [vmem:[%s11888_s2 + $0x1a0] ss:$16 sps:$4 sm:$0xff]  }
  0x1e   :  { %v9266_v26 = vld [vmem:[%s11888_s2 + $0x1a8] ss:$16 sps:$4 sm:$0xff]   ;;  %v9275_v27 = vld [vmem:[%s11888_s2 + $0x1c4] ss:$16 sps:$4 sm:$0xff]   ;;  %v9280_v28 = vld [vmem:[%s11888_s2 + $0x1cc] ss:$16 sps:$4 sm:$0xff]  }
  0x1f   :  { %274 = vmatpush1.bf16.msra.mxu0 %v7972_v30  ;;  %317 = vmatpush1.bf16.msra.mxu1 %v7976_v33  ;;  %v9285_v29 = vld [vmem:[%s11888_s2 + $0x1c0] ss:$16 sps:$4 sm:$0xff]   ;;  %v9290_v30 = vld [vmem:[%s11888_s2 + $0x1c8] ss:$16 sps:$4 sm:$0xff]   ;;  %v9299_v31 = vld [vmem:[%s11888_s2 + $0x1e4] ss:$16 sps:$4 sm:$0xff]  }
  0x20   :  { %785 = vmatprep.subr.bf16.mxu0 %v7979_v32  ;;  %828 = vmatprep.subr.bf16.mxu1 %v7982_v35  ;;  %v9304_v32 = vld [vmem:[%s11888_s2 + $0x1ec] ss:$16 sps:$4 sm:$0xff]   ;;  %v9309_v33 = vld [vmem:[%s11888_s2 + $0x1e0] ss:$16 sps:$4 sm:$0xff]   ;;  %v8825_v35 = vld [vmem:[%s11887_s1 + $0x4] ss:$16 sps:$4 sm:$0xff]  }
  0x21   :  { %12107 = vst [vmem:[#allocation5_spill] sm:$0xff] %v9309_v33 }
  0x22   :  { %292 = vmatmul.mubr.bf16.vlgmr.msra.gmra.mrb[0].mxu0 %v8881_v37  ;;  %335 = vmatmul.mubr.bf16.vlgmr.msra.gmra.mrb[0].mxu1 %v8881_v37 }
  0x23   :  { %786 = vmatpush1.bf16.msra.mxu0 %v7977_v34  ;;  %817 = vmatprep.mubr.bf16.mxu0 %v8881_v37  ;;  %v9314_v34 = vld [vmem:[%s11888_s2 + $0x1e8] ss:$16 sps:$4 sm:$0xff]  }
  0x24   :  { %787 = vmatprep.subr.bf16.mxu0 %v7985_v36  ;;  %829 = vmatpush1.bf16.msra.mxu1 %v7980_v38  ;;  %12108 = vst [vmem:[#allocation6_spill] sm:$0xff] %v9314_v34  ;;  %v8826_v36 = vld [vmem:[%s11887_s1 + $0xc] ss:$16 sps:$4 sm:$0xff]   ;;  %v54_v38 = vld [vmem:[%s11889_s0 + $0x10] sm:$0xff] }
  0x25   :  { %860 = vmatprep.mubr.bf16.mxu1 %v8881_v37  ;;  %830 = vmatprep.subr.bf16.mxu1 %v7988_v40  ;;  %v52_v37 = vld [vmem:[%s11889_s0] sm:$0xff] }
  0x26   :  { %v57_v40 = vunpack.c.h.bf16 %v52_v37 }
  0x27   :  { %788 = vmatpush1.bf16.msra.mxu0 %v7983_v39  ;;  %v56_v39 = vunpack.c.l.bf16 %v52_v37 }
  0x28   :  { %789 = vmatprep.subr.bf16.mxu0 %v7991_v42  ;;  %831 = vmatpush1.bf16.msra.mxu1 %v7986_v41  ;;  %v53_v41 = vld [vmem:[%s11889_s0 + $0x8] sm:$0xff]  ;;  %v60_v42 = vunpack.c.l.bf16 %v54_v38 }
  0x29   :  { %832 = vmatprep.subr.bf16.mxu1 %v7994_v44  ;;  %v61_v44 = vunpack.c.h.bf16 %v54_v38 }
  0x2b   :  { %790 = vmatpush1.bf16.msra.mxu0 %v7989_v43 }
  0x2c   :  { %791 = vmatprep.subr.bf16.mxu0 %v7997_v45  ;;  %833 = vmatpush1.bf16.msra.mxu1 %v7992_v46  ;;  %v55_v45 = vld [vmem:[%s11889_s0 + $0x18] sm:$0xff] }
  0x2d   :  { %834 = vmatprep.subr.bf16.mxu1 %v8000_v48  ;;  %v58_v48 = vunpack.c.l.bf16 %v53_v41 }
  0x2f   :  { %792 = vmatpush1.bf16.msra.mxu0 %v7995_v47 }
  0x30   :  { %793 = vmatprep.subr.bf16.mxu0 %v8003_v49  ;;  %835 = vmatpush1.bf16.msra.mxu1 %v7998_v50 }
  0x31   :  { %836 = vmatprep.subr.bf16.mxu1 %v8006_v52 }
  0x33   :  { %794 = vmatpush1.bf16.msra.mxu0 %v8001_v51 }
  0x34   :  { %795 = vmatprep.subr.bf16.mxu0 %v8009_v53  ;;  %837 = vmatpush1.bf16.msra.mxu1 %v8004_v54 }
  0x35   :  { %838 = vmatprep.subr.bf16.mxu1 %v8012_v56 }
  0x37   :  { %796 = vmatpush1.bf16.msra.mxu0 %v8007_v55  ;;  %v62_v55 = vunpack.c.l.bf16 %v55_v45 }
  0x38   :  { %839 = vmatpush1.bf16.msra.mxu1 %v9077_v57  ;;  %797 = vmatprep.subr.bf16.mxu0 %v9083_v58 }
  0x39   :  { %840 = vmatprep.subr.bf16.mxu1 %v9088_v59 }
  0x3b   :  { %798 = vmatpush1.bf16.msra.mxu0 %v9093_v60 }
  0x3c   :  { %841 = vmatpush1.bf16.msra.mxu1 %v9098_v61  ;;  %799 = vmatprep.subr.bf16.mxu0 %v9107_v62 }
  0x3d   :  { %842 = vmatprep.subr.bf16.mxu1 %v9112_v63 }
  0x3f   :  { %800 = vmatpush1.bf16.msra.mxu0 %v9117_v0 }
  0x40   :  { %843 = vmatpush1.bf16.msra.mxu1 %v9122_v2  ;;  %801 = vmatprep.subr.bf16.mxu0 %v9131_v3 }
  0x41   :  { %844 = vmatprep.subr.bf16.mxu1 %v9136_v4 }
  0x43   :  { %802 = vmatpush1.bf16.msra.mxu0 %v9141_v5 }
  0x44   :  { %845 = vmatpush1.bf16.msra.mxu1 %v9146_v6  ;;  %803 = vmatprep.subr.bf16.mxu0 %v9155_v7 }
  0x45   :  { %846 = vmatprep.subr.bf16.mxu1 %v9160_v8 }
  0x47   :  { %804 = vmatpush1.bf16.msra.mxu0 %v9165_v9 }
  0x48   :  { %847 = vmatpush1.bf16.msra.mxu1 %v9170_v10  ;;  %805 = vmatprep.subr.bf16.mxu0 %v9179_v11 }
  0x49   :  { %848 = vmatprep.subr.bf16.mxu1 %v9184_v12 }
  0x4b   :  { %806 = vmatpush1.bf16.msra.mxu0 %v9189_v13 }
  0x4c   :  { %849 = vmatpush1.bf16.msra.mxu1 %v9194_v14  ;;  %807 = vmatprep.subr.bf16.mxu0 %v9203_v15 }
  0x4d   :  { %850 = vmatprep.subr.bf16.mxu1 %v9208_v16 }
  0x4f   :  { %808 = vmatpush1.bf16.msra.mxu0 %v9213_v17 }
  0x50   :  { %851 = vmatpush1.bf16.msra.mxu1 %v9218_v18  ;;  %809 = vmatprep.subr.bf16.mxu0 %v9227_v19 }
  0x51   :  { %852 = vmatprep.subr.bf16.mxu1 %v9232_v20 }
  0x53   :  { %810 = vmatpush1.bf16.msra.mxu0 %v9237_v21 }
  0x54   :  { %853 = vmatpush1.bf16.msra.mxu1 %v9242_v22  ;;  %811 = vmatprep.subr.bf16.mxu0 %v9251_v23 }
  0x55   :  { %854 = vmatprep.subr.bf16.mxu1 %v9256_v24 }
  0x57   :  { %812 = vmatpush1.bf16.msra.mxu0 %v9261_v25 }
  0x58   :  { %855 = vmatpush1.bf16.msra.mxu1 %v9266_v26  ;;  %813 = vmatprep.subr.bf16.mxu0 %v9275_v27 }
  0x59   :  { %856 = vmatprep.subr.bf16.mxu1 %v9280_v28 }
  0x5b   :  { %814 = vmatpush1.bf16.msra.mxu0 %v9285_v29 }
  0x5c   :  { %857 = vmatpush1.bf16.msra.mxu1 %v9290_v30  ;;  %815 = vmatprep.subr.bf16.mxu0 %v9299_v31 }
  0x5d   :  { %858 = vmatprep.subr.bf16.mxu1 %v9304_v32 }
  0x5f   :  { %816 = vmatpush1.bf16.msra.mxu0 %v9309_v33  ;;  %v59_v33 = vunpack.c.h.bf16 %v53_v41 }
  0x60   :  { %859 = vmatpush1.bf16.msra.mxu1 %v9314_v34  ;;  %1131 = vmatprep.subr.bf16.mxu0 %v8825_v35 }
  0x61   :  { %1174 = vmatprep.subr.bf16.mxu1 %v8826_v36 }
  0xf5   :  { %v293_v43 = vpop.f32.mrb[0].mxu0  ;;  %v336_v54 = vpop.f32.mrb[0].mxu1 }
  0xf6   :  { %v345_v46 = vadd.f32 %v293_v43, %v56_v39  ;;  %v295_v47 = vpop.f32.mrb[1].mxu0  ;;  %v338_v36 = vpop.f32.mrb[1].mxu1  ;;  %v347_v38 = vadd.f32 %v336_v54, %v58_v48 }
  0xf7   :  { %v346_v49 = vadd.f32 %v295_v47, %v57_v40  ;;  %v297_v50 = vpop.f32.mrb[2].mxu0  ;;  %v340_v1 = vpop.f32.mrb[2].mxu1  ;;  %v63_v40 = vunpack.c.h.bf16 %v55_v45 }
  0xf8   :  { %v353_v51 = vmul.f32 0.5, %v345_v46  ;;  %v349_v52 = vadd.f32 %v297_v50, %v60_v42  ;;  %v299_v53 = vpop.f32.mrb[3].mxu0  ;;  %v342_v39 = vpop.f32.mrb[3].mxu1  ;;  %v351_v43 = vadd.f32 %v340_v1, %v62_v55  ;;  %v348_v42 = vadd.f32 %v338_v36, %v59_v33 }
  0xf9   :  { %v361_v56 = vmul.f32 0.5, %v346_v49  ;;  %v350_v35 = vadd.f32 %v299_v53, %v61_v44  ;;  %v352_v46 = vadd.f32 %v342_v39, %v63_v40 }
  0xfa   :  { %8505 = vtanh.f32 %v353_v51  ;;  %v354_v37 = vmul.f32 0.5, %v349_v52  ;;  %v371_v47 = vmul.f32 0.5, %v348_v42 }
  0xfb   :  { %8507 = vtanh.f32 %v361_v56  ;;  %v362_v34 = vmul.f32 0.5, %v350_v35  ;;  %v372_v44 = vmul.f32 0.5, %v352_v46 }
  0xfc   :  { %8509 = vtanh.f32 %v354_v37 }
  0xfd   :  { %8511 = vtanh.f32 %v362_v34 }
  0xfe   :  { %8513 = vtanh.f32 %v347_v38 }
  0xff   :  { %8515 = vtanh.f32 %v351_v43 }
 0x100   :  { %8517 = vtanh.f32 %v371_v47 }
 0x101   :  { %8519 = vtanh.f32 %v372_v44 }
 0x104   :  { %v8506_v49 = vpop.eup %8505 }
 0x105   :  { %v8508_v50 = vpop.eup %8507  ;;  %v357_v51 = vmul.f32 0.5, %v8506_v49 }
 0x106   :  { %v8510_v52 = vpop.eup %8509  ;;  %v365_v48 = vmul.f32 0.5, %v8508_v50 }
 0x107   :  { %v8512_v53 = vpop.eup %8511  ;;  %v359_v54 = vadd.f32 0.5, %v357_v51  ;;  %v358_v56 = vmul.f32 0.5, %v8510_v52 }
 0x108   :  { %v8514_v41 = vpop.eup %8513  ;;  %v367_v35 = vadd.f32 0.5, %v365_v48  ;;  %v366_v1 = vmul.f32 0.5, %v8512_v53 }
 0x109   :  { %v360_v34 = vadd.f32 0.5, %v358_v56  ;;  %v383_v45 = vmul.f32 %v8514_v41, %v359_v54  ;;  %v8516_v33 = vpop.eup %8515  ;;  %v8827_v54 = vld [vmem:[%s11887_s1] ss:$16 sps:$4 sm:$0xff]   ;;  %v8828_v56 = vld [vmem:[%s11887_s1 + $0x8] ss:$16 sps:$4 sm:$0xff]  }
 0x10a   :  { %v381_v55 = vmul.f32 0.0, %v367_v35  ;;  %v368_v36 = vadd.f32 0.5, %v366_v1  ;;  %v8518_v40 = vpop.eup %8517  ;;  %v8829_v41 = vld [vmem:[%s11887_s1 + $0x24] ss:$16 sps:$4 sm:$0xff]   ;;  %v8830_v35 = vld [vmem:[%s11887_s1 + $0x2c] ss:$16 sps:$4 sm:$0xff]  }
 0x10b   :  { %v384_v37 = vmul.f32 %v8516_v33, %v360_v34  ;;  %v8520_v42 = vpop.eup %8519  ;;  %v375_v46 = vmul.f32 0.5, %v8518_v40  ;;  %v12109_v1 = vmov 0   ;;  %v8831_v34 = vld [vmem:[%s11887_s1 + $0x20] ss:$16 sps:$4 sm:$0xff]   ;;  %v8833_v33 = vld [vmem:[%s11887_s1 + $0x44] ss:$16 sps:$4 sm:$0xff]  }
 0x10c   :  { %v382_v38 = vmul.f32 0.0, %v368_v36  ;;  %v9338_v39 = vadd.f32 %v383_v45, %v381_v55  ;;  %v376_v47 = vmul.f32 0.5, %v8520_v42  ;;  %v8832_v45 = vld [vmem:[%s11887_s1 + $0x28] ss:$16 sps:$4 sm:$0xff]   ;;  %v8834_v55 = vld [vmem:[%s11887_s1 + $0x4c] ss:$16 sps:$4 sm:$0xff]  }
 0x10d   :  { %v377_v44 = vadd.f32 0.5, %v375_v46  ;;  %v8835_v36 = vld [vmem:[%s11887_s1 + $0x40] ss:$16 sps:$4 sm:$0xff]   ;;  %v8838_v40 = vld [vmem:[%s11887_s1 + $0x6c] ss:$16 sps:$4 sm:$0xff]  }
 0x10e   :  { %8521 = vtanh.f32 %v9338_v39  ;;  %v9341_v43 = vadd.f32 %v384_v37, %v382_v38  ;;  %v378_v50 = vadd.f32 0.5, %v376_v47  ;;  %v8836_v37 = vld [vmem:[%s11887_s1 + $0x48] ss:$16 sps:$4 sm:$0xff]   ;;  %v8837_v38 = vld [vmem:[%s11887_s1 + $0x64] ss:$16 sps:$4 sm:$0xff]  }
 0x10f   :  { %v8839_v42 = vld [vmem:[%s11887_s1 + $0x60] ss:$16 sps:$4 sm:$0xff]   ;;  %v8840_v46 = vld [vmem:[%s11887_s1 + $0x68] ss:$16 sps:$4 sm:$0xff]   ;;  %v8841_v47 = vld [vmem:[%s11887_s1 + $0x84] ss:$16 sps:$4 sm:$0xff]  }
 0x110   :  { %8523 = vtanh.f32 %v9341_v43 }
 0x118   :  { %v8522_v49 = vpop.eup %8521 }
 0x119   :  { %v391_v52 = vmul.f32 %v8522_v49, %v377_v44  ;;  %v8842_v49 = vld [vmem:[%s11887_s1 + $0x8c] ss:$16 sps:$4 sm:$0xff]   ;;  %v8843_v44 = vld [vmem:[%s11887_s1 + $0x80] ss:$16 sps:$4 sm:$0xff]  }
 0x11a   :  { %v8524_v51 = vpop.eup %8523 }
 0x11b   :  { %v392_v48 = vmul.f32 %v8524_v51, %v378_v50  ;;  %v8844_v50 = vld [vmem:[%s11887_s1 + $0x88] ss:$16 sps:$4 sm:$0xff]   ;;  %v8845_v51 = vld [vmem:[%s11887_s1 + $0xa4] ss:$16 sps:$4 sm:$0xff]  }
 0x11d   :  { %v9344_v53 = vpack.c.bf16 %v392_v48, %v391_v52  ;;  %v8846_v52 = vld [vmem:[%s11887_s1 + $0xac] ss:$16 sps:$4 sm:$0xff]   ;;  %v8847_v48 = vld [vmem:[%s11887_s1 + $0xa0] ss:$16 sps:$4 sm:$0xff]  }
 0x11f   :  { %818 = vmatmul.mubr.bf16.vlgmr.msra.gmra.mrb[4].mxu0 %v9344_v53  ;;  %861 = vmatmul.mubr.bf16.vlgmr.msra.gmra.mrb[4].mxu1 %v9344_v53 }
 0x120   :  { %1132 = vmatpush1.bf16.msra.mxu0 %v8827_v54  ;;  %1175 = vmatpush1.bf16.msra.mxu1 %v8828_v56  ;;  %v8848_v54 = vld [vmem:[%s11887_s1 + $0xa8] ss:$16 sps:$4 sm:$0xff]   ;;  %v8849_v56 = vld [vmem:[%s11887_s1 + $0xc4] ss:$16 sps:$4 sm:$0xff]  }
 0x121   :  { %1133 = vmatprep.subr.bf16.mxu0 %v8829_v41  ;;  %1176 = vmatprep.subr.bf16.mxu1 %v8830_v35  ;;  %v8850_v41 = vld [vmem:[%s11887_s1 + $0xcc] ss:$16 sps:$4 sm:$0xff]   ;;  %v8851_v35 = vld [vmem:[%s11887_s1 + $0xc0] ss:$16 sps:$4 sm:$0xff]  }
 0x122   :  { %1163 = vmatprep.mubr.bf16.mxu0 %v12109_v1  ;;  %1206 = vmatprep.mubr.bf16.mxu1 %v12109_v1 }
 0x124   :  { %1134 = vmatpush1.bf16.msra.mxu0 %v8831_v34  ;;  %1177 = vmatpush1.bf16.msra.mxu1 %v8832_v45  ;;  %v8852_v34 = vld [vmem:[%s11887_s1 + $0xc8] ss:$16 sps:$4 sm:$0xff]   ;;  %v8853_v45 = vld [vmem:[%s11887_s1 + $0xe4] ss:$16 sps:$4 sm:$0xff]  }
 0x125   :  { %1135 = vmatprep.subr.bf16.mxu0 %v8833_v33  ;;  %1178 = vmatprep.subr.bf16.mxu1 %v8834_v55  ;;  %v8854_v33 = vld [vmem:[%s11887_s1 + $0xec] ss:$16 sps:$4 sm:$0xff]   ;;  %v8855_v55 = vld [vmem:[%s11887_s1 + $0xe0] ss:$16 sps:$4 sm:$0xff]  }
 0x128   :  { %1136 = vmatpush1.bf16.msra.mxu0 %v8835_v36  ;;  %1179 = vmatpush1.bf16.msra.mxu1 %v8836_v37  ;;  %v8856_v36 = vld [vmem:[%s11887_s1 + $0xe8] ss:$16 sps:$4 sm:$0xff]   ;;  %v8857_v37 = vld [vmem:[%s11888_s2 + $0x4] ss:$16 sps:$4 sm:$0xff]  }
 0x129   :  { %1137 = vmatprep.subr.bf16.mxu0 %v8837_v38  ;;  %1180 = vmatprep.subr.bf16.mxu1 %v8838_v40  ;;  %v8858_v38 = vld [vmem:[%s11888_s2 + $0xc] ss:$16 sps:$4 sm:$0xff]   ;;  %v8859_v40 = vld [vmem:[%s11888_s2] ss:$16 sps:$4 sm:$0xff]  }
 0x12c   :  { %1138 = vmatpush1.bf16.msra.mxu0 %v8839_v42  ;;  %1181 = vmatpush1.bf16.msra.mxu1 %v8840_v46  ;;  %v8860_v42 = vld [vmem:[%s11888_s2 + $0x8] ss:$16 sps:$4 sm:$0xff]   ;;  %v8861_v46 = vld [vmem:[%s11888_s2 + $0x24] ss:$16 sps:$4 sm:$0xff]  }
 0x12d   :  { %1139 = vmatprep.subr.bf16.mxu0 %v8841_v47  ;;  %1182 = vmatprep.subr.bf16.mxu1 %v8842_v49  ;;  %v8862_v47 = vld [vmem:[%s11888_s2 + $0x2c] ss:$16 sps:$4 sm:$0xff]   ;;  %v8864_v49 = vld [vmem:[%s11888_s2 + $0x28] ss:$16 sps:$4 sm:$0xff]  }
 0x130   :  { %1140 = vmatpush1.bf16.msra.mxu0 %v8843_v44  ;;  %1183 = vmatpush1.bf16.msra.mxu1 %v8844_v50  ;;  %v8865_v44 = vld [vmem:[%s11888_s2 + $0x44] ss:$16 sps:$4 sm:$0xff]   ;;  %v8866_v50 = vld [vmem:[%s11888_s2 + $0x4c] ss:$16 sps:$4 sm:$0xff]  }
 0x131   :  { %1141 = vmatprep.subr.bf16.mxu0 %v8845_v51  ;;  %1184 = vmatprep.subr.bf16.mxu1 %v8846_v52  ;;  %v8867_v51 = vld [vmem:[%s11888_s2 + $0x40] ss:$16 sps:$4 sm:$0xff]   ;;  %v8868_v52 = vld [vmem:[%s11888_s2 + $0x48] ss:$16 sps:$4 sm:$0xff]  }
 0x134   :  { %1142 = vmatpush1.bf16.msra.mxu0 %v8847_v48  ;;  %1185 = vmatpush1.bf16.msra.mxu1 %v8848_v54  ;;  %v8869_v48 = vld [vmem:[%s11888_s2 + $0x64] ss:$16 sps:$4 sm:$0xff]   ;;  %v8870_v54 = vld [vmem:[%s11888_s2 + $0x6c] ss:$16 sps:$4 sm:$0xff]  }
 0x135   :  { %1143 = vmatprep.subr.bf16.mxu0 %v8849_v56  ;;  %1186 = vmatprep.subr.bf16.mxu1 %v8850_v41  ;;  %v8871_v56 = vld [vmem:[%s11888_s2 + $0x60] ss:$16 sps:$4 sm:$0xff]   ;;  %v8872_v41 = vld [vmem:[%s11888_s2 + $0x68] ss:$16 sps:$4 sm:$0xff]  }
 0x138   :  { %1144 = vmatpush1.bf16.msra.mxu0 %v8851_v35  ;;  %1187 = vmatpush1.bf16.msra.mxu1 %v8852_v34  ;;  %v8873_v35 = vld [vmem:[%s11888_s2 + $0x84] ss:$16 sps:$4 sm:$0xff]   ;;  %v8874_v34 = vld [vmem:[%s11888_s2 + $0x8c] ss:$16 sps:$4 sm:$0xff]  }
 0x139   :  { %1145 = vmatprep.subr.bf16.mxu0 %v8853_v45  ;;  %1188 = vmatprep.subr.bf16.mxu1 %v8854_v33  ;;  %v8875_v45 = vld [vmem:[%s11888_s2 + $0x80] ss:$16 sps:$4 sm:$0xff]   ;;  %v8876_v33 = vld [vmem:[%s11888_s2 + $0x88] ss:$16 sps:$4 sm:$0xff]  }
 0x13c   :  { %1146 = vmatpush1.bf16.msra.mxu0 %v8855_v55  ;;  %1189 = vmatpush1.bf16.msra.mxu1 %v8856_v36  ;;  %v8877_v55 = vld [vmem:[%s11888_s2 + $0xa4] ss:$16 sps:$4 sm:$0xff]   ;;  %v8878_v36 = vld [vmem:[%s11888_s2 + $0xac] ss:$16 sps:$4 sm:$0xff]  }
 0x13d   :  { %1657 = vmatprep.subr.bf16.mxu0 %v8857_v37  ;;  %1700 = vmatprep.subr.bf16.mxu1 %v8858_v38  ;;  %v8879_v37 = vld [vmem:[%s11888_s2 + $0xa0] ss:$16 sps:$4 sm:$0xff]  }
 0x13f   :  { %1164 = vmatmul.mubr.bf16.vlgmr.msra.gmra.mrb[8].mxu0 %v9344_v53  ;;  %1207 = vmatmul.mubr.bf16.vlgmr.msra.gmra.mrb[8].mxu1 %v9344_v53  ;;  %v8863_v53 = vld [vmem:[%s11888_s2 + $0x20] ss:$16 sps:$4 sm:$0xff]  }
 0x140   :  { %1658 = vmatpush1.bf16.msra.mxu0 %v8859_v40  ;;  %1701 = vmatpush1.bf16.msra.mxu1 %v8860_v42 }
 0x141   :  { %1659 = vmatprep.subr.bf16.mxu0 %v8861_v46  ;;  %1702 = vmatprep.subr.bf16.mxu1 %v8862_v47 }
 0x144   :  { %1660 = vmatpush1.bf16.msra.mxu0 %v8863_v53  ;;  %1703 = vmatpush1.bf16.msra.mxu1 %v8864_v49 }
 0x145   :  { %1661 = vmatprep.subr.bf16.mxu0 %v8865_v44  ;;  %1704 = vmatprep.subr.bf16.mxu1 %v8866_v50 }
 0x148   :  { %1662 = vmatpush1.bf16.msra.mxu0 %v8867_v51  ;;  %1705 = vmatpush1.bf16.msra.mxu1 %v8868_v52 }
 0x149   :  { %1663 = vmatprep.subr.bf16.mxu0 %v8869_v48  ;;  %1706 = vmatprep.subr.bf16.mxu1 %v8870_v54 }
 0x14c   :  { %1664 = vmatpush1.bf16.msra.mxu0 %v8871_v56  ;;  %1707 = vmatpush1.bf16.msra.mxu1 %v8872_v41 }
 0x14d   :  { %1665 = vmatprep.subr.bf16.mxu0 %v8873_v35  ;;  %1708 = vmatprep.subr.bf16.mxu1 %v8874_v34 }
 0x150   :  { %1666 = vmatpush1.bf16.msra.mxu0 %v8875_v45  ;;  %1709 = vmatpush1.bf16.msra.mxu1 %v8876_v33  ;;  %v7136_v45 = vld [vmem:[%s11889_s0 + $0x20] sm:$0xff] }
 0x151   :  { %1667 = vmatprep.subr.bf16.mxu0 %v8877_v55  ;;  %1710 = vmatprep.subr.bf16.mxu1 %v8878_v36  ;;  %v7138_v55 = vld [vmem:[%s11889_s0 + $0x30] sm:$0xff]  ;;  %v928_v36 = vunpack.c.l.bf16 %v7136_v45 }
 0x154   :  { %1668 = vmatpush1.bf16.msra.mxu0 %v8879_v37  ;;  %1711 = vmatpush1.bf16.msra.mxu1 %v9077_v57  ;;  %v12110_v57 = vld [vmem:[#allocation5_spill] sm:$0xff] }
 0x155   :  { %1669 = vmatprep.subr.bf16.mxu0 %v9083_v58  ;;  %1712 = vmatprep.subr.bf16.mxu1 %v9088_v59  ;;  %v12111_v58 = vld [vmem:[#allocation6_spill] sm:$0xff]  ;;  %v9555_v59 = vld [vmem:[%s11887_s1 + $0x4] ss:$16 sps:$4 sm:$0xff]  }
 0x158   :  { %1670 = vmatpush1.bf16.msra.mxu0 %v9093_v60  ;;  %1713 = vmatpush1.bf16.msra.mxu1 %v9098_v61  ;;  %v9560_v60 = vld [vmem:[%s11887_s1 + $0xc] ss:$16 sps:$4 sm:$0xff]   ;;  %v32_v61 = vlaneseq }
 0x159   :  { %1671 = vmatprep.subr.bf16.mxu0 %v9107_v62  ;;  %1714 = vmatprep.subr.bf16.mxu1 %v9112_v63 }
 0x15a   :  { %v33_v62 = vshrl.u32 %v32_v61, 7 }
 0x15c   :  { %1672 = vmatpush1.bf16.msra.mxu0 %v9117_v0  ;;  %1715 = vmatpush1.bf16.msra.mxu1 %v9122_v2  ;;  %v34_v63 = vsub.s32 0, %v33_v62  ;;  %v30_v0 = vld [vmem:[%s11890_s3] sm:$0xf]  ;;  %v38_v2 = vsub.s32 1, %v33_v62 }
 0x15d   :  { %1673 = vmatprep.subr.bf16.mxu0 %v9131_v3  ;;  %1716 = vmatprep.subr.bf16.mxu1 %v9136_v4  ;;  %v42_v4 = vsub.s32 2, %v33_v62 }
 0x15e   :  { %v9567_v3 = vrot.slane %v30_v0, %v34_v63 }
 0x160   :  { %1674 = vmatpush1.bf16.msra.mxu0 %v9141_v5  ;;  %1717 = vmatpush1.bf16.msra.mxu1 %v9146_v6  ;;  %12112 = vst [vmem:[#allocation5_spill] sm:$0xff] %v9567_v3  ;;  %v9569_v5 = vrot.slane %v30_v0, %v38_v2  ;;  %v933_v2 = vunpack.c.h.bf16 %v7138_v55 }
 0x161   :  { %1675 = vmatprep.subr.bf16.mxu0 %v9155_v7  ;;  %1718 = vmatprep.subr.bf16.mxu1 %v9160_v8 }
 0x162   :  { %12113 = vst [vmem:[#allocation6_spill] sm:$0xff] %v9569_v5 }
 0x164   :  { %1676 = vmatpush1.bf16.msra.mxu0 %v9165_v9  ;;  %1719 = vmatpush1.bf16.msra.mxu1 %v9170_v10  ;;  %v9572_v9 = vrot.slane %v30_v0, %v42_v4 }
 0x165   :  { %1677 = vmatprep.subr.bf16.mxu0 %v9179_v11  ;;  %1720 = vmatprep.subr.bf16.mxu1 %v9184_v12 }
 0x166   :  { %12114 = vst [vmem:[#allocation7_spill] sm:$0xff] %v9572_v9 }
 0x168   :  { %1678 = vmatpush1.bf16.msra.mxu0 %v9189_v13  ;;  %1721 = vmatpush1.bf16.msra.mxu1 %v9194_v14 }
 0x169   :  { %1679 = vmatprep.subr.bf16.mxu0 %v9203_v15  ;;  %1722 = vmatprep.subr.bf16.mxu1 %v9208_v16 }
 0x16c   :  { %1680 = vmatpush1.bf16.msra.mxu0 %v9213_v17  ;;  %1723 = vmatpush1.bf16.msra.mxu1 %v9218_v18 }
 0x16d   :  { %1681 = vmatprep.subr.bf16.mxu0 %v9227_v19  ;;  %1724 = vmatprep.subr.bf16.mxu1 %v9232_v20  ;;  %v46_v20 = vsub.s32 3, %v33_v62  ;;  %v932_v62 = vunpack.c.l.bf16 %v7138_v55 }
 0x170   :  { %1682 = vmatpush1.bf16.msra.mxu0 %v9237_v21  ;;  %1725 = vmatpush1.bf16.msra.mxu1 %v9242_v22 }
 0x171   :  { %1683 = vmatprep.subr.bf16.mxu0 %v9251_v23  ;;  %1726 = vmatprep.subr.bf16.mxu1 %v9256_v24 }
 0x174   :  { %1684 = vmatpush1.bf16.msra.mxu0 %v9261_v25  ;;  %1727 = vmatpush1.bf16.msra.mxu1 %v9266_v26  ;;  %v9578_v25 = vrot.slane %v30_v0, %v46_v20 }
 0x175   :  { %1685 = vmatprep.subr.bf16.mxu0 %v9275_v27  ;;  %1728 = vmatprep.subr.bf16.mxu1 %v9280_v28 }
 0x176   :  { %12115 = vst [vmem:[#allocation8_spill] sm:$0xff] %v9578_v25 }
 0x178   :  { %1686 = vmatpush1.bf16.msra.mxu0 %v9285_v29  ;;  %1729 = vmatpush1.bf16.msra.mxu1 %v9290_v30 }
 0x179   :  { %1687 = vmatprep.subr.bf16.mxu0 %v9299_v31  ;;  %1730 = vmatprep.subr.bf16.mxu1 %v9304_v32 }
 0x17c   :  { %1688 = vmatpush1.bf16.msra.mxu0 %v12110_v57  ;;  %1731 = vmatpush1.bf16.msra.mxu1 %v12111_v58  ;;  %v7137_v57 = vld [vmem:[%s11889_s0 + $0x28] sm:$0xff]  ;;  %v929_v58 = vunpack.c.h.bf16 %v7136_v45 }
 0x17d   :  { %2004 = vmatprep.subr.bf16.mxu0 %v9555_v59  ;;  %2047 = vmatprep.subr.bf16.mxu1 %v9560_v60 }
 0x1f2   :  { %v819_v6 = vpop.f32.mrb[4].mxu0  ;;  %v862_v7 = vpop.f32.mrb[4].mxu1 }
 0x1f3   :  { %v820_v8 = vadd.f32 %v819_v6, %v9567_v3  ;;  %v821_v10 = vpop.f32.mrb[5].mxu0  ;;  %v864_v11 = vpop.f32.mrb[5].mxu1  ;;  %v863_v22 = vadd.f32 %v862_v7, %v9572_v9  ;;  %v930_v6 = vunpack.c.l.bf16 %v7137_v57 }
 0x1f4   :  { %v822_v12 = vadd.f32 %v821_v10, %v9569_v5  ;;  %v823_v13 = vpop.f32.mrb[6].mxu0  ;;  %v866_v14 = vpop.f32.mrb[6].mxu1  ;;  %v865_v27 = vadd.f32 %v864_v11, %v9578_v25  ;;  %v7139_v10 = vld [vmem:[%s11889_s0 + $0x38] sm:$0xff] }
 0x1f5   :  { %v871_v15 = vmul.f32 0.5, %v820_v8  ;;  %v824_v16 = vadd.f32 %v823_v13, %v9567_v3  ;;  %v825_v17 = vpop.f32.mrb[7].mxu0  ;;  %v868_v18 = vpop.f32.mrb[7].mxu1  ;;  %v867_v26 = vadd.f32 %v866_v14, %v9572_v9 }
 0x1f6   :  { %v879_v19 = vmul.f32 0.5, %v822_v12  ;;  %v826_v21 = vadd.f32 %v825_v17, %v9569_v5  ;;  %v869_v28 = vadd.f32 %v868_v18, %v9578_v25  ;;  %v889_v32 = vmul.f32 0.5, %v865_v27 }
 0x1f7   :  { %8525 = vtanh.f32 %v871_v15  ;;  %v872_v23 = vmul.f32 0.5, %v824_v16 }
 0x1f8   :  { %8527 = vtanh.f32 %v879_v19  ;;  %v880_v24 = vmul.f32 0.5, %v826_v21  ;;  %v890_v40 = vmul.f32 0.5, %v869_v28  ;;  %v934_v21 = vunpack.c.l.bf16 %v7139_v10 }
 0x1f9   :  { %8529 = vtanh.f32 %v872_v23 }
 0x1fa   :  { %8531 = vtanh.f32 %v863_v22 }
 0x1fb   :  { %8533 = vtanh.f32 %v880_v24 }
 0x1fc   :  { %8535 = vtanh.f32 %v867_v26 }
 0x1fd   :  { %8537 = vtanh.f32 %v889_v32 }
 0x1fe   :  { %8539 = vtanh.f32 %v890_v40 }
 0x201   :  { %v8526_v29 = vpop.eup %8525 }
 0x202   :  { %v8528_v30 = vpop.eup %8527  ;;  %v875_v31 = vmul.f32 0.5, %v8526_v29 }
 0x203   :  { %v883_v38 = vmul.f32 0.5, %v8528_v30  ;;  %v8530_v42 = vpop.eup %8529 }
 0x204   :  { %v877_v46 = vadd.f32 0.5, %v875_v31  ;;  %v8532_v47 = vpop.eup %8531  ;;  %v876_v49 = vmul.f32 0.5, %v8530_v42  ;;  %v931_v31 = vunpack.c.h.bf16 %v7137_v57  ;;  %v935_v42 = vunpack.c.h.bf16 %v7139_v10 }
 0x205   :  { %v885_v53 = vadd.f32 0.5, %v883_v38  ;;  %v8534_v44 = vpop.eup %8533 }
 0x206   :  { %v901_v50 = vmul.f32 %v8532_v47, %v877_v46  ;;  %v878_v52 = vadd.f32 0.5, %v876_v49  ;;  %v884_v48 = vmul.f32 0.5, %v8534_v44  ;;  %v8536_v54 = vpop.eup %8535 }
 0x207   :  { %v899_v51 = vmul.f32 0.0, %v885_v53  ;;  %v8538_v37 = vpop.eup %8537 }
 0x208   :  { %v886_v41 = vadd.f32 0.5, %v884_v48  ;;  %v902_v35 = vmul.f32 %v8536_v54, %v878_v52  ;;  %v8540_v61 = vpop.eup %8539  ;;  %v893_v11 = vmul.f32 0.5, %v8538_v37 }
 0x209   :  { %v9583_v56 = vadd.f32 %v901_v50, %v899_v51  ;;  %v894_v12 = vmul.f32 0.5, %v8540_v61 }
 0x20a   :  { %v900_v34 = vmul.f32 0.0, %v886_v41  ;;  %v895_v27 = vadd.f32 0.5, %v893_v11 }
 0x20b   :  { %8541 = vtanh.f32 %v9583_v56  ;;  %v896_v28 = vadd.f32 0.5, %v894_v12 }
 0x20c   :  { %v9589_v33 = vadd.f32 %v902_v35, %v900_v34 }
 0x20e   :  { %8543 = vtanh.f32 %v9589_v33 }
 0x212   :  { %v1165_v63 = vpop.f32.mrb[8].mxu0  ;;  %v1208_v0 = vpop.f32.mrb[8].mxu1 }
 0x213   :  { %v1217_v4 = vadd.f32 %v1165_v63, %v928_v36  ;;  %v1167_v7 = vpop.f32.mrb[9].mxu0  ;;  %v1210_v8 = vpop.f32.mrb[9].mxu1  ;;  %v1219_v24 = vadd.f32 %v1208_v0, %v930_v6 }
 0x214   :  { %v1218_v13 = vadd.f32 %v1167_v7, %v929_v58  ;;  %v1169_v14 = vpop.f32.mrb[10].mxu0  ;;  %v1212_v15 = vpop.f32.mrb[10].mxu1  ;;  %v1220_v47 = vadd.f32 %v1210_v8, %v931_v31  ;;  %v9703_v31 = vld [vmem:[%s11887_s1 + $0x84] ss:$16 sps:$4 sm:$0xff]  }
 0x215   :  { %v1225_v16 = vmul.f32 0.5, %v1217_v4  ;;  %v1221_v17 = vadd.f32 %v1169_v14, %v932_v62  ;;  %v1171_v18 = vpop.f32.mrb[11].mxu0  ;;  %v1214_v19 = vpop.f32.mrb[11].mxu1  ;;  %v1223_v32 = vadd.f32 %v1212_v15, %v934_v21  ;;  %v9646_v21 = vld [vmem:[%s11887_s1 + $0x28] ss:$16 sps:$4 sm:$0xff]  }
 0x216   :  { %v1233_v20 = vmul.f32 0.5, %v1218_v13  ;;  %v1222_v22 = vadd.f32 %v1171_v18, %v933_v2  ;;  %v8542_v23 = vpop.eup %8541  ;;  %v1224_v53 = vadd.f32 %v1214_v19, %v935_v42  ;;  %v1243_v51 = vmul.f32 0.5, %v1220_v47  ;;  %v9627_v18 = vld [vmem:[%s11887_s1 + $0x24] ss:$16 sps:$4 sm:$0xff]   ;;  %v9632_v19 = vld [vmem:[%s11887_s1 + $0x2c] ss:$16 sps:$4 sm:$0xff]  }
 0x217   :  { %8545 = vtanh.f32 %v1225_v16  ;;  %v1226_v26 = vmul.f32 0.5, %v1221_v17  ;;  %v909_v38 = vmul.f32 %v8542_v23, %v895_v27  ;;  %v9620_v16 = vld [vmem:[%s11887_s1 + $0x8] ss:$16 sps:$4 sm:$0xff]   ;;  %v9658_v23 = vld [vmem:[%s11887_s1 + $0x4c] ss:$16 sps:$4 sm:$0xff]  }
 0x218   :  { %8547 = vtanh.f32 %v1233_v20  ;;  %v1234_v29 = vmul.f32 0.5, %v1222_v22  ;;  %v8544_v30 = vpop.eup %8543  ;;  %v1244_v48 = vmul.f32 0.5, %v1224_v53  ;;  %v9641_v20 = vld [vmem:[%s11887_s1 + $0x20] ss:$16 sps:$4 sm:$0xff]   ;;  %v9653_v22 = vld [vmem:[%s11887_s1 + $0x44] ss:$16 sps:$4 sm:$0xff]  }
 0x219   :  { %8549 = vtanh.f32 %v1226_v26  ;;  %v910_v40 = vmul.f32 %v8544_v30, %v896_v28  ;;  %v9672_v26 = vld [vmem:[%s11887_s1 + $0x48] ss:$16 sps:$4 sm:$0xff]   ;;  %v9679_v27 = vld [vmem:[%s11887_s1 + $0x64] ss:$16 sps:$4 sm:$0xff]   ;;  %v9684_v28 = vld [vmem:[%s11887_s1 + $0x6c] ss:$16 sps:$4 sm:$0xff]  }
 0x21a   :  { %8551 = vtanh.f32 %v1219_v24  ;;  %v9667_v24 = vld [vmem:[%s11887_s1 + $0x40] ss:$16 sps:$4 sm:$0xff]   ;;  %v9696_v30 = vld [vmem:[%s11887_s1 + $0x68] ss:$16 sps:$4 sm:$0xff]   ;;  %v9727_v42 = vld [vmem:[%s11887_s1 + $0xa4] ss:$16 sps:$4 sm:$0xff]  }
 0x21b   :  { %8553 = vtanh.f32 %v1234_v29  ;;  %v7883_v46 = vpack.c.bf16 %v910_v40, %v909_v38  ;;  %v9691_v29 = vld [vmem:[%s11887_s1 + $0x60] ss:$16 sps:$4 sm:$0xff]   ;;  %v9720_v40 = vld [vmem:[%s11887_s1 + $0x88] ss:$16 sps:$4 sm:$0xff]  }
 0x21c   :  { %8555 = vtanh.f32 %v1223_v32  ;;  %v9708_v32 = vld [vmem:[%s11887_s1 + $0x8c] ss:$16 sps:$4 sm:$0xff]   ;;  %v9715_v38 = vld [vmem:[%s11887_s1 + $0x80] ss:$16 sps:$4 sm:$0xff]   ;;  %v9744_v53 = vld [vmem:[%s11887_s1 + $0xa8] ss:$16 sps:$4 sm:$0xff]  }
 0x21d   :  { %7884 = vst [vmem:[%s11891_s4] sm:$0xff] %v7883_v46   ;;  %1689 = vmatprep.mubr.bf16.mxu0 %v7883_v46  ;;  %1732 = vmatprep.mubr.bf16.mxu1 %v7883_v46  ;;  %8557 = vtanh.f32 %v1243_v51  ;;  %v9732_v46 = vld [vmem:[%s11887_s1 + $0xac] ss:$16 sps:$4 sm:$0xff]   ;;  %v9739_v47 = vld [vmem:[%s11887_s1 + $0xa0] ss:$16 sps:$4 sm:$0xff]   ;;  %v9768_v51 = vld [vmem:[%s11887_s1 + $0xc8] ss:$16 sps:$4 sm:$0xff]  }
 0x21e   :  { %8559 = vtanh.f32 %v1244_v48  ;;  %v9780_v48 = vld [vmem:[%s11887_s1 + $0xec] ss:$16 sps:$4 sm:$0xff]  }
 0x221   :  { %v8546_v49 = vpop.eup %8545 }
 0x222   :  { %v8548_v44 = vpop.eup %8547  ;;  %v1229_v50 = vmul.f32 0.5, %v8546_v49  ;;  %v9751_v49 = vld [vmem:[%s11887_s1 + $0xc4] ss:$16 sps:$4 sm:$0xff]  }
 0x223   :  { %v1237_v52 = vmul.f32 0.5, %v8548_v44  ;;  %v8550_v54 = vpop.eup %8549  ;;  %v9756_v44 = vld [vmem:[%s11887_s1 + $0xcc] ss:$16 sps:$4 sm:$0xff]  }
 0x224   :  { %v1231_v41 = vadd.f32 0.5, %v1229_v50  ;;  %v8552_v35 = vpop.eup %8551  ;;  %v1230_v45 = vmul.f32 0.5, %v8550_v54  ;;  %v9763_v50 = vld [vmem:[%s11887_s1 + $0xc0] ss:$16 sps:$4 sm:$0xff]  }
 0x225   :  { %v1239_v34 = vadd.f32 0.5, %v1237_v52  ;;  %v8554_v55 = vpop.eup %8553  ;;  %v9775_v52 = vld [vmem:[%s11887_s1 + $0xe4] ss:$16 sps:$4 sm:$0xff]   ;;  %v9787_v54 = vld [vmem:[%s11887_s1 + $0xe0] ss:$16 sps:$4 sm:$0xff]  }
 0x226   :  { %v1255_v36 = vmul.f32 %v8552_v35, %v1231_v41  ;;  %v1232_v57 = vadd.f32 0.5, %v1230_v45  ;;  %v1238_v58 = vmul.f32 0.5, %v8554_v55  ;;  %v8556_v61 = vpop.eup %8555  ;;  %v9792_v41 = vld [vmem:[%s11887_s1 + $0xe8] ss:$16 sps:$4 sm:$0xff]   ;;  %v9803_v35 = vld [vmem:[%s11888_s2 + $0x4] ss:$16 sps:$4 sm:$0xff]  }
 0x227   :  { %v1253_v37 = vmul.f32 %v1239_v34, %v9338_v39  ;;  %v8558_v6 = vpop.eup %8557  ;;  %v9808_v34 = vld [vmem:[%s11888_s2 + $0xc] ss:$16 sps:$4 sm:$0xff]   ;;  %v9813_v45 = vld [vmem:[%s11888_s2] ss:$16 sps:$4 sm:$0xff]   ;;  %v9818_v55 = vld [vmem:[%s11888_s2 + $0x8] ss:$16 sps:$4 sm:$0xff]  }
 0x228   :  { %v1240_v63 = vadd.f32 0.5, %v1238_v58  ;;  %v1256_v0 = vmul.f32 %v8556_v61, %v1232_v57  ;;  %v8560_v7 = vpop.eup %8559  ;;  %v1247_v8 = vmul.f32 0.5, %v8558_v6  ;;  %12116 = vst [vmem:[#allocation9_spill] sm:$0xff] %v9808_v34  ;;  %12117 = vst [vmem:[#allocation10_spill] sm:$0xff] %v9813_v45  ;;  %v9837_v57 = vld [vmem:[%s11888_s2 + $0x20] ss:$16 sps:$4 sm:$0xff]  }
 0x229   :  { %v9605_v62 = vadd.f32 %v1255_v36, %v1253_v37  ;;  %v1248_v39 = vmul.f32 0.5, %v8560_v7  ;;  %12118 = vst [vmem:[#allocation11_spill] sm:$0xff] %v9818_v55  ;;  %v9827_v36 = vld [vmem:[%s11888_s2 + $0x24] ss:$16 sps:$4 sm:$0xff]   ;;  %v9832_v37 = vld [vmem:[%s11888_s2 + $0x2c] ss:$16 sps:$4 sm:$0xff]  }
 0x22a   :  { %v1254_v2 = vmul.f32 %v1240_v63, %v9341_v43  ;;  %v1249_v11 = vadd.f32 0.5, %v1247_v8  ;;  %v9615_v43 = vld [vmem:[%s11887_s1] ss:$16 sps:$4 sm:$0xff]   ;;  %12119 = vst [vmem:[#allocation12_spill] sm:$0xff] %v9827_v36  ;;  %12120 = vst [vmem:[#allocation13_spill] sm:$0xff] %v9832_v37 }
 0x22b   :  { %8561 = vtanh.f32 %v9605_v62  ;;  %v1250_v12 = vadd.f32 0.5, %v1248_v39  ;;  %12121 = vst [vmem:[#allocation14_spill] sm:$0xff] %v9837_v57  ;;  %v9842_v58 = vld [vmem:[%s11888_s2 + $0x28] ss:$16 sps:$4 sm:$0xff]   ;;  %v9851_v61 = vld [vmem:[%s11888_s2 + $0x44] ss:$16 sps:$4 sm:$0xff]  }
 0x22c   :  { %v9609_v4 = vadd.f32 %v1256_v0, %v1254_v2  ;;  %12122 = vst [vmem:[#allocation15_spill] sm:$0xff] %v9842_v58  ;;  %12123 = vst [vmem:[#allocation16_spill] sm:$0xff] %v9851_v61  ;;  %v9856_v63 = vld [vmem:[%s11888_s2 + $0x4c] ss:$16 sps:$4 sm:$0xff]   ;;  %v9861_v0 = vld [vmem:[%s11888_s2 + $0x40] ss:$16 sps:$4 sm:$0xff]  }
 0x22d   :  { %12124 = vst [vmem:[#allocation17_spill] sm:$0xff] %v9856_v63  ;;  %12125 = vst [vmem:[#allocation18_spill] sm:$0xff] %v9861_v0  ;;  %v9866_v2 = vld [vmem:[%s11888_s2 + $0x48] ss:$16 sps:$4 sm:$0xff]   ;;  %v9875_v6 = vld [vmem:[%s11888_s2 + $0x64] ss:$16 sps:$4 sm:$0xff]  }
 0x22e   :  { %8563 = vtanh.f32 %v9609_v4  ;;  %12126 = vst [vmem:[#allocation19_spill] sm:$0xff] %v9866_v2  ;;  %12127 = vst [vmem:[#allocation20_spill] sm:$0xff] %v9875_v6  ;;  %v9880_v7 = vld [vmem:[%s11888_s2 + $0x6c] ss:$16 sps:$4 sm:$0xff]   ;;  %v9885_v8 = vld [vmem:[%s11888_s2 + $0x60] ss:$16 sps:$4 sm:$0xff]  }
 0x22f   :  { %12128 = vst [vmem:[#allocation21_spill] sm:$0xff] %v9880_v7  ;;  %12129 = vst [vmem:[#allocation22_spill] sm:$0xff] %v9885_v8  ;;  %v9890_v39 = vld [vmem:[%s11888_s2 + $0x68] ss:$16 sps:$4 sm:$0xff]  }
 0x230   :  { %12130 = vst [vmem:[#allocation23_spill] sm:$0xff] %v9890_v39 }
 0x235   :  { %v8562_v10 = vpop.eup %8561 }
 0x236   :  { %v1263_v14 = vmul.f32 %v8562_v10, %v1249_v11  ;;  %v9899_v10 = vld [vmem:[%s11888_s2 + $0x84] ss:$16 sps:$4 sm:$0xff]   ;;  %v9904_v11 = vld [vmem:[%s11888_s2 + $0x8c] ss:$16 sps:$4 sm:$0xff]  }
 0x237   :  { %12131 = vst [vmem:[#allocation24_spill] sm:$0xff] %v9899_v10  ;;  %12132 = vst [vmem:[#allocation25_spill] sm:$0xff] %v9904_v11 }
 0x238   :  { %v8564_v13 = vpop.eup %8563 }
 0x239   :  { %v1264_v15 = vmul.f32 %v8564_v13, %v1250_v12  ;;  %v9909_v12 = vld [vmem:[%s11888_s2 + $0x80] ss:$16 sps:$4 sm:$0xff]   ;;  %v9914_v13 = vld [vmem:[%s11888_s2 + $0x88] ss:$16 sps:$4 sm:$0xff]  }
 0x23a   :  { %12133 = vst [vmem:[#allocation26_spill] sm:$0xff] %v9909_v12  ;;  %12134 = vst [vmem:[#allocation27_spill] sm:$0xff] %v9914_v13 }
 0x23b   :  { %v9622_v17 = vpack.c.bf16 %v1264_v15, %v1263_v14  ;;  %v9923_v14 = vld [vmem:[%s11888_s2 + $0xa0] ss:$16 sps:$4 sm:$0xff]   ;;  %v9928_v15 = vld [vmem:[%s11888_s2 + $0xa4] ss:$16 sps:$4 sm:$0xff]  }
 0x23c   :  { %12135 = vst [vmem:[#allocation28_spill] sm:$0xff] %v9923_v14  ;;  %12136 = vst [vmem:[#allocation29_spill] sm:$0xff] %v9928_v15 }
 0x23d   :  { %1690 = vmatmul.mubr.bf16.vlgmr.msra.gmra.mrb[12].mxu0 %v9622_v17  ;;  %1733 = vmatmul.mubr.bf16.vlgmr.msra.gmra.mrb[12].mxu1 %v9622_v17 }
 0x23e   :  { %2005 = vmatpush1.bf16.msra.mxu0 %v9615_v43  ;;  %2048 = vmatpush1.bf16.msra.mxu1 %v9620_v16 }
 0x23f   :  { %2006 = vmatprep.subr.bf16.mxu0 %v9627_v18  ;;  %2049 = vmatprep.subr.bf16.mxu1 %v9632_v19 }
 0x240   :  { %2036 = vmatprep.mubr.bf16.mxu0 %v12109_v1  ;;  %2079 = vmatprep.mubr.bf16.mxu1 %v12109_v1 }
 0x242   :  { %2007 = vmatpush1.bf16.msra.mxu0 %v9641_v20  ;;  %2050 = vmatpush1.bf16.msra.mxu1 %v9646_v21 }
 0x243   :  { %2008 = vmatprep.subr.bf16.mxu0 %v9653_v22  ;;  %2051 = vmatprep.subr.bf16.mxu1 %v9658_v23 }
 0x246   :  { %2009 = vmatpush1.bf16.msra.mxu0 %v9667_v24  ;;  %2052 = vmatpush1.bf16.msra.mxu1 %v9672_v26 }
 0x247   :  { %2010 = vmatprep.subr.bf16.mxu0 %v9679_v27  ;;  %2053 = vmatprep.subr.bf16.mxu1 %v9684_v28 }
 0x24a   :  { %2011 = vmatpush1.bf16.msra.mxu0 %v9691_v29  ;;  %2054 = vmatpush1.bf16.msra.mxu1 %v9696_v30 }
 0x24b   :  { %2012 = vmatprep.subr.bf16.mxu0 %v9703_v31  ;;  %2055 = vmatprep.subr.bf16.mxu1 %v9708_v32 }
 0x24e   :  { %2013 = vmatpush1.bf16.msra.mxu0 %v9715_v38  ;;  %2056 = vmatpush1.bf16.msra.mxu1 %v9720_v40 }
 0x24f   :  { %2014 = vmatprep.subr.bf16.mxu0 %v9727_v42  ;;  %2057 = vmatprep.subr.bf16.mxu1 %v9732_v46 }
 0x252   :  { %2015 = vmatpush1.bf16.msra.mxu0 %v9739_v47  ;;  %2058 = vmatpush1.bf16.msra.mxu1 %v9744_v53 }
 0x253   :  { %2016 = vmatprep.subr.bf16.mxu0 %v9751_v49  ;;  %2059 = vmatprep.subr.bf16.mxu1 %v9756_v44 }
 0x256   :  { %2017 = vmatpush1.bf16.msra.mxu0 %v9763_v50  ;;  %2060 = vmatpush1.bf16.msra.mxu1 %v9768_v51 }
 0x257   :  { %2018 = vmatprep.subr.bf16.mxu0 %v9775_v52  ;;  %2061 = vmatprep.subr.bf16.mxu1 %v9780_v48 }
 0x25a   :  { %2019 = vmatpush1.bf16.msra.mxu0 %v9787_v54  ;;  %2062 = vmatpush1.bf16.msra.mxu1 %v9792_v41 }
 0x25b   :  { %2530 = vmatprep.subr.bf16.mxu0 %v9803_v35  ;;  %2573 = vmatprep.subr.bf16.mxu1 %v9808_v34 }
 0x25d   :  { %2037 = vmatmul.mubr.bf16.vlgmr.msra.gmra.mrb[16].mxu0 %v9622_v17  ;;  %2080 = vmatmul.mubr.bf16.vlgmr.msra.gmra.mrb[16].mxu1 %v9622_v17  ;;  %v9933_v17 = vld [vmem:[%s11888_s2 + $0xa8] ss:$16 sps:$4 sm:$0xff]  }
 0x25e   :  { %2531 = vmatpush1.bf16.msra.mxu0 %v9813_v45  ;;  %2574 = vmatpush1.bf16.msra.mxu1 %v9818_v55  ;;  %12137 = vst [vmem:[#allocation30_spill] sm:$0xff] %v9933_v17 }
 0x25f   :  { %2532 = vmatprep.subr.bf16.mxu0 %v9827_v36  ;;  %2575 = vmatprep.subr.bf16.mxu1 %v9832_v37 }
 0x262   :  { %2533 = vmatpush1.bf16.msra.mxu0 %v9837_v57  ;;  %2576 = vmatpush1.bf16.msra.mxu1 %v9842_v58 }
 0x263   :  { %2534 = vmatprep.subr.bf16.mxu0 %v9851_v61  ;;  %2577 = vmatprep.subr.bf16.mxu1 %v9856_v63 }
 0x266   :  { %2535 = vmatpush1.bf16.msra.mxu0 %v9861_v0  ;;  %2578 = vmatpush1.bf16.msra.mxu1 %v9866_v2 }
 0x267   :  { %2536 = vmatprep.subr.bf16.mxu0 %v9875_v6  ;;  %2579 = vmatprep.subr.bf16.mxu1 %v9880_v7 }
 0x26a   :  { %2537 = vmatpush1.bf16.msra.mxu0 %v9885_v8  ;;  %2580 = vmatpush1.bf16.msra.mxu1 %v9890_v39 }
 0x26b   :  { %2538 = vmatprep.subr.bf16.mxu0 %v9899_v10  ;;  %2581 = vmatprep.subr.bf16.mxu1 %v9904_v11  ;;  %v9952_v11 = vld [vmem:[%s11888_s2 + $0xcc] ss:$16 sps:$4 sm:$0xff]  }
 0x26c   :  { %12140 = vst [vmem:[#allocation33_spill] sm:$0xff] %v9952_v11 }
 0x26e   :  { %2539 = vmatpush1.bf16.msra.mxu0 %v9909_v12  ;;  %2582 = vmatpush1.bf16.msra.mxu1 %v9914_v13  ;;  %v9938_v12 = vld [vmem:[%s11888_s2 + $0xac] ss:$16 sps:$4 sm:$0xff]   ;;  %v9947_v13 = vld [vmem:[%s11888_s2 + $0xc4] ss:$16 sps:$4 sm:$0xff]  }
 0x26f   :  { %12138 = vst [vmem:[#allocation31_spill] sm:$0xff] %v9938_v12  ;;  %2540 = vmatprep.subr.bf16.mxu0 %v9928_v15  ;;  %2583 = vmatprep.subr.bf16.mxu1 %v9938_v12  ;;  %12139 = vst [vmem:[#allocation32_spill] sm:$0xff] %v9947_v13  ;;  %v9957_v15 = vld [vmem:[%s11888_s2 + $0xc0] ss:$16 sps:$4 sm:$0xff]   ;;  %v9976_v12 = vld [vmem:[%s11888_s2 + $0xec] ss:$16 sps:$4 sm:$0xff]  }
 0x270   :  { %12141 = vst [vmem:[#allocation34_spill] sm:$0xff] %v9957_v15  ;;  %12144 = vst [vmem:[#allocation37_spill] sm:$0xff] %v9976_v12 }
 0x272   :  { %2541 = vmatpush1.bf16.msra.mxu0 %v9923_v14  ;;  %2584 = vmatpush1.bf16.msra.mxu1 %v9933_v17  ;;  %v9962_v14 = vld [vmem:[%s11888_s2 + $0xc8] ss:$16 sps:$4 sm:$0xff]   ;;  %v9971_v17 = vld [vmem:[%s11888_s2 + $0xe4] ss:$16 sps:$4 sm:$0xff]  }
 0x273   :  { %12142 = vst [vmem:[#allocation35_spill] sm:$0xff] %v9962_v14  ;;  %2542 = vmatprep.subr.bf16.mxu0 %v9947_v13  ;;  %2585 = vmatprep.subr.bf16.mxu1 %v9952_v11  ;;  %12143 = vst [vmem:[#allocation36_spill] sm:$0xff] %v9971_v17  ;;  %v9981_v13 = vld [vmem:[%s11888_s2 + $0xe0] ss:$16 sps:$4 sm:$0xff]   ;;  %v10000_v11 = vld [vmem:[%s11888_s2 + $0x10c] ss:$16 sps:$4 sm:$0xff]  }
 0x274   :  { %12145 = vst [vmem:[#allocation38_spill] sm:$0xff] %v9981_v13  ;;  %12148 = vst [vmem:[#allocation41_spill] sm:$0xff] %v10000_v11 }
 0x276   :  { %2543 = vmatpush1.bf16.msra.mxu0 %v9957_v15  ;;  %2586 = vmatpush1.bf16.msra.mxu1 %v9962_v14  ;;  %v9986_v15 = vld [vmem:[%s11888_s2 + $0xe8] ss:$16 sps:$4 sm:$0xff]   ;;  %v9995_v14 = vld [vmem:[%s11888_s2 + $0x104] ss:$16 sps:$4 sm:$0xff]  }
 0x277   :  { %12146 = vst [vmem:[#allocation39_spill] sm:$0xff] %v9986_v15  ;;  %2544 = vmatprep.subr.bf16.mxu0 %v9971_v17  ;;  %2587 = vmatprep.subr.bf16.mxu1 %v9976_v12  ;;  %12147 = vst [vmem:[#allocation40_spill] sm:$0xff] %v9995_v14  ;;  %v10005_v17 = vld [vmem:[%s11888_s2 + $0x100] ss:$16 sps:$4 sm:$0xff]   ;;  %v10024_v12 = vld [vmem:[%s11888_s2 + $0x12c] ss:$16 sps:$4 sm:$0xff]  }
 0x278   :  { %12149 = vst [vmem:[#allocation42_spill] sm:$0xff] %v10005_v17  ;;  %12152 = vst [vmem:[#allocation45_spill] sm:$0xff] %v10024_v12 }
 0x27a   :  { %2545 = vmatpush1.bf16.msra.mxu0 %v9981_v13  ;;  %2588 = vmatpush1.bf16.msra.mxu1 %v9986_v15  ;;  %v10010_v13 = vld [vmem:[%s11888_s2 + $0x108] ss:$16 sps:$4 sm:$0xff]   ;;  %v10019_v15 = vld [vmem:[%s11888_s2 + $0x124] ss:$16 sps:$4 sm:$0xff]  }
 0x27b   :  { %12150 = vst [vmem:[#allocation43_spill] sm:$0xff] %v10010_v13  ;;  %2546 = vmatprep.subr.bf16.mxu0 %v9995_v14  ;;  %2589 = vmatprep.subr.bf16.mxu1 %v10000_v11  ;;  %12151 = vst [vmem:[#allocation44_spill] sm:$0xff] %v10019_v15  ;;  %v10029_v14 = vld [vmem:[%s11888_s2 + $0x120] ss:$16 sps:$4 sm:$0xff]   ;;  %v10048_v11 = vld [vmem:[%s11888_s2 + $0x14c] ss:$16 sps:$4 sm:$0xff]  }
 0x27c   :  { %12153 = vst [vmem:[#allocation46_spill] sm:$0xff] %v10029_v14  ;;  %12156 = vst [vmem:[#allocation49_spill] sm:$0xff] %v10048_v11 }
 0x27e   :  { %2547 = vmatpush1.bf16.msra.mxu0 %v10005_v17  ;;  %2590 = vmatpush1.bf16.msra.mxu1 %v10010_v13  ;;  %v10034_v17 = vld [vmem:[%s11888_s2 + $0x128] ss:$16 sps:$4 sm:$0xff]   ;;  %v10043_v13 = vld [vmem:[%s11888_s2 + $0x144] ss:$16 sps:$4 sm:$0xff]  }
 0x27f   :  { %12154 = vst [vmem:[#allocation47_spill] sm:$0xff] %v10034_v17  ;;  %2548 = vmatprep.subr.bf16.mxu0 %v10019_v15  ;;  %2591 = vmatprep.subr.bf16.mxu1 %v10024_v12  ;;  %12155 = vst [vmem:[#allocation48_spill] sm:$0xff] %v10043_v13  ;;  %v10053_v15 = vld [vmem:[%s11888_s2 + $0x140] ss:$16 sps:$4 sm:$0xff]   ;;  %v10072_v12 = vld [vmem:[%s11888_s2 + $0x16c] ss:$16 sps:$4 sm:$0xff]  }
 0x280   :  { %12157 = vst [vmem:[#allocation50_spill] sm:$0xff] %v10053_v15  ;;  %12160 = vst [vmem:[#allocation53_spill] sm:$0xff] %v10072_v12 }
 0x282   :  { %2549 = vmatpush1.bf16.msra.mxu0 %v10029_v14  ;;  %2592 = vmatpush1.bf16.msra.mxu1 %v10034_v17  ;;  %v10058_v14 = vld [vmem:[%s11888_s2 + $0x148] ss:$16 sps:$4 sm:$0xff]   ;;  %v10067_v17 = vld [vmem:[%s11888_s2 + $0x164] ss:$16 sps:$4 sm:$0xff]  }
 0x283   :  { %12158 = vst [vmem:[#allocation51_spill] sm:$0xff] %v10058_v14  ;;  %2550 = vmatprep.subr.bf16.mxu0 %v10043_v13  ;;  %2593 = vmatprep.subr.bf16.mxu1 %v10048_v11  ;;  %12159 = vst [vmem:[#allocation52_spill] sm:$0xff] %v10067_v17  ;;  %v10077_v13 = vld [vmem:[%s11888_s2 + $0x160] ss:$16 sps:$4 sm:$0xff]   ;;  %v10096_v11 = vld [vmem:[%s11888_s2 + $0x18c] ss:$16 sps:$4 sm:$0xff]  }
 0x284   :  { %12161 = vst [vmem:[#allocation54_spill] sm:$0xff] %v10077_v13  ;;  %12164 = vst [vmem:[#allocation57_spill] sm:$0xff] %v10096_v11 }
 0x286   :  { %2551 = vmatpush1.bf16.msra.mxu0 %v10053_v15  ;;  %2594 = vmatpush1.bf16.msra.mxu1 %v10058_v14  ;;  %v10082_v15 = vld [vmem:[%s11888_s2 + $0x168] ss:$16 sps:$4 sm:$0xff]   ;;  %v10091_v14 = vld [vmem:[%s11888_s2 + $0x184] ss:$16 sps:$4 sm:$0xff]  }
 0x287   :  { %12162 = vst [vmem:[#allocation55_spill] sm:$0xff] %v10082_v15  ;;  %2552 = vmatprep.subr.bf16.mxu0 %v10067_v17  ;;  %2595 = vmatprep.subr.bf16.mxu1 %v10072_v12  ;;  %12163 = vst [vmem:[#allocation56_spill] sm:$0xff] %v10091_v14  ;;  %v10101_v17 = vld [vmem:[%s11888_s2 + $0x180] ss:$16 sps:$4 sm:$0xff]   ;;  %v10120_v12 = vld [vmem:[%s11888_s2 + $0x1ac] ss:$16 sps:$4 sm:$0xff]  }
 0x288   :  { %12165 = vst [vmem:[#allocation58_spill] sm:$0xff] %v10101_v17  ;;  %12168 = vst [vmem:[#allocation61_spill] sm:$0xff] %v10120_v12 }
 0x28a   :  { %2553 = vmatpush1.bf16.msra.mxu0 %v10077_v13  ;;  %2596 = vmatpush1.bf16.msra.mxu1 %v10082_v15  ;;  %v10106_v13 = vld [vmem:[%s11888_s2 + $0x188] ss:$16 sps:$4 sm:$0xff]   ;;  %v10115_v15 = vld [vmem:[%s11888_s2 + $0x1a4] ss:$16 sps:$4 sm:$0xff]  }
 0x28b   :  { %12166 = vst [vmem:[#allocation59_spill] sm:$0xff] %v10106_v13  ;;  %2554 = vmatprep.subr.bf16.mxu0 %v10091_v14  ;;  %2597 = vmatprep.subr.bf16.mxu1 %v10096_v11  ;;  %12167 = vst [vmem:[#allocation60_spill] sm:$0xff] %v10115_v15  ;;  %v10125_v14 = vld [vmem:[%s11888_s2 + $0x1a0] ss:$16 sps:$4 sm:$0xff]   ;;  %v10144_v11 = vld [vmem:[%s11888_s2 + $0x1cc] ss:$16 sps:$4 sm:$0xff]  }
 0x28c   :  { %12169 = vst [vmem:[#allocation62_spill] sm:$0xff] %v10125_v14  ;;  %12172 = vst [vmem:[#allocation65_spill] sm:$0xff] %v10144_v11 }
 0x28e   :  { %2555 = vmatpush1.bf16.msra.mxu0 %v10101_v17  ;;  %2598 = vmatpush1.bf16.msra.mxu1 %v10106_v13  ;;  %v10130_v17 = vld [vmem:[%s11888_s2 + $0x1a8] ss:$16 sps:$4 sm:$0xff]   ;;  %v10139_v13 = vld [vmem:[%s11888_s2 + $0x1c4] ss:$16 sps:$4 sm:$0xff]  }
 0x28f   :  { %12170 = vst [vmem:[#allocation63_spill] sm:$0xff] %v10130_v17  ;;  %2556 = vmatprep.subr.bf16.mxu0 %v10115_v15  ;;  %2599 = vmatprep.subr.bf16.mxu1 %v10120_v12  ;;  %12171 = vst [vmem:[#allocation64_spill] sm:$0xff] %v10139_v13  ;;  %v10149_v15 = vld [vmem:[%s11888_s2 + $0x1c0] ss:$16 sps:$4 sm:$0xff]   ;;  %v10168_v12 = vld [vmem:[%s11888_s2 + $0x1ec] ss:$16 sps:$4 sm:$0xff]  }
 0x290   :  { %12173 = vst [vmem:[#allocation66_spill] sm:$0xff] %v10149_v15  ;;  %12176 = vst [vmem:[#allocation69_spill] sm:$0xff] %v10168_v12 }
 0x292   :  { %2557 = vmatpush1.bf16.msra.mxu0 %v10125_v14  ;;  %2600 = vmatpush1.bf16.msra.mxu1 %v10130_v17  ;;  %v10154_v14 = vld [vmem:[%s11888_s2 + $0x1c8] ss:$16 sps:$4 sm:$0xff]   ;;  %v10163_v17 = vld [vmem:[%s11888_s2 + $0x1e4] ss:$16 sps:$4 sm:$0xff]  }
 0x293   :  { %12174 = vst [vmem:[#allocation67_spill] sm:$0xff] %v10154_v14  ;;  %2558 = vmatprep.subr.bf16.mxu0 %v10139_v13  ;;  %2601 = vmatprep.subr.bf16.mxu1 %v10144_v11  ;;  %12175 = vst [vmem:[#allocation68_spill] sm:$0xff] %v10163_v17  ;;  %v10173_v13 = vld [vmem:[%s11888_s2 + $0x1e0] ss:$16 sps:$4 sm:$0xff]  }
 0x294   :  { %12177 = vst [vmem:[#allocation70_spill] sm:$0xff] %v10173_v13 }
 0x296   :  { %2559 = vmatpush1.bf16.msra.mxu0 %v10149_v15  ;;  %2602 = vmatpush1.bf16.msra.mxu1 %v10154_v14  ;;  %v10178_v15 = vld [vmem:[%s11888_s2 + $0x1e8] ss:$16 sps:$4 sm:$0xff]  }
 0x297   :  { %12178 = vst [vmem:[#allocation71_spill] sm:$0xff] %v10178_v15  ;;  %2560 = vmatprep.subr.bf16.mxu0 %v10163_v17  ;;  %2603 = vmatprep.subr.bf16.mxu1 %v10168_v12 }
 0x29a   :  { %2561 = vmatpush1.bf16.msra.mxu0 %v10173_v13  ;;  %2604 = vmatpush1.bf16.msra.mxu1 %v10178_v15 }
 0x29b   :  { %2877 = vmatprep.subr.bf16.mxu0 %v9555_v59  ;;  %2920 = vmatprep.subr.bf16.mxu1 %v9560_v60 }
 0x310   :  { %v1691_v14 = vpop.f32.mrb[12].mxu0  ;;  %v1734_v11 = vpop.f32.mrb[12].mxu1 }
 0x311   :  { %v1692_v10 = vadd.f32 %v1691_v14, %v9567_v3  ;;  %v1693_v39 = vpop.f32.mrb[13].mxu0  ;;  %v1736_v8 = vpop.f32.mrb[13].mxu1  ;;  %v1735_v60 = vadd.f32 %v1734_v11, %v9572_v9 }
 0x312   :  { %v1694_v7 = vadd.f32 %v1693_v39, %v9569_v5  ;;  %v1695_v6 = vpop.f32.mrb[14].mxu0  ;;  %v1738_v17 = vpop.f32.mrb[14].mxu1  ;;  %v1737_v39 = vadd.f32 %v1736_v8, %v9578_v25 }
 0x313   :  { %v1743_v2 = vmul.f32 0.5, %v1692_v10  ;;  %v1696_v12 = vadd.f32 %v1695_v6, %v9567_v3  ;;  %v1697_v13 = vpop.f32.mrb[15].mxu0  ;;  %v1740_v0 = vpop.f32.mrb[15].mxu1  ;;  %v1739_v61 = vadd.f32 %v1738_v17, %v9572_v9 }
 0x314   :  { %v1751_v15 = vmul.f32 0.5, %v1694_v7  ;;  %v1698_v59 = vadd.f32 %v1697_v13, %v9569_v5  ;;  %v1741_v6 = vadd.f32 %v1740_v0, %v9578_v25  ;;  %v1761_v13 = vmul.f32 0.5, %v1737_v39 }
 0x315   :  { %8565 = vtanh.f32 %v1743_v2  ;;  %v1744_v63 = vmul.f32 0.5, %v1696_v12 }
 0x316   :  { %8567 = vtanh.f32 %v1751_v15  ;;  %v1752_v14 = vmul.f32 0.5, %v1698_v59  ;;  %v1762_v5 = vmul.f32 0.5, %v1741_v6 }
 0x317   :  { %8569 = vtanh.f32 %v1744_v63 }
 0x318   :  { %8571 = vtanh.f32 %v1735_v60 }
 0x319   :  { %8573 = vtanh.f32 %v1752_v14 }
 0x31a   :  { %8575 = vtanh.f32 %v1739_v61 }
 0x31b   :  { %8577 = vtanh.f32 %v1761_v13 }
 0x31c   :  { %8579 = vtanh.f32 %v1762_v5 }
 0x31f   :  { %v8566_v10 = vpop.eup %8565 }
 0x320   :  { %v8568_v7 = vpop.eup %8567  ;;  %v1747_v3 = vmul.f32 0.5, %v8566_v10 }
 0x321   :  { %v1755_v2 = vmul.f32 0.5, %v8568_v7  ;;  %v8570_v11 = vpop.eup %8569 }
 0x322   :  { %v1749_v12 = vadd.f32 0.5, %v1747_v3  ;;  %v8572_v15 = vpop.eup %8571  ;;  %v1748_v63 = vmul.f32 0.5, %v8570_v11  ;;  %v7240_v3 = vld [vmem:[%s11889_s0 + $0x40] sm:$0xff] }
 0x323   :  { %v1757_v59 = vadd.f32 0.5, %v1755_v2  ;;  %v8574_v58 = vpop.eup %8573  ;;  %v1801_v5 = vunpack.c.l.bf16 %v7240_v3  ;;  %v1802_v13 = vunpack.c.h.bf16 %v7240_v3 }
 0x324   :  { %v1773_v17 = vmul.f32 %v8572_v15, %v1749_v12  ;;  %v1750_v8 = vadd.f32 0.5, %v1748_v63  ;;  %v1756_v61 = vmul.f32 0.5, %v8574_v58  ;;  %v8576_v0 = vpop.eup %8575 }
 0x325   :  { %v1771_v60 = vmul.f32 %v1757_v59, %v9583_v56  ;;  %v7242_v56 = vld [vmem:[%s11889_s0 + $0x50] sm:$0xff]  ;;  %v8578_v58 = vpop.eup %8577 }
 0x326   :  { %v1758_v10 = vadd.f32 0.5, %v1756_v61  ;;  %v1774_v39 = vmul.f32 %v8576_v0, %v1750_v8  ;;  %v8580_v2 = vpop.eup %8579  ;;  %v1805_v11 = vunpack.c.l.bf16 %v7242_v56  ;;  %v1806_v59 = vunpack.c.h.bf16 %v7242_v56  ;;  %v7243_v61 = vld [vmem:[%s11889_s0 + $0x58] sm:$0xff] }
 0x327   :  { %v10195_v14 = vadd.f32 %v1773_v17, %v1771_v60  ;;  %v1765_v0 = vmul.f32 0.5, %v8578_v58  ;;  %v1807_v37 = vunpack.c.l.bf16 %v7243_v61 }
 0x328   :  { %v1772_v6 = vmul.f32 %v1758_v10, %v9589_v33  ;;  %v7241_v33 = vld [vmem:[%s11889_s0 + $0x48] sm:$0xff]  ;;  %v1766_v10 = vmul.f32 0.5, %v8580_v2 }
 0x329   :  { %12179 = vst [vmem:[#allocation72_spill] sm:$0xff] %v10195_v14  ;;  %8581 = vtanh.f32 %v10195_v14  ;;  %v1803_v17 = vunpack.c.l.bf16 %v7241_v33  ;;  %v1767_v55 = vadd.f32 0.5, %v1765_v0  ;;  %v1804_v2 = vunpack.c.h.bf16 %v7241_v33 }
 0x32a   :  { %v10202_v7 = vadd.f32 %v1774_v39, %v1772_v6  ;;  %v1768_v45 = vadd.f32 0.5, %v1766_v10 }
 0x32c   :  { %12180 = vst [vmem:[#allocation73_spill] sm:$0xff] %v10202_v7  ;;  %8583 = vtanh.f32 %v10202_v7 }
 0x330   :  { %v2038_v12 = vpop.f32.mrb[16].mxu0  ;;  %v2081_v15 = vpop.f32.mrb[16].mxu1 }
 0x331   :  { %v2090_v63 = vadd.f32 %v2038_v12, %v1801_v5  ;;  %v2040_v60 = vpop.f32.mrb[17].mxu0  ;;  %v2083_v8 = vpop.f32.mrb[17].mxu1  ;;  %v2092_v12 = vadd.f32 %v2081_v15, %v1803_v17 }
 0x332   :  { %v2091_v39 = vadd.f32 %v2040_v60, %v1802_v13  ;;  %v2042_v6 = vpop.f32.mrb[18].mxu0  ;;  %v2085_v7 = vpop.f32.mrb[18].mxu1 }
 0x333   :  { %v2098_v14 = vmul.f32 0.5, %v2090_v63  ;;  %v2094_v3 = vadd.f32 %v2042_v6, %v1805_v11  ;;  %v2044_v25 = vpop.f32.mrb[19].mxu0  ;;  %v2087_v9 = vpop.f32.mrb[19].mxu1  ;;  %v2096_v13 = vadd.f32 %v2085_v7, %v1807_v37  ;;  %v1808_v11 = vunpack.c.h.bf16 %v7243_v61 }
 0x334   :  { %v2106_v57 = vmul.f32 0.5, %v2091_v39  ;;  %v2095_v56 = vadd.f32 %v2044_v25, %v1806_v59  ;;  %v8582_v5 = vpop.eup %8581  ;;  %v2093_v6 = vadd.f32 %v2083_v8, %v1804_v2 }
 0x335   :  { %8585 = vtanh.f32 %v2098_v14  ;;  %v2099_v36 = vmul.f32 0.5, %v2094_v3  ;;  %v1781_v60 = vmul.f32 %v8582_v5, %v1767_v55  ;;  %v2097_v25 = vadd.f32 %v2087_v9, %v1808_v11 }
 0x336   :  { %8587 = vtanh.f32 %v2106_v57  ;;  %v2107_v34 = vmul.f32 0.5, %v2095_v56  ;;  %v8584_v58 = vpop.eup %8583 }
 0x337   :  { %8589 = vtanh.f32 %v2099_v36  ;;  %v1782_v63 = vmul.f32 %v8584_v58, %v1768_v45  ;;  %v2116_v36 = vmul.f32 0.5, %v2093_v6  ;;  %v2117_v55 = vmul.f32 0.5, %v2097_v25 }
 0x338   :  { %8591 = vtanh.f32 %v2092_v12 }
 0x339   :  { %8593 = vtanh.f32 %v2107_v34  ;;  %v7888_v39 = vpack.c.bf16 %v1782_v63, %v1781_v60 }
 0x33a   :  { %8595 = vtanh.f32 %v2096_v13 }
 0x33b   :  { %7920 = vst [vmem:[%s11891_s4 + $0x8] sm:$0xff] %v7888_v39   ;;  %2562 = vmatprep.mubr.bf16.mxu0 %v7888_v39  ;;  %2605 = vmatprep.mubr.bf16.mxu1 %v7888_v39  ;;  %8597 = vtanh.f32 %v2116_v36  ;;  %v12214_v36 = vld [vmem:[#allocation42_spill] sm:$0xff] }
 0x33c   :  { %8599 = vtanh.f32 %v2117_v55  ;;  %v12216_v55 = vld [vmem:[#allocation44_spill] sm:$0xff] }
 0x33f   :  { %v8586_v57 = vpop.eup %8585 }
 0x340   :  { %v8588_v14 = vpop.eup %8587  ;;  %v2102_v33 = vmul.f32 0.5, %v8586_v57 }
 0x341   :  { %v2110_v37 = vmul.f32 0.5, %v8588_v14  ;;  %v8590_v45 = vpop.eup %8589 }
 0x342   :  { %v2104_v7 = vadd.f32 0.5, %v2102_v33  ;;  %v8592_v15 = vpop.eup %8591  ;;  %v2103_v59 = vmul.f32 0.5, %v8590_v45  ;;  %v12213_v33 = vld [vmem:[#allocation41_spill] sm:$0xff] }
 0x343   :  { %v2112_v34 = vadd.f32 0.5, %v2110_v37  ;;  %v8594_v17 = vpop.eup %8593  ;;  %v12215_v37 = vld [vmem:[#allocation43_spill] sm:$0xff]  ;;  %v12217_v45 = vld [vmem:[#allocation45_spill] sm:$0xff] }
 0x344   :  { %v2128_v8 = vmul.f32 %v8592_v15, %v2104_v7  ;;  %v2105_v0 = vadd.f32 0.5, %v2103_v59  ;;  %v2111_v10 = vmul.f32 0.5, %v8594_v17  ;;  %v8596_v9 = vpop.eup %8595  ;;  %v12218_v7 = vld [vmem:[#allocation46_spill] sm:$0xff]  ;;  %v12219_v15 = vld [vmem:[#allocation47_spill] sm:$0xff]  ;;  %v12221_v59 = vld [vmem:[#allocation49_spill] sm:$0xff] }
 0x345   :  { %v2126_v61 = vmul.f32 %v2112_v34, %v9605_v62  ;;  %v8598_v2 = vpop.eup %8597  ;;  %v12220_v34 = vld [vmem:[#allocation48_spill] sm:$0xff]  ;;  %v12222_v17 = vld [vmem:[#allocation50_spill] sm:$0xff] }
 0x346   :  { %v2113_v56 = vadd.f32 0.5, %v2111_v10  ;;  %v2129_v5 = vmul.f32 %v8596_v9, %v2105_v0  ;;  %v8600_v13 = vpop.eup %8599  ;;  %v2120_v60 = vmul.f32 0.5, %v8598_v2  ;;  %v12225_v0 = vld [vmem:[#allocation53_spill] sm:$0xff]  ;;  %v12226_v10 = vld [vmem:[#allocation54_spill] sm:$0xff]  ;;  %v12227_v9 = vld [vmem:[#allocation55_spill] sm:$0xff] }
 0x347   :  { %v10218_v3 = vadd.f32 %v2128_v8, %v2126_v61  ;;  %v2121_v62 = vmul.f32 0.5, %v8600_v13  ;;  %v12223_v8 = vld [vmem:[#allocation51_spill] sm:$0xff]  ;;  %v12224_v61 = vld [vmem:[#allocation52_spill] sm:$0xff] }
 0x348   :  { %v2127_v12 = vmul.f32 %v2113_v56, %v9609_v4  ;;  %v2122_v11 = vadd.f32 0.5, %v2120_v60  ;;  %v12181_v4 = vld [vmem:[#allocation9_spill] sm:$0xff]  ;;  %v12228_v56 = vld [vmem:[#allocation56_spill] sm:$0xff]  ;;  %v12231_v2 = vld [vmem:[#allocation59_spill] sm:$0xff] }
 0x349   :  { %8601 = vtanh.f32 %v10218_v3  ;;  %v2123_v39 = vadd.f32 0.5, %v2121_v62  ;;  %v12232_v13 = vld [vmem:[#allocation60_spill] sm:$0xff]  ;;  %v12233_v60 = vld [vmem:[#allocation61_spill] sm:$0xff]  ;;  %v12234_v62 = vld [vmem:[#allocation62_spill] sm:$0xff] }
 0x34a   :  { %v10222_v58 = vadd.f32 %v2129_v5, %v2127_v12  ;;  %v12229_v5 = vld [vmem:[#allocation57_spill] sm:$0xff]  ;;  %v12230_v12 = vld [vmem:[#allocation58_spill] sm:$0xff] }
 0x34c   :  { %8603 = vtanh.f32 %v10222_v58 }
 0x353   :  { %v8602_v63 = vpop.eup %8601 }
 0x354   :  { %v2136_v25 = vmul.f32 %v8602_v63, %v2122_v11  ;;  %v12235_v63 = vld [vmem:[#allocation63_spill] sm:$0xff]  ;;  %v12236_v11 = vld [vmem:[#allocation64_spill] sm:$0xff] }
 0x356   :  { %v8604_v6 = vpop.eup %8603 }
 0x357   :  { %v2137_v57 = vmul.f32 %v8604_v6, %v2123_v39  ;;  %v12237_v39 = vld [vmem:[#allocation65_spill] sm:$0xff]  ;;  %v12238_v6 = vld [vmem:[#allocation66_spill] sm:$0xff] }
 0x359   :  { %v2144_v14 = vpack.c.bf16 %v2137_v57, %v2136_v25  ;;  %v12239_v25 = vld [vmem:[#allocation67_spill] sm:$0xff]  ;;  %v12240_v57 = vld [vmem:[#allocation68_spill] sm:$0xff] }
 0x35b   :  { %2563 = vmatmul.mubr.bf16.vlgmr.msra.gmra.mrb[20].mxu0 %v2144_v14  ;;  %2606 = vmatmul.mubr.bf16.vlgmr.msra.gmra.mrb[20].mxu1 %v2144_v14 }
 0x35c   :  { %2878 = vmatpush1.bf16.msra.mxu0 %v9615_v43  ;;  %2921 = vmatpush1.bf16.msra.mxu1 %v9620_v16  ;;  %v12182_v43 = vld [vmem:[#allocation10_spill] sm:$0xff]  ;;  %v12183_v16 = vld [vmem:[#allocation11_spill] sm:$0xff] }
 0x35d   :  { %2879 = vmatprep.subr.bf16.mxu0 %v9627_v18  ;;  %2922 = vmatprep.subr.bf16.mxu1 %v9632_v19  ;;  %v12184_v18 = vld [vmem:[#allocation12_spill] sm:$0xff]  ;;  %v12185_v19 = vld [vmem:[#allocation13_spill] sm:$0xff] }
 0x35e   :  { %2909 = vmatprep.mubr.bf16.mxu0 %v12109_v1  ;;  %2952 = vmatprep.mubr.bf16.mxu1 %v12109_v1 }
 0x360   :  { %2880 = vmatpush1.bf16.msra.mxu0 %v9641_v20  ;;  %2923 = vmatpush1.bf16.msra.mxu1 %v9646_v21  ;;  %v12186_v20 = vld [vmem:[#allocation14_spill] sm:$0xff]  ;;  %v12187_v21 = vld [vmem:[#allocation15_spill] sm:$0xff] }
 0x361   :  { %2881 = vmatprep.subr.bf16.mxu0 %v9653_v22  ;;  %2924 = vmatprep.subr.bf16.mxu1 %v9658_v23  ;;  %v12188_v22 = vld [vmem:[#allocation16_spill] sm:$0xff]  ;;  %v12189_v23 = vld [vmem:[#allocation17_spill] sm:$0xff] }
 0x364   :  { %2882 = vmatpush1.bf16.msra.mxu0 %v9667_v24  ;;  %2925 = vmatpush1.bf16.msra.mxu1 %v9672_v26  ;;  %v12190_v24 = vld [vmem:[#allocation18_spill] sm:$0xff]  ;;  %v12191_v26 = vld [vmem:[#allocation19_spill] sm:$0xff] }
 0x365   :  { %2883 = vmatprep.subr.bf16.mxu0 %v9679_v27  ;;  %2926 = vmatprep.subr.bf16.mxu1 %v9684_v28  ;;  %v12192_v27 = vld [vmem:[#allocation20_spill] sm:$0xff]  ;;  %v12193_v28 = vld [vmem:[#allocation21_spill] sm:$0xff] }
 0x368   :  { %2884 = vmatpush1.bf16.msra.mxu0 %v9691_v29  ;;  %2927 = vmatpush1.bf16.msra.mxu1 %v9696_v30  ;;  %v12194_v29 = vld [vmem:[#allocation22_spill] sm:$0xff]  ;;  %v12195_v30 = vld [vmem:[#allocation23_spill] sm:$0xff] }
 0x369   :  { %2885 = vmatprep.subr.bf16.mxu0 %v9703_v31  ;;  %2928 = vmatprep.subr.bf16.mxu1 %v9708_v32  ;;  %v12196_v31 = vld [vmem:[#allocation24_spill] sm:$0xff]  ;;  %v12197_v32 = vld [vmem:[#allocation25_spill] sm:$0xff] }
 0x36c   :  { %2886 = vmatpush1.bf16.msra.mxu0 %v9715_v38  ;;  %2929 = vmatpush1.bf16.msra.mxu1 %v9720_v40  ;;  %v12198_v38 = vld [vmem:[#allocation26_spill] sm:$0xff]  ;;  %v12199_v40 = vld [vmem:[#allocation27_spill] sm:$0xff] }
 0x36d   :  { %2887 = vmatprep.subr.bf16.mxu0 %v9727_v42  ;;  %2930 = vmatprep.subr.bf16.mxu1 %v9732_v46  ;;  %v12200_v42 = vld [vmem:[#allocation29_spill] sm:$0xff]  ;;  %v12201_v46 = vld [vmem:[#allocation31_spill] sm:$0xff] }
 0x370   :  { %2888 = vmatpush1.bf16.msra.mxu0 %v9739_v47  ;;  %2931 = vmatpush1.bf16.msra.mxu1 %v9744_v53  ;;  %v12202_v47 = vld [vmem:[#allocation28_spill] sm:$0xff]  ;;  %v12203_v53 = vld [vmem:[#allocation30_spill] sm:$0xff] }
 0x371   :  { %2889 = vmatprep.subr.bf16.mxu0 %v9751_v49  ;;  %2932 = vmatprep.subr.bf16.mxu1 %v9756_v44  ;;  %v12204_v49 = vld [vmem:[#allocation32_spill] sm:$0xff]  ;;  %v12205_v44 = vld [vmem:[#allocation33_spill] sm:$0xff] }
 0x374   :  { %2890 = vmatpush1.bf16.msra.mxu0 %v9763_v50  ;;  %2933 = vmatpush1.bf16.msra.mxu1 %v9768_v51  ;;  %v12206_v50 = vld [vmem:[#allocation34_spill] sm:$0xff]  ;;  %v12207_v51 = vld [vmem:[#allocation35_spill] sm:$0xff] }
 0x375   :  { %2891 = vmatprep.subr.bf16.mxu0 %v9775_v52  ;;  %2934 = vmatprep.subr.bf16.mxu1 %v9780_v48  ;;  %v12208_v52 = vld [vmem:[#allocation36_spill] sm:$0xff]  ;;  %v12209_v48 = vld [vmem:[#allocation37_spill] sm:$0xff] }
 0x378   :  { %2892 = vmatpush1.bf16.msra.mxu0 %v9787_v54  ;;  %2935 = vmatpush1.bf16.msra.mxu1 %v9792_v41  ;;  %v12210_v54 = vld [vmem:[#allocation38_spill] sm:$0xff]  ;;  %v12211_v41 = vld [vmem:[#allocation39_spill] sm:$0xff] }
 0x379   :  { %3403 = vmatprep.subr.bf16.mxu0 %v9803_v35  ;;  %3446 = vmatprep.subr.bf16.mxu1 %v12181_v4  ;;  %v12212_v35 = vld [vmem:[#allocation40_spill] sm:$0xff]  ;;  %v12242_v4 = vld [vmem:[#allocation70_spill] sm:$0xff] }
 0x37b   :  { %2910 = vmatmul.mubr.bf16.vlgmr.msra.gmra.mrb[24].mxu0 %v2144_v14  ;;  %2953 = vmatmul.mubr.bf16.vlgmr.msra.gmra.mrb[24].mxu1 %v2144_v14  ;;  %v12241_v14 = vld [vmem:[#allocation69_spill] sm:$0xff] }
 0x37c   :  { %3404 = vmatpush1.bf16.msra.mxu0 %v12182_v43  ;;  %3447 = vmatpush1.bf16.msra.mxu1 %v12183_v16  ;;  %v12243_v43 = vld [vmem:[#allocation71_spill] sm:$0xff] }
 0x37d   :  { %3405 = vmatprep.subr.bf16.mxu0 %v12184_v18  ;;  %3448 = vmatprep.subr.bf16.mxu1 %v12185_v19  ;;  %v10324_v16 = vld [vmem:[%s11887_s1 + $0x4] ss:$16 sps:$4 sm:$0xff]   ;;  %v10329_v18 = vld [vmem:[%s11887_s1 + $0xc] ss:$16 sps:$4 sm:$0xff]  }
 0x380   :  { %3406 = vmatpush1.bf16.msra.mxu0 %v12186_v20  ;;  %3449 = vmatpush1.bf16.msra.mxu1 %v12187_v21  ;;  %v12244_v21 = vld [vmem:[#allocation5_spill] sm:$0xff] }
 0x381   :  { %3407 = vmatprep.subr.bf16.mxu0 %v12188_v22  ;;  %3450 = vmatprep.subr.bf16.mxu1 %v12189_v23 }
 0x384   :  { %3408 = vmatpush1.bf16.msra.mxu0 %v12190_v24  ;;  %3451 = vmatpush1.bf16.msra.mxu1 %v12191_v26  ;;  %v12245_v26 = vld [vmem:[#allocation6_spill] sm:$0xff] }
 0x385   :  { %3409 = vmatprep.subr.bf16.mxu0 %v12192_v27  ;;  %3452 = vmatprep.subr.bf16.mxu1 %v12193_v28 }
 0x388   :  { %3410 = vmatpush1.bf16.msra.mxu0 %v12194_v29  ;;  %3453 = vmatpush1.bf16.msra.mxu1 %v12195_v30 }
 0x389   :  { %3411 = vmatprep.subr.bf16.mxu0 %v12196_v31  ;;  %3454 = vmatprep.subr.bf16.mxu1 %v12197_v32 }
 0x38c   :  { %3412 = vmatpush1.bf16.msra.mxu0 %v12198_v38  ;;  %3455 = vmatpush1.bf16.msra.mxu1 %v12199_v40 }
 0x38d   :  { %3413 = vmatprep.subr.bf16.mxu0 %v12200_v42  ;;  %3456 = vmatprep.subr.bf16.mxu1 %v12201_v46  ;;  %v12246_v46 = vld [vmem:[#allocation7_spill] sm:$0xff] }
 0x390   :  { %3414 = vmatpush1.bf16.msra.mxu0 %v12202_v47  ;;  %3457 = vmatpush1.bf16.msra.mxu1 %v12203_v53 }
 0x391   :  { %3415 = vmatprep.subr.bf16.mxu0 %v12204_v49  ;;  %3458 = vmatprep.subr.bf16.mxu1 %v12205_v44 }
 0x394   :  { %3416 = vmatpush1.bf16.msra.mxu0 %v12206_v50  ;;  %3459 = vmatpush1.bf16.msra.mxu1 %v12207_v51  ;;  %v12247_v50 = vld [vmem:[#allocation8_spill] sm:$0xff] }
 0x395   :  { %3417 = vmatprep.subr.bf16.mxu0 %v12208_v52  ;;  %3460 = vmatprep.subr.bf16.mxu1 %v12209_v48 }
 0x398   :  { %3418 = vmatpush1.bf16.msra.mxu0 %v12210_v54  ;;  %3461 = vmatpush1.bf16.msra.mxu1 %v12211_v41 }
 0x399   :  { %3419 = vmatprep.subr.bf16.mxu0 %v12212_v35  ;;  %3462 = vmatprep.subr.bf16.mxu1 %v12213_v33 }
 0x39c   :  { %3420 = vmatpush1.bf16.msra.mxu0 %v12214_v36  ;;  %3463 = vmatpush1.bf16.msra.mxu1 %v12215_v37 }
 0x39d   :  { %3421 = vmatprep.subr.bf16.mxu0 %v12216_v55  ;;  %3464 = vmatprep.subr.bf16.mxu1 %v12217_v45 }
 0x3a0   :  { %3422 = vmatpush1.bf16.msra.mxu0 %v12218_v7  ;;  %3465 = vmatpush1.bf16.msra.mxu1 %v12219_v15 }
 0x3a1   :  { %3423 = vmatprep.subr.bf16.mxu0 %v12220_v34  ;;  %3466 = vmatprep.subr.bf16.mxu1 %v12221_v59 }
 0x3a4   :  { %3424 = vmatpush1.bf16.msra.mxu0 %v12222_v17  ;;  %3467 = vmatpush1.bf16.msra.mxu1 %v12223_v8  ;;  %v12248_v17 = vld [vmem:[#allocation72_spill] sm:$0xff] }
 0x3a5   :  { %3425 = vmatprep.subr.bf16.mxu0 %v12224_v61  ;;  %3468 = vmatprep.subr.bf16.mxu1 %v12225_v0 }
 0x3a8   :  { %3426 = vmatpush1.bf16.msra.mxu0 %v12226_v10  ;;  %3469 = vmatpush1.bf16.msra.mxu1 %v12227_v9 }
 0x3a9   :  { %3427 = vmatprep.subr.bf16.mxu0 %v12228_v56  ;;  %3470 = vmatprep.subr.bf16.mxu1 %v12229_v5 }
 0x3ac   :  { %3428 = vmatpush1.bf16.msra.mxu0 %v12230_v12  ;;  %3471 = vmatpush1.bf16.msra.mxu1 %v12231_v2  ;;  %v12249_v12 = vld [vmem:[#allocation73_spill] sm:$0xff] }
 0x3ad   :  { %3429 = vmatprep.subr.bf16.mxu0 %v12232_v13  ;;  %3472 = vmatprep.subr.bf16.mxu1 %v12233_v60  ;;  %v7344_v13 = vld [vmem:[%s11889_s0 + $0x60] sm:$0xff] }
 0x3b0   :  { %3430 = vmatpush1.bf16.msra.mxu0 %v12234_v62  ;;  %3473 = vmatpush1.bf16.msra.mxu1 %v12235_v63  ;;  %v7346_v62 = vld [vmem:[%s11889_s0 + $0x70] sm:$0xff]  ;;  %v2674_v63 = vunpack.c.l.bf16 %v7344_v13 }
 0x3b1   :  { %3431 = vmatprep.subr.bf16.mxu0 %v12236_v11  ;;  %3474 = vmatprep.subr.bf16.mxu1 %v12237_v39  ;;  %v7345_v39 = vld [vmem:[%s11889_s0 + $0x68] sm:$0xff] }
 0x3b4   :  { %3432 = vmatpush1.bf16.msra.mxu0 %v12238_v6  ;;  %3475 = vmatpush1.bf16.msra.mxu1 %v12239_v25  ;;  %v2675_v6 = vunpack.c.h.bf16 %v7344_v13 }
 0x3b5   :  { %3433 = vmatprep.subr.bf16.mxu0 %v12240_v57  ;;  %3476 = vmatprep.subr.bf16.mxu1 %v12241_v14  ;;  %v2678_v57 = vunpack.c.l.bf16 %v7346_v62 }
 0x3b8   :  { %3434 = vmatpush1.bf16.msra.mxu0 %v12242_v4  ;;  %3477 = vmatpush1.bf16.msra.mxu1 %v12243_v43  ;;  %v2679_v43 = vunpack.c.h.bf16 %v7346_v62 }
 0x3b9   :  { %3750 = vmatprep.subr.bf16.mxu0 %v10324_v16  ;;  %3793 = vmatprep.subr.bf16.mxu1 %v10329_v18 }
 0x42e   :  { %v2564_v19 = vpop.f32.mrb[20].mxu0  ;;  %v2607_v20 = vpop.f32.mrb[20].mxu1 }
 0x42f   :  { %v2565_v22 = vadd.f32 %v2564_v19, %v12244_v21  ;;  %v2566_v23 = vpop.f32.mrb[21].mxu0  ;;  %v2609_v24 = vpop.f32.mrb[21].mxu1  ;;  %v2608_v47 = vadd.f32 %v2607_v20, %v12246_v46  ;;  %v2676_v20 = vunpack.c.l.bf16 %v7345_v39 }
 0x430   :  { %v2567_v27 = vadd.f32 %v2566_v23, %v12245_v26  ;;  %v2568_v28 = vpop.f32.mrb[22].mxu0  ;;  %v2611_v29 = vpop.f32.mrb[22].mxu1  ;;  %v2610_v51 = vadd.f32 %v2609_v24, %v12247_v50  ;;  %v7347_v24 = vld [vmem:[%s11889_s0 + $0x78] sm:$0xff] }
 0x431   :  { %v2616_v30 = vmul.f32 0.5, %v2565_v22  ;;  %v2569_v31 = vadd.f32 %v2568_v28, %v12244_v21  ;;  %v2570_v32 = vpop.f32.mrb[23].mxu0  ;;  %v2613_v38 = vpop.f32.mrb[23].mxu1  ;;  %v2612_v44 = vadd.f32 %v2611_v29, %v12246_v46 }
 0x432   :  { %v2624_v40 = vmul.f32 0.5, %v2567_v27  ;;  %v2571_v42 = vadd.f32 %v2570_v32, %v12245_v26  ;;  %v2614_v52 = vadd.f32 %v2613_v38, %v12247_v50  ;;  %v2634_v35 = vmul.f32 0.5, %v2610_v51 }
 0x433   :  { %8605 = vtanh.f32 %v2616_v30  ;;  %v2617_v53 = vmul.f32 0.5, %v2569_v31 }
 0x434   :  { %8607 = vtanh.f32 %v2624_v40  ;;  %v2625_v49 = vmul.f32 0.5, %v2571_v42  ;;  %v2635_v36 = vmul.f32 0.5, %v2614_v52 }
 0x435   :  { %8609 = vtanh.f32 %v2617_v53  ;;  %v2680_v53 = vunpack.c.l.bf16 %v7347_v24 }
 0x436   :  { %8611 = vtanh.f32 %v2608_v47 }
 0x437   :  { %8613 = vtanh.f32 %v2625_v49 }
 0x438   :  { %8615 = vtanh.f32 %v2612_v44 }
 0x439   :  { %8617 = vtanh.f32 %v2634_v35 }
 0x43a   :  { %8619 = vtanh.f32 %v2635_v36 }
 0x43d   :  { %v8606_v48 = vpop.eup %8605 }
 0x43e   :  { %v8608_v54 = vpop.eup %8607  ;;  %v2620_v41 = vmul.f32 0.5, %v8606_v48 }
 0x43f   :  { %v2628_v33 = vmul.f32 0.5, %v8608_v54  ;;  %v8610_v37 = vpop.eup %8609 }
 0x440   :  { %v2622_v55 = vadd.f32 0.5, %v2620_v41  ;;  %v8612_v45 = vpop.eup %8611  ;;  %v2621_v15 = vmul.f32 0.5, %v8610_v37 }
 0x441   :  { %v2630_v7 = vadd.f32 0.5, %v2628_v33  ;;  %v8614_v34 = vpop.eup %8613  ;;  %v2677_v33 = vunpack.c.h.bf16 %v7345_v39 }
 0x442   :  { %v2646_v59 = vmul.f32 %v8612_v45, %v2622_v55  ;;  %v2623_v61 = vadd.f32 0.5, %v2621_v15  ;;  %v2629_v0 = vmul.f32 0.5, %v8614_v34  ;;  %v8616_v10 = vpop.eup %8615  ;;  %v2681_v45 = vunpack.c.h.bf16 %v7347_v24 }
 0x443   :  { %v2644_v8 = vmul.f32 %v2630_v7, %v12248_v17  ;;  %v8618_v11 = vpop.eup %8617 }
 0x444   :  { %v2631_v56 = vadd.f32 0.5, %v2629_v0  ;;  %v2647_v5 = vmul.f32 %v8616_v10, %v2623_v61  ;;  %v8620_v25 = vpop.eup %8619  ;;  %v2638_v27 = vmul.f32 0.5, %v8618_v11 }
 0x445   :  { %v10342_v9 = vadd.f32 %v2646_v59, %v2644_v8  ;;  %v2639_v28 = vmul.f32 0.5, %v8620_v25 }
 0x446   :  { %v2645_v2 = vmul.f32 %v2631_v56, %v12249_v12  ;;  %v2640_v48 = vadd.f32 0.5, %v2638_v27 }
 0x447   :  { %8621 = vtanh.f32 %v10342_v9  ;;  %v2641_v54 = vadd.f32 0.5, %v2639_v28 }
 0x448   :  { %v10349_v60 = vadd.f32 %v2647_v5, %v2645_v2 }
 0x44a   :  { %8623 = vtanh.f32 %v10349_v60 }
 0x44e   :  { %v2911_v14 = vpop.f32.mrb[24].mxu0  ;;  %v2954_v4 = vpop.f32.mrb[24].mxu1 }
 0x44f   :  { %v2963_v19 = vadd.f32 %v2911_v14, %v2674_v63  ;;  %v2913_v22 = vpop.f32.mrb[25].mxu0  ;;  %v2956_v23 = vpop.f32.mrb[25].mxu1  ;;  %v2965_v51 = vadd.f32 %v2954_v4, %v2676_v20 }
 0x450   :  { %v2964_v29 = vadd.f32 %v2913_v22, %v2675_v6  ;;  %v2915_v30 = vpop.f32.mrb[26].mxu0  ;;  %v2958_v31 = vpop.f32.mrb[26].mxu1  ;;  %v2966_v15 = vadd.f32 %v2956_v23, %v2677_v33  ;;  %v10463_v33 = vld [vmem:[%s11887_s1 + $0x84] ss:$16 sps:$4 sm:$0xff]  }
 0x451   :  { %v2971_v32 = vmul.f32 0.5, %v2963_v19  ;;  %v2967_v38 = vadd.f32 %v2915_v30, %v2678_v57  ;;  %v2917_v40 = vpop.f32.mrb[27].mxu0  ;;  %v2960_v42 = vpop.f32.mrb[27].mxu1  ;;  %v2969_v36 = vadd.f32 %v2958_v31, %v2680_v53  ;;  %v10406_v53 = vld [vmem:[%s11887_s1 + $0x28] ss:$16 sps:$4 sm:$0xff]  }
 0x452   :  { %v2979_v47 = vmul.f32 0.5, %v2964_v29  ;;  %v2968_v49 = vadd.f32 %v2917_v40, %v2679_v43  ;;  %v8622_v44 = vpop.eup %8621  ;;  %v2970_v34 = vadd.f32 %v2960_v42, %v2681_v45  ;;  %v2989_v61 = vmul.f32 0.5, %v2966_v15  ;;  %v10387_v40 = vld [vmem:[%s11887_s1 + $0x24] ss:$16 sps:$4 sm:$0xff]   ;;  %v10392_v42 = vld [vmem:[%s11887_s1 + $0x2c] ss:$16 sps:$4 sm:$0xff]  }
 0x453   :  { %8625 = vtanh.f32 %v2971_v32  ;;  %v2972_v52 = vmul.f32 0.5, %v2967_v38  ;;  %v2654_v37 = vmul.f32 %v8622_v44, %v2640_v48  ;;  %v10380_v32 = vld [vmem:[%s11887_s1 + $0x8] ss:$16 sps:$4 sm:$0xff]   ;;  %v10418_v44 = vld [vmem:[%s11887_s1 + $0x4c] ss:$16 sps:$4 sm:$0xff]  }
 0x454   :  { %8627 = vtanh.f32 %v2979_v47  ;;  %v2980_v41 = vmul.f32 0.5, %v2968_v49  ;;  %v8624_v35 = vpop.eup %8623  ;;  %v2990_v10 = vmul.f32 0.5, %v2970_v34  ;;  %v10401_v47 = vld [vmem:[%s11887_s1 + $0x20] ss:$16 sps:$4 sm:$0xff]   ;;  %v10413_v49 = vld [vmem:[%s11887_s1 + $0x44] ss:$16 sps:$4 sm:$0xff]  }
 0x455   :  { %8629 = vtanh.f32 %v2972_v52  ;;  %v2655_v55 = vmul.f32 %v8624_v35, %v2641_v54  ;;  %v10432_v52 = vld [vmem:[%s11887_s1 + $0x48] ss:$16 sps:$4 sm:$0xff]   ;;  %v10439_v48 = vld [vmem:[%s11887_s1 + $0x64] ss:$16 sps:$4 sm:$0xff]   ;;  %v10444_v54 = vld [vmem:[%s11887_s1 + $0x6c] ss:$16 sps:$4 sm:$0xff]  }
 0x456   :  { %8631 = vtanh.f32 %v2965_v51  ;;  %v10427_v51 = vld [vmem:[%s11887_s1 + $0x40] ss:$16 sps:$4 sm:$0xff]   ;;  %v10456_v35 = vld [vmem:[%s11887_s1 + $0x68] ss:$16 sps:$4 sm:$0xff]   ;;  %v10487_v45 = vld [vmem:[%s11887_s1 + $0xa4] ss:$16 sps:$4 sm:$0xff]  }
 0x457   :  { %8633 = vtanh.f32 %v2980_v41  ;;  %v7893_v7 = vpack.c.bf16 %v2655_v55, %v2654_v37  ;;  %v10451_v41 = vld [vmem:[%s11887_s1 + $0x60] ss:$16 sps:$4 sm:$0xff]   ;;  %v10480_v55 = vld [vmem:[%s11887_s1 + $0x88] ss:$16 sps:$4 sm:$0xff]  }
 0x458   :  { %8635 = vtanh.f32 %v2969_v36  ;;  %v10468_v36 = vld [vmem:[%s11887_s1 + $0x8c] ss:$16 sps:$4 sm:$0xff]   ;;  %v10475_v37 = vld [vmem:[%s11887_s1 + $0x80] ss:$16 sps:$4 sm:$0xff]   ;;  %v10504_v34 = vld [vmem:[%s11887_s1 + $0xa8] ss:$16 sps:$4 sm:$0xff]  }
 0x459   :  { %7921 = vst [vmem:[%s11891_s4 + $0x10] sm:$0xff] %v7893_v7   ;;  %3435 = vmatprep.mubr.bf16.mxu0 %v7893_v7  ;;  %3478 = vmatprep.mubr.bf16.mxu1 %v7893_v7  ;;  %8637 = vtanh.f32 %v2989_v61  ;;  %v10492_v7 = vld [vmem:[%s11887_s1 + $0xac] ss:$16 sps:$4 sm:$0xff]   ;;  %v10499_v15 = vld [vmem:[%s11887_s1 + $0xa0] ss:$16 sps:$4 sm:$0xff]  }
 0x45a   :  { %8639 = vtanh.f32 %v2990_v10  ;;  %v10528_v61 = vld [vmem:[%s11887_s1 + $0xc8] ss:$16 sps:$4 sm:$0xff]   ;;  %v10540_v10 = vld [vmem:[%s11887_s1 + $0xec] ss:$16 sps:$4 sm:$0xff]  }
 0x45d   :  { %v8626_v59 = vpop.eup %8625 }
 0x45e   :  { %v8628_v17 = vpop.eup %8627  ;;  %v2975_v8 = vmul.f32 0.5, %v8626_v59  ;;  %v10511_v59 = vld [vmem:[%s11887_s1 + $0xc4] ss:$16 sps:$4 sm:$0xff]  }
 0x45f   :  { %v2983_v0 = vmul.f32 0.5, %v8628_v17  ;;  %v8630_v56 = vpop.eup %8629  ;;  %v10516_v17 = vld [vmem:[%s11887_s1 + $0xcc] ss:$16 sps:$4 sm:$0xff]  }
 0x460   :  { %v2977_v5 = vadd.f32 0.5, %v2975_v8  ;;  %v8632_v12 = vpop.eup %8631  ;;  %v2976_v13 = vmul.f32 0.5, %v8630_v56  ;;  %v10523_v8 = vld [vmem:[%s11887_s1 + $0xc0] ss:$16 sps:$4 sm:$0xff]  }
 0x461   :  { %v2985_v2 = vadd.f32 0.5, %v2983_v0  ;;  %v8634_v62 = vpop.eup %8633  ;;  %v10535_v0 = vld [vmem:[%s11887_s1 + $0xe4] ss:$16 sps:$4 sm:$0xff]   ;;  %v10547_v56 = vld [vmem:[%s11887_s1 + $0xe0] ss:$16 sps:$4 sm:$0xff]  }
 0x462   :  { %v3001_v63 = vmul.f32 %v8632_v12, %v2977_v5  ;;  %v2978_v39 = vadd.f32 0.5, %v2976_v13  ;;  %v2984_v6 = vmul.f32 0.5, %v8634_v62  ;;  %v8636_v25 = vpop.eup %8635  ;;  %v10552_v5 = vld [vmem:[%s11887_s1 + $0xe8] ss:$16 sps:$4 sm:$0xff]   ;;  %v10563_v12 = vld [vmem:[%s11888_s2 + $0x4] ss:$16 sps:$4 sm:$0xff]  }
 0x463   :  { %v2999_v11 = vmul.f32 %v2985_v2, %v10218_v3  ;;  %v8638_v20 = vpop.eup %8637  ;;  %v10568_v2 = vld [vmem:[%s11888_s2 + $0xc] ss:$16 sps:$4 sm:$0xff]   ;;  %v10573_v13 = vld [vmem:[%s11888_s2] ss:$16 sps:$4 sm:$0xff]   ;;  %v10578_v62 = vld [vmem:[%s11888_s2 + $0x8] ss:$16 sps:$4 sm:$0xff]  }
 0x464   :  { %v2986_v14 = vadd.f32 0.5, %v2984_v6  ;;  %v3002_v4 = vmul.f32 %v8636_v25, %v2978_v39  ;;  %v8640_v22 = vpop.eup %8639  ;;  %v2993_v23 = vmul.f32 0.5, %v8638_v20  ;;  %12250 = vst [vmem:[#allocation9_spill] sm:$0xff] %v10568_v2  ;;  %12251 = vst [vmem:[#allocation10_spill] sm:$0xff] %v10573_v13  ;;  %v10597_v39 = vld [vmem:[%s11888_s2 + $0x20] ss:$16 sps:$4 sm:$0xff]  }
 0x465   :  { %v10365_v57 = vadd.f32 %v3001_v63, %v2999_v11  ;;  %v2994_v3 = vmul.f32 0.5, %v8640_v22  ;;  %12252 = vst [vmem:[#allocation11_spill] sm:$0xff] %v10578_v62  ;;  %v10587_v63 = vld [vmem:[%s11888_s2 + $0x24] ss:$16 sps:$4 sm:$0xff]   ;;  %v10592_v11 = vld [vmem:[%s11888_s2 + $0x2c] ss:$16 sps:$4 sm:$0xff]  }
 0x466   :  { %v3000_v43 = vmul.f32 %v2986_v14, %v10222_v58  ;;  %v2995_v27 = vadd.f32 0.5, %v2993_v23  ;;  %v10375_v58 = vld [vmem:[%s11887_s1] ss:$16 sps:$4 sm:$0xff]   ;;  %12253 = vst [vmem:[#allocation12_spill] sm:$0xff] %v10587_v63  ;;  %12254 = vst [vmem:[#allocation13_spill] sm:$0xff] %v10592_v11 }
 0x467   :  { %8641 = vtanh.f32 %v10365_v57  ;;  %v2996_v28 = vadd.f32 0.5, %v2994_v3  ;;  %12255 = vst [vmem:[#allocation14_spill] sm:$0xff] %v10597_v39  ;;  %v10602_v6 = vld [vmem:[%s11888_s2 + $0x28] ss:$16 sps:$4 sm:$0xff]   ;;  %v10611_v25 = vld [vmem:[%s11888_s2 + $0x44] ss:$16 sps:$4 sm:$0xff]  }
 0x468   :  { %v10369_v19 = vadd.f32 %v3002_v4, %v3000_v43  ;;  %12256 = vst [vmem:[#allocation15_spill] sm:$0xff] %v10602_v6  ;;  %12257 = vst [vmem:[#allocation16_spill] sm:$0xff] %v10611_v25  ;;  %v10616_v14 = vld [vmem:[%s11888_s2 + $0x4c] ss:$16 sps:$4 sm:$0xff]   ;;  %v10621_v4 = vld [vmem:[%s11888_s2 + $0x40] ss:$16 sps:$4 sm:$0xff]  }
 0x469   :  { %12258 = vst [vmem:[#allocation17_spill] sm:$0xff] %v10616_v14  ;;  %12259 = vst [vmem:[#allocation18_spill] sm:$0xff] %v10621_v4  ;;  %v10626_v43 = vld [vmem:[%s11888_s2 + $0x48] ss:$16 sps:$4 sm:$0xff]   ;;  %v10635_v20 = vld [vmem:[%s11888_s2 + $0x64] ss:$16 sps:$4 sm:$0xff]  }
 0x46a   :  { %8643 = vtanh.f32 %v10369_v19  ;;  %12260 = vst [vmem:[#allocation19_spill] sm:$0xff] %v10626_v43  ;;  %12261 = vst [vmem:[#allocation20_spill] sm:$0xff] %v10635_v20  ;;  %v10640_v22 = vld [vmem:[%s11888_s2 + $0x6c] ss:$16 sps:$4 sm:$0xff]   ;;  %v10645_v23 = vld [vmem:[%s11888_s2 + $0x60] ss:$16 sps:$4 sm:$0xff]  }
 0x46b   :  { %12262 = vst [vmem:[#allocation21_spill] sm:$0xff] %v10640_v22  ;;  %12263 = vst [vmem:[#allocation22_spill] sm:$0xff] %v10645_v23  ;;  %v10650_v3 = vld [vmem:[%s11888_s2 + $0x68] ss:$16 sps:$4 sm:$0xff]  }
 0x46c   :  { %12264 = vst [vmem:[#allocation23_spill] sm:$0xff] %v10650_v3 }
 0x471   :  { %v8642_v24 = vpop.eup %8641 }
 0x472   :  { %v3009_v30 = vmul.f32 %v8642_v24, %v2995_v27  ;;  %v10659_v24 = vld [vmem:[%s11888_s2 + $0x84] ss:$16 sps:$4 sm:$0xff]   ;;  %v10664_v27 = vld [vmem:[%s11888_s2 + $0x8c] ss:$16 sps:$4 sm:$0xff]  }
 0x473   :  { %12265 = vst [vmem:[#allocation24_spill] sm:$0xff] %v10659_v24  ;;  %12266 = vst [vmem:[#allocation25_spill] sm:$0xff] %v10664_v27 }
 0x474   :  { %v8644_v29 = vpop.eup %8643 }
 0x475   :  { %v3010_v31 = vmul.f32 %v8644_v29, %v2996_v28  ;;  %v10669_v28 = vld [vmem:[%s11888_s2 + $0x80] ss:$16 sps:$4 sm:$0xff]   ;;  %v10674_v29 = vld [vmem:[%s11888_s2 + $0x88] ss:$16 sps:$4 sm:$0xff]  }
 0x476   :  { %12267 = vst [vmem:[#allocation26_spill] sm:$0xff] %v10669_v28  ;;  %12268 = vst [vmem:[#allocation27_spill] sm:$0xff] %v10674_v29 }
 0x477   :  { %v10382_v38 = vpack.c.bf16 %v3010_v31, %v3009_v30  ;;  %v10683_v30 = vld [vmem:[%s11888_s2 + $0xa0] ss:$16 sps:$4 sm:$0xff]   ;;  %v10688_v31 = vld [vmem:[%s11888_s2 + $0xa4] ss:$16 sps:$4 sm:$0xff]  }
 0x478   :  { %12269 = vst [vmem:[#allocation29_spill] sm:$0xff] %v10683_v30  ;;  %12270 = vst [vmem:[#allocation31_spill] sm:$0xff] %v10688_v31 }
 0x479   :  { %3436 = vmatmul.mubr.bf16.vlgmr.msra.gmra.mrb[28].mxu0 %v10382_v38  ;;  %3479 = vmatmul.mubr.bf16.vlgmr.msra.gmra.mrb[28].mxu1 %v10382_v38 }
 0x47a   :  { %3751 = vmatpush1.bf16.msra.mxu0 %v10375_v58  ;;  %3794 = vmatpush1.bf16.msra.mxu1 %v10380_v32 }
 0x47b   :  { %3752 = vmatprep.subr.bf16.mxu0 %v10387_v40  ;;  %3795 = vmatprep.subr.bf16.mxu1 %v10392_v42 }
 0x47c   :  { %3782 = vmatprep.mubr.bf16.mxu0 %v12109_v1  ;;  %3825 = vmatprep.mubr.bf16.mxu1 %v12109_v1 }
 0x47e   :  { %3753 = vmatpush1.bf16.msra.mxu0 %v10401_v47  ;;  %3796 = vmatpush1.bf16.msra.mxu1 %v10406_v53 }
 0x47f   :  { %3754 = vmatprep.subr.bf16.mxu0 %v10413_v49  ;;  %3797 = vmatprep.subr.bf16.mxu1 %v10418_v44 }
 0x482   :  { %3755 = vmatpush1.bf16.msra.mxu0 %v10427_v51  ;;  %3798 = vmatpush1.bf16.msra.mxu1 %v10432_v52 }
 0x483   :  { %3756 = vmatprep.subr.bf16.mxu0 %v10439_v48  ;;  %3799 = vmatprep.subr.bf16.mxu1 %v10444_v54 }
 0x486   :  { %3757 = vmatpush1.bf16.msra.mxu0 %v10451_v41  ;;  %3800 = vmatpush1.bf16.msra.mxu1 %v10456_v35 }
 0x487   :  { %3758 = vmatprep.subr.bf16.mxu0 %v10463_v33  ;;  %3801 = vmatprep.subr.bf16.mxu1 %v10468_v36 }
 0x48a   :  { %3759 = vmatpush1.bf16.msra.mxu0 %v10475_v37  ;;  %3802 = vmatpush1.bf16.msra.mxu1 %v10480_v55 }
 0x48b   :  { %3760 = vmatprep.subr.bf16.mxu0 %v10487_v45  ;;  %3803 = vmatprep.subr.bf16.mxu1 %v10492_v7 }
 0x48e   :  { %3761 = vmatpush1.bf16.msra.mxu0 %v10499_v15  ;;  %3804 = vmatpush1.bf16.msra.mxu1 %v10504_v34 }
 0x48f   :  { %3762 = vmatprep.subr.bf16.mxu0 %v10511_v59  ;;  %3805 = vmatprep.subr.bf16.mxu1 %v10516_v17 }
 0x492   :  { %3763 = vmatpush1.bf16.msra.mxu0 %v10523_v8  ;;  %3806 = vmatpush1.bf16.msra.mxu1 %v10528_v61 }
 0x493   :  { %3764 = vmatprep.subr.bf16.mxu0 %v10535_v0  ;;  %3807 = vmatprep.subr.bf16.mxu1 %v10540_v10 }
 0x496   :  { %3765 = vmatpush1.bf16.msra.mxu0 %v10547_v56  ;;  %3808 = vmatpush1.bf16.msra.mxu1 %v10552_v5 }
 0x497   :  { %4276 = vmatprep.subr.bf16.mxu0 %v10563_v12  ;;  %4319 = vmatprep.subr.bf16.mxu1 %v10568_v2 }
 0x499   :  { %3783 = vmatmul.mubr.bf16.vlgmr.msra.gmra.mrb[32].mxu0 %v10382_v38  ;;  %3826 = vmatmul.mubr.bf16.vlgmr.msra.gmra.mrb[32].mxu1 %v10382_v38  ;;  %v10693_v38 = vld [vmem:[%s11888_s2 + $0xa8] ss:$16 sps:$4 sm:$0xff]  }
 0x49a   :  { %4277 = vmatpush1.bf16.msra.mxu0 %v10573_v13  ;;  %4320 = vmatpush1.bf16.msra.mxu1 %v10578_v62  ;;  %12271 = vst [vmem:[#allocation28_spill] sm:$0xff] %v10693_v38 }
 0x49b   :  { %4278 = vmatprep.subr.bf16.mxu0 %v10587_v63  ;;  %4321 = vmatprep.subr.bf16.mxu1 %v10592_v11 }
 0x49e   :  { %4279 = vmatpush1.bf16.msra.mxu0 %v10597_v39  ;;  %4322 = vmatpush1.bf16.msra.mxu1 %v10602_v6 }
 0x49f   :  { %4280 = vmatprep.subr.bf16.mxu0 %v10611_v25  ;;  %4323 = vmatprep.subr.bf16.mxu1 %v10616_v14 }
 0x4a2   :  { %4281 = vmatpush1.bf16.msra.mxu0 %v10621_v4  ;;  %4324 = vmatpush1.bf16.msra.mxu1 %v10626_v43 }
 0x4a3   :  { %4282 = vmatprep.subr.bf16.mxu0 %v10635_v20  ;;  %4325 = vmatprep.subr.bf16.mxu1 %v10640_v22 }
 0x4a6   :  { %4283 = vmatpush1.bf16.msra.mxu0 %v10645_v23  ;;  %4326 = vmatpush1.bf16.msra.mxu1 %v10650_v3 }
 0x4a7   :  { %4284 = vmatprep.subr.bf16.mxu0 %v10659_v24  ;;  %4327 = vmatprep.subr.bf16.mxu1 %v10664_v27  ;;  %v10712_v27 = vld [vmem:[%s11888_s2 + $0xcc] ss:$16 sps:$4 sm:$0xff]  }
 0x4a8   :  { %12274 = vst [vmem:[#allocation33_spill] sm:$0xff] %v10712_v27 }
 0x4aa   :  { %4285 = vmatpush1.bf16.msra.mxu0 %v10669_v28  ;;  %4328 = vmatpush1.bf16.msra.mxu1 %v10674_v29  ;;  %v10698_v28 = vld [vmem:[%s11888_s2 + $0xac] ss:$16 sps:$4 sm:$0xff]   ;;  %v10707_v29 = vld [vmem:[%s11888_s2 + $0xc4] ss:$16 sps:$4 sm:$0xff]  }
 0x4ab   :  { %12272 = vst [vmem:[#allocation30_spill] sm:$0xff] %v10698_v28  ;;  %4286 = vmatprep.subr.bf16.mxu0 %v10688_v31  ;;  %4329 = vmatprep.subr.bf16.mxu1 %v10698_v28  ;;  %12273 = vst [vmem:[#allocation32_spill] sm:$0xff] %v10707_v29  ;;  %v10717_v31 = vld [vmem:[%s11888_s2 + $0xc0] ss:$16 sps:$4 sm:$0xff]   ;;  %v10736_v28 = vld [vmem:[%s11888_s2 + $0xec] ss:$16 sps:$4 sm:$0xff]  }
 0x4ac   :  { %12275 = vst [vmem:[#allocation34_spill] sm:$0xff] %v10717_v31  ;;  %12278 = vst [vmem:[#allocation37_spill] sm:$0xff] %v10736_v28 }
 0x4ae   :  { %4287 = vmatpush1.bf16.msra.mxu0 %v10683_v30  ;;  %4330 = vmatpush1.bf16.msra.mxu1 %v10693_v38  ;;  %v10722_v30 = vld [vmem:[%s11888_s2 + $0xc8] ss:$16 sps:$4 sm:$0xff]   ;;  %v10731_v38 = vld [vmem:[%s11888_s2 + $0xe4] ss:$16 sps:$4 sm:$0xff]  }
 0x4af   :  { %12276 = vst [vmem:[#allocation35_spill] sm:$0xff] %v10722_v30  ;;  %4288 = vmatprep.subr.bf16.mxu0 %v10707_v29  ;;  %4331 = vmatprep.subr.bf16.mxu1 %v10712_v27  ;;  %12277 = vst [vmem:[#allocation36_spill] sm:$0xff] %v10731_v38  ;;  %v10741_v29 = vld [vmem:[%s11888_s2 + $0xe0] ss:$16 sps:$4 sm:$0xff]   ;;  %v10760_v27 = vld [vmem:[%s11888_s2 + $0x10c] ss:$16 sps:$4 sm:$0xff]  }
 0x4b0   :  { %12279 = vst [vmem:[#allocation38_spill] sm:$0xff] %v10741_v29  ;;  %12282 = vst [vmem:[#allocation41_spill] sm:$0xff] %v10760_v27 }
 0x4b2   :  { %4289 = vmatpush1.bf16.msra.mxu0 %v10717_v31  ;;  %4332 = vmatpush1.bf16.msra.mxu1 %v10722_v30  ;;  %v10746_v31 = vld [vmem:[%s11888_s2 + $0xe8] ss:$16 sps:$4 sm:$0xff]   ;;  %v10755_v30 = vld [vmem:[%s11888_s2 + $0x104] ss:$16 sps:$4 sm:$0xff]  }
 0x4b3   :  { %12280 = vst [vmem:[#allocation39_spill] sm:$0xff] %v10746_v31  ;;  %4290 = vmatprep.subr.bf16.mxu0 %v10731_v38  ;;  %4333 = vmatprep.subr.bf16.mxu1 %v10736_v28  ;;  %12281 = vst [vmem:[#allocation40_spill] sm:$0xff] %v10755_v30  ;;  %v10765_v38 = vld [vmem:[%s11888_s2 + $0x100] ss:$16 sps:$4 sm:$0xff]   ;;  %v10784_v28 = vld [vmem:[%s11888_s2 + $0x12c] ss:$16 sps:$4 sm:$0xff]  }
 0x4b4   :  { %12283 = vst [vmem:[#allocation42_spill] sm:$0xff] %v10765_v38  ;;  %12286 = vst [vmem:[#allocation45_spill] sm:$0xff] %v10784_v28 }
 0x4b6   :  { %4291 = vmatpush1.bf16.msra.mxu0 %v10741_v29  ;;  %4334 = vmatpush1.bf16.msra.mxu1 %v10746_v31  ;;  %v10770_v29 = vld [vmem:[%s11888_s2 + $0x108] ss:$16 sps:$4 sm:$0xff]   ;;  %v10779_v31 = vld [vmem:[%s11888_s2 + $0x124] ss:$16 sps:$4 sm:$0xff]  }
 0x4b7   :  { %12284 = vst [vmem:[#allocation43_spill] sm:$0xff] %v10770_v29  ;;  %4292 = vmatprep.subr.bf16.mxu0 %v10755_v30  ;;  %4335 = vmatprep.subr.bf16.mxu1 %v10760_v27  ;;  %12285 = vst [vmem:[#allocation44_spill] sm:$0xff] %v10779_v31  ;;  %v10789_v30 = vld [vmem:[%s11888_s2 + $0x120] ss:$16 sps:$4 sm:$0xff]   ;;  %v10808_v27 = vld [vmem:[%s11888_s2 + $0x14c] ss:$16 sps:$4 sm:$0xff]  }
 0x4b8   :  { %12287 = vst [vmem:[#allocation46_spill] sm:$0xff] %v10789_v30  ;;  %12290 = vst [vmem:[#allocation49_spill] sm:$0xff] %v10808_v27 }
 0x4ba   :  { %4293 = vmatpush1.bf16.msra.mxu0 %v10765_v38  ;;  %4336 = vmatpush1.bf16.msra.mxu1 %v10770_v29  ;;  %v10794_v38 = vld [vmem:[%s11888_s2 + $0x128] ss:$16 sps:$4 sm:$0xff]   ;;  %v10803_v29 = vld [vmem:[%s11888_s2 + $0x144] ss:$16 sps:$4 sm:$0xff]  }
 0x4bb   :  { %12288 = vst [vmem:[#allocation47_spill] sm:$0xff] %v10794_v38  ;;  %4294 = vmatprep.subr.bf16.mxu0 %v10779_v31  ;;  %4337 = vmatprep.subr.bf16.mxu1 %v10784_v28  ;;  %12289 = vst [vmem:[#allocation48_spill] sm:$0xff] %v10803_v29  ;;  %v10813_v31 = vld [vmem:[%s11888_s2 + $0x140] ss:$16 sps:$4 sm:$0xff]   ;;  %v10832_v28 = vld [vmem:[%s11888_s2 + $0x16c] ss:$16 sps:$4 sm:$0xff]  }
 0x4bc   :  { %12291 = vst [vmem:[#allocation50_spill] sm:$0xff] %v10813_v31  ;;  %12294 = vst [vmem:[#allocation53_spill] sm:$0xff] %v10832_v28 }
 0x4be   :  { %4295 = vmatpush1.bf16.msra.mxu0 %v10789_v30  ;;  %4338 = vmatpush1.bf16.msra.mxu1 %v10794_v38  ;;  %v10818_v30 = vld [vmem:[%s11888_s2 + $0x148] ss:$16 sps:$4 sm:$0xff]   ;;  %v10827_v38 = vld [vmem:[%s11888_s2 + $0x164] ss:$16 sps:$4 sm:$0xff]  }
 0x4bf   :  { %12292 = vst [vmem:[#allocation51_spill] sm:$0xff] %v10818_v30  ;;  %4296 = vmatprep.subr.bf16.mxu0 %v10803_v29  ;;  %4339 = vmatprep.subr.bf16.mxu1 %v10808_v27  ;;  %12293 = vst [vmem:[#allocation52_spill] sm:$0xff] %v10827_v38  ;;  %v10837_v29 = vld [vmem:[%s11888_s2 + $0x160] ss:$16 sps:$4 sm:$0xff]   ;;  %v10856_v27 = vld [vmem:[%s11888_s2 + $0x18c] ss:$16 sps:$4 sm:$0xff]  }
 0x4c0   :  { %12295 = vst [vmem:[#allocation54_spill] sm:$0xff] %v10837_v29  ;;  %12298 = vst [vmem:[#allocation57_spill] sm:$0xff] %v10856_v27 }
 0x4c2   :  { %4297 = vmatpush1.bf16.msra.mxu0 %v10813_v31  ;;  %4340 = vmatpush1.bf16.msra.mxu1 %v10818_v30  ;;  %v10842_v31 = vld [vmem:[%s11888_s2 + $0x168] ss:$16 sps:$4 sm:$0xff]   ;;  %v10851_v30 = vld [vmem:[%s11888_s2 + $0x184] ss:$16 sps:$4 sm:$0xff]  }
 0x4c3   :  { %12296 = vst [vmem:[#allocation55_spill] sm:$0xff] %v10842_v31  ;;  %4298 = vmatprep.subr.bf16.mxu0 %v10827_v38  ;;  %4341 = vmatprep.subr.bf16.mxu1 %v10832_v28  ;;  %12297 = vst [vmem:[#allocation56_spill] sm:$0xff] %v10851_v30  ;;  %v10861_v38 = vld [vmem:[%s11888_s2 + $0x180] ss:$16 sps:$4 sm:$0xff]   ;;  %v10880_v28 = vld [vmem:[%s11888_s2 + $0x1ac] ss:$16 sps:$4 sm:$0xff]  }
 0x4c4   :  { %12299 = vst [vmem:[#allocation58_spill] sm:$0xff] %v10861_v38  ;;  %12302 = vst [vmem:[#allocation61_spill] sm:$0xff] %v10880_v28 }
 0x4c6   :  { %4299 = vmatpush1.bf16.msra.mxu0 %v10837_v29  ;;  %4342 = vmatpush1.bf16.msra.mxu1 %v10842_v31  ;;  %v10866_v29 = vld [vmem:[%s11888_s2 + $0x188] ss:$16 sps:$4 sm:$0xff]   ;;  %v10875_v31 = vld [vmem:[%s11888_s2 + $0x1a4] ss:$16 sps:$4 sm:$0xff]  }
 0x4c7   :  { %12300 = vst [vmem:[#allocation59_spill] sm:$0xff] %v10866_v29  ;;  %4300 = vmatprep.subr.bf16.mxu0 %v10851_v30  ;;  %4343 = vmatprep.subr.bf16.mxu1 %v10856_v27  ;;  %12301 = vst [vmem:[#allocation60_spill] sm:$0xff] %v10875_v31  ;;  %v10885_v30 = vld [vmem:[%s11888_s2 + $0x1a0] ss:$16 sps:$4 sm:$0xff]   ;;  %v10904_v27 = vld [vmem:[%s11888_s2 + $0x1cc] ss:$16 sps:$4 sm:$0xff]  }
 0x4c8   :  { %12303 = vst [vmem:[#allocation62_spill] sm:$0xff] %v10885_v30  ;;  %12306 = vst [vmem:[#allocation65_spill] sm:$0xff] %v10904_v27 }
 0x4ca   :  { %4301 = vmatpush1.bf16.msra.mxu0 %v10861_v38  ;;  %4344 = vmatpush1.bf16.msra.mxu1 %v10866_v29  ;;  %v10890_v38 = vld [vmem:[%s11888_s2 + $0x1a8] ss:$16 sps:$4 sm:$0xff]   ;;  %v10899_v29 = vld [vmem:[%s11888_s2 + $0x1c4] ss:$16 sps:$4 sm:$0xff]  }
 0x4cb   :  { %12304 = vst [vmem:[#allocation63_spill] sm:$0xff] %v10890_v38  ;;  %4302 = vmatprep.subr.bf16.mxu0 %v10875_v31  ;;  %4345 = vmatprep.subr.bf16.mxu1 %v10880_v28  ;;  %12305 = vst [vmem:[#allocation64_spill] sm:$0xff] %v10899_v29  ;;  %v10909_v31 = vld [vmem:[%s11888_s2 + $0x1c0] ss:$16 sps:$4 sm:$0xff]   ;;  %v10928_v28 = vld [vmem:[%s11888_s2 + $0x1ec] ss:$16 sps:$4 sm:$0xff]  }
 0x4cc   :  { %12307 = vst [vmem:[#allocation66_spill] sm:$0xff] %v10909_v31  ;;  %12310 = vst [vmem:[#allocation69_spill] sm:$0xff] %v10928_v28 }
 0x4ce   :  { %4303 = vmatpush1.bf16.msra.mxu0 %v10885_v30  ;;  %4346 = vmatpush1.bf16.msra.mxu1 %v10890_v38  ;;  %v10914_v30 = vld [vmem:[%s11888_s2 + $0x1c8] ss:$16 sps:$4 sm:$0xff]   ;;  %v10923_v38 = vld [vmem:[%s11888_s2 + $0x1e4] ss:$16 sps:$4 sm:$0xff]  }
 0x4cf   :  { %12308 = vst [vmem:[#allocation67_spill] sm:$0xff] %v10914_v30  ;;  %4304 = vmatprep.subr.bf16.mxu0 %v10899_v29  ;;  %4347 = vmatprep.subr.bf16.mxu1 %v10904_v27  ;;  %12309 = vst [vmem:[#allocation68_spill] sm:$0xff] %v10923_v38  ;;  %v10933_v29 = vld [vmem:[%s11888_s2 + $0x1e0] ss:$16 sps:$4 sm:$0xff]  }
 0x4d0   :  { %12311 = vst [vmem:[#allocation70_spill] sm:$0xff] %v10933_v29 }
 0x4d2   :  { %4305 = vmatpush1.bf16.msra.mxu0 %v10909_v31  ;;  %4348 = vmatpush1.bf16.msra.mxu1 %v10914_v30  ;;  %v10938_v31 = vld [vmem:[%s11888_s2 + $0x1e8] ss:$16 sps:$4 sm:$0xff]  }
 0x4d3   :  { %12312 = vst [vmem:[#allocation71_spill] sm:$0xff] %v10938_v31  ;;  %4306 = vmatprep.subr.bf16.mxu0 %v10923_v38  ;;  %4349 = vmatprep.subr.bf16.mxu1 %v10928_v28 }
 0x4d6   :  { %4307 = vmatpush1.bf16.msra.mxu0 %v10933_v29  ;;  %4350 = vmatpush1.bf16.msra.mxu1 %v10938_v31 }
 0x4d7   :  { %4623 = vmatprep.subr.bf16.mxu0 %v10324_v16  ;;  %4666 = vmatprep.subr.bf16.mxu1 %v10329_v18 }
 0x54c   :  { %v3437_v30 = vpop.f32.mrb[28].mxu0  ;;  %v3480_v27 = vpop.f32.mrb[28].mxu1 }
 0x54d   :  { %v3438_v24 = vadd.f32 %v3437_v30, %v12244_v21  ;;  %v3439_v3 = vpop.f32.mrb[29].mxu0  ;;  %v3482_v23 = vpop.f32.mrb[29].mxu1  ;;  %v3481_v18 = vadd.f32 %v3480_v27, %v12246_v46 }
 0x54e   :  { %v3440_v22 = vadd.f32 %v3439_v3, %v12245_v26  ;;  %v3441_v20 = vpop.f32.mrb[30].mxu0  ;;  %v3484_v38 = vpop.f32.mrb[30].mxu1  ;;  %v3483_v3 = vadd.f32 %v3482_v23, %v12247_v50 }
 0x54f   :  { %v3489_v43 = vmul.f32 0.5, %v3438_v24  ;;  %v3442_v28 = vadd.f32 %v3441_v20, %v12244_v21  ;;  %v3443_v29 = vpop.f32.mrb[31].mxu0  ;;  %v3486_v4 = vpop.f32.mrb[31].mxu1  ;;  %v3485_v25 = vadd.f32 %v3484_v38, %v12246_v46 }
 0x550   :  { %v3497_v31 = vmul.f32 0.5, %v3440_v22  ;;  %v3444_v16 = vadd.f32 %v3443_v29, %v12245_v26  ;;  %v3487_v20 = vadd.f32 %v3486_v4, %v12247_v50  ;;  %v3507_v29 = vmul.f32 0.5, %v3483_v3 }
 0x551   :  { %8645 = vtanh.f32 %v3489_v43  ;;  %v3490_v14 = vmul.f32 0.5, %v3442_v28 }
 0x552   :  { %8647 = vtanh.f32 %v3497_v31  ;;  %v3498_v30 = vmul.f32 0.5, %v3444_v16  ;;  %v3508_v26 = vmul.f32 0.5, %v3487_v20 }
 0x553   :  { %8649 = vtanh.f32 %v3490_v14 }
 0x554   :  { %8651 = vtanh.f32 %v3481_v18 }
 0x555   :  { %8653 = vtanh.f32 %v3498_v30 }
 0x556   :  { %8655 = vtanh.f32 %v3485_v25 }
 0x557   :  { %8657 = vtanh.f32 %v3507_v29 }
 0x558   :  { %8659 = vtanh.f32 %v3508_v26 }
 0x55b   :  { %v8646_v24 = vpop.eup %8645 }
 0x55c   :  { %v8648_v22 = vpop.eup %8647  ;;  %v3493_v21 = vmul.f32 0.5, %v8646_v24 }
 0x55d   :  { %v3501_v43 = vmul.f32 0.5, %v8648_v22  ;;  %v8650_v27 = vpop.eup %8649 }
 0x55e   :  { %v3495_v28 = vadd.f32 0.5, %v3493_v21  ;;  %v8652_v31 = vpop.eup %8651  ;;  %v3494_v14 = vmul.f32 0.5, %v8650_v27  ;;  %v7448_v21 = vld [vmem:[%s11889_s0 + $0x80] sm:$0xff] }
 0x55f   :  { %v3503_v16 = vadd.f32 0.5, %v3501_v43  ;;  %v8654_v6 = vpop.eup %8653  ;;  %v3547_v26 = vunpack.c.l.bf16 %v7448_v21  ;;  %v3548_v29 = vunpack.c.h.bf16 %v7448_v21 }
 0x560   :  { %v3519_v38 = vmul.f32 %v8652_v31, %v3495_v28  ;;  %v3496_v23 = vadd.f32 0.5, %v3494_v14  ;;  %v3502_v25 = vmul.f32 0.5, %v8654_v6  ;;  %v8656_v4 = vpop.eup %8655 }
 0x561   :  { %v3517_v18 = vmul.f32 %v3503_v16, %v10342_v9  ;;  %v7450_v9 = vld [vmem:[%s11889_s0 + $0x90] sm:$0xff]  ;;  %v8658_v6 = vpop.eup %8657 }
 0x562   :  { %v3504_v24 = vadd.f32 0.5, %v3502_v25  ;;  %v3520_v3 = vmul.f32 %v8656_v4, %v3496_v23  ;;  %v8660_v43 = vpop.eup %8659  ;;  %v3551_v27 = vunpack.c.l.bf16 %v7450_v9  ;;  %v3552_v16 = vunpack.c.h.bf16 %v7450_v9  ;;  %v7451_v25 = vld [vmem:[%s11889_s0 + $0x98] sm:$0xff] }
 0x563   :  { %v10955_v30 = vadd.f32 %v3519_v38, %v3517_v18  ;;  %v3511_v4 = vmul.f32 0.5, %v8658_v6  ;;  %v3553_v11 = vunpack.c.l.bf16 %v7451_v25 }
 0x564   :  { %v3518_v20 = vmul.f32 %v3504_v24, %v10349_v60  ;;  %v7449_v60 = vld [vmem:[%s11889_s0 + $0x88] sm:$0xff]  ;;  %v3512_v24 = vmul.f32 0.5, %v8660_v43 }
 0x565   :  { %12313 = vst [vmem:[#allocation72_spill] sm:$0xff] %v10955_v30  ;;  %8661 = vtanh.f32 %v10955_v30  ;;  %v3549_v38 = vunpack.c.l.bf16 %v7449_v60  ;;  %v3513_v62 = vadd.f32 0.5, %v3511_v4  ;;  %v3550_v43 = vunpack.c.h.bf16 %v7449_v60 }
 0x566   :  { %v10962_v22 = vadd.f32 %v3520_v3, %v3518_v20  ;;  %v3514_v13 = vadd.f32 0.5, %v3512_v24 }
 0x568   :  { %12314 = vst [vmem:[#allocation73_spill] sm:$0xff] %v10962_v22  ;;  %8663 = vtanh.f32 %v10962_v22 }
 0x56c   :  { %v3784_v28 = vpop.f32.mrb[32].mxu0  ;;  %v3827_v31 = vpop.f32.mrb[32].mxu1 }
 0x56d   :  { %v3836_v14 = vadd.f32 %v3784_v28, %v3547_v26  ;;  %v3786_v18 = vpop.f32.mrb[33].mxu0  ;;  %v3829_v23 = vpop.f32.mrb[33].mxu1  ;;  %v3838_v28 = vadd.f32 %v3827_v31, %v3549_v38 }
 0x56e   :  { %v3837_v3 = vadd.f32 %v3786_v18, %v3548_v29  ;;  %v3788_v20 = vpop.f32.mrb[34].mxu0  ;;  %v3831_v22 = vpop.f32.mrb[34].mxu1 }
 0x56f   :  { %v3844_v30 = vmul.f32 0.5, %v3836_v14  ;;  %v3840_v21 = vadd.f32 %v3788_v20, %v3551_v27  ;;  %v3790_v50 = vpop.f32.mrb[35].mxu0  ;;  %v3833_v46 = vpop.f32.mrb[35].mxu1  ;;  %v3842_v29 = vadd.f32 %v3831_v22, %v3553_v11  ;;  %v3554_v27 = vunpack.c.h.bf16 %v7451_v25 }
 0x570   :  { %v3852_v39 = vmul.f32 0.5, %v3837_v3  ;;  %v3841_v9 = vadd.f32 %v3790_v50, %v3552_v16  ;;  %v8662_v26 = vpop.eup %8661  ;;  %v3839_v20 = vadd.f32 %v3829_v23, %v3550_v43 }
 0x571   :  { %8665 = vtanh.f32 %v3844_v30  ;;  %v3845_v63 = vmul.f32 0.5, %v3840_v21  ;;  %v3527_v18 = vmul.f32 %v8662_v26, %v3513_v62  ;;  %v3843_v50 = vadd.f32 %v3833_v46, %v3554_v27 }
 0x572   :  { %8667 = vtanh.f32 %v3852_v39  ;;  %v3853_v2 = vmul.f32 0.5, %v3841_v9  ;;  %v8664_v6 = vpop.eup %8663 }
 0x573   :  { %8669 = vtanh.f32 %v3845_v63  ;;  %v3528_v14 = vmul.f32 %v8664_v6, %v3514_v13  ;;  %v3862_v63 = vmul.f32 0.5, %v3839_v20  ;;  %v3863_v62 = vmul.f32 0.5, %v3843_v50 }
 0x574   :  { %8671 = vtanh.f32 %v3838_v28 }
 0x575   :  { %8673 = vtanh.f32 %v3853_v2  ;;  %v7898_v3 = vpack.c.bf16 %v3528_v14, %v3527_v18 }
 0x576   :  { %8675 = vtanh.f32 %v3842_v29 }
 0x577   :  { %7922 = vst [vmem:[%s11891_s4 + $0x18] sm:$0xff] %v7898_v3   ;;  %4308 = vmatprep.mubr.bf16.mxu0 %v7898_v3  ;;  %4351 = vmatprep.mubr.bf16.mxu1 %v7898_v3  ;;  %8677 = vtanh.f32 %v3862_v63  ;;  %v12348_v63 = vld [vmem:[#allocation42_spill] sm:$0xff] }
 0x578   :  { %8679 = vtanh.f32 %v3863_v62  ;;  %v12350_v62 = vld [vmem:[#allocation44_spill] sm:$0xff] }
 0x57b   :  { %v8666_v39 = vpop.eup %8665 }
 0x57c   :  { %v8668_v30 = vpop.eup %8667  ;;  %v3848_v60 = vmul.f32 0.5, %v8666_v39 }
 0x57d   :  { %v3856_v11 = vmul.f32 0.5, %v8668_v30  ;;  %v8670_v13 = vpop.eup %8669 }
 0x57e   :  { %v3850_v22 = vadd.f32 0.5, %v3848_v60  ;;  %v8672_v31 = vpop.eup %8671  ;;  %v3849_v16 = vmul.f32 0.5, %v8670_v13  ;;  %v12347_v60 = vld [vmem:[#allocation41_spill] sm:$0xff] }
 0x57f   :  { %v3858_v2 = vadd.f32 0.5, %v3856_v11  ;;  %v8674_v38 = vpop.eup %8673  ;;  %v12349_v11 = vld [vmem:[#allocation43_spill] sm:$0xff]  ;;  %v12351_v13 = vld [vmem:[#allocation45_spill] sm:$0xff] }
 0x580   :  { %v3874_v23 = vmul.f32 %v8672_v31, %v3850_v22  ;;  %v3851_v4 = vadd.f32 0.5, %v3849_v16  ;;  %v3857_v24 = vmul.f32 0.5, %v8674_v38  ;;  %v8676_v46 = vpop.eup %8675  ;;  %v12352_v22 = vld [vmem:[#allocation46_spill] sm:$0xff]  ;;  %v12353_v31 = vld [vmem:[#allocation47_spill] sm:$0xff]  ;;  %v12355_v16 = vld [vmem:[#allocation49_spill] sm:$0xff] }
 0x581   :  { %v3872_v25 = vmul.f32 %v3858_v2, %v10365_v57  ;;  %v8678_v43 = vpop.eup %8677  ;;  %v12354_v2 = vld [vmem:[#allocation48_spill] sm:$0xff]  ;;  %v12356_v38 = vld [vmem:[#allocation50_spill] sm:$0xff] }
 0x582   :  { %v3859_v9 = vadd.f32 0.5, %v3857_v24  ;;  %v3875_v26 = vmul.f32 %v8676_v46, %v3851_v4  ;;  %v8680_v29 = vpop.eup %8679  ;;  %v3866_v18 = vmul.f32 0.5, %v8678_v43  ;;  %v12359_v4 = vld [vmem:[#allocation53_spill] sm:$0xff]  ;;  %v12360_v24 = vld [vmem:[#allocation54_spill] sm:$0xff]  ;;  %v12361_v46 = vld [vmem:[#allocation55_spill] sm:$0xff] }
 0x583   :  { %v10978_v21 = vadd.f32 %v3874_v23, %v3872_v25  ;;  %v3867_v57 = vmul.f32 0.5, %v8680_v29  ;;  %v12357_v23 = vld [vmem:[#allocation51_spill] sm:$0xff]  ;;  %v12358_v25 = vld [vmem:[#allocation52_spill] sm:$0xff] }
 0x584   :  { %v3873_v28 = vmul.f32 %v3859_v9, %v10369_v19  ;;  %v3868_v27 = vadd.f32 0.5, %v3866_v18  ;;  %v12315_v19 = vld [vmem:[#allocation9_spill] sm:$0xff]  ;;  %v12362_v9 = vld [vmem:[#allocation56_spill] sm:$0xff]  ;;  %v12365_v43 = vld [vmem:[#allocation59_spill] sm:$0xff] }
 0x585   :  { %8681 = vtanh.f32 %v10978_v21  ;;  %v3869_v3 = vadd.f32 0.5, %v3867_v57  ;;  %v12366_v29 = vld [vmem:[#allocation60_spill] sm:$0xff]  ;;  %v12367_v18 = vld [vmem:[#allocation61_spill] sm:$0xff]  ;;  %v12368_v57 = vld [vmem:[#allocation62_spill] sm:$0xff] }
 0x586   :  { %v10982_v6 = vadd.f32 %v3875_v26, %v3873_v28  ;;  %v12363_v26 = vld [vmem:[#allocation57_spill] sm:$0xff]  ;;  %v12364_v28 = vld [vmem:[#allocation58_spill] sm:$0xff] }
 0x588   :  { %8683 = vtanh.f32 %v10982_v6 }
 0x58f   :  { %v8682_v14 = vpop.eup %8681 }
 0x590   :  { %v3882_v50 = vmul.f32 %v8682_v14, %v3868_v27  ;;  %v12369_v14 = vld [vmem:[#allocation63_spill] sm:$0xff]  ;;  %v12370_v27 = vld [vmem:[#allocation64_spill] sm:$0xff] }
 0x592   :  { %v8684_v20 = vpop.eup %8683 }
 0x593   :  { %v3883_v39 = vmul.f32 %v8684_v20, %v3869_v3  ;;  %v12371_v3 = vld [vmem:[#allocation65_spill] sm:$0xff]  ;;  %v12372_v20 = vld [vmem:[#allocation66_spill] sm:$0xff] }
 0x595   :  { %v3890_v30 = vpack.c.bf16 %v3883_v39, %v3882_v50  ;;  %v12373_v50 = vld [vmem:[#allocation67_spill] sm:$0xff]  ;;  %v12374_v39 = vld [vmem:[#allocation68_spill] sm:$0xff] }
 0x597   :  { %4309 = vmatmul.mubr.bf16.vlgmr.msra.gmra.mrb[36].mxu0 %v3890_v30  ;;  %4352 = vmatmul.mubr.bf16.vlgmr.msra.gmra.mrb[36].mxu1 %v3890_v30 }
 0x598   :  { %4624 = vmatpush1.bf16.msra.mxu0 %v10375_v58  ;;  %4667 = vmatpush1.bf16.msra.mxu1 %v10380_v32  ;;  %v12316_v58 = vld [vmem:[#allocation10_spill] sm:$0xff]  ;;  %v12317_v32 = vld [vmem:[#allocation11_spill] sm:$0xff] }
 0x599   :  { %4625 = vmatprep.subr.bf16.mxu0 %v10387_v40  ;;  %4668 = vmatprep.subr.bf16.mxu1 %v10392_v42  ;;  %v12318_v40 = vld [vmem:[#allocation12_spill] sm:$0xff]  ;;  %v12319_v42 = vld [vmem:[#allocation13_spill] sm:$0xff] }
 0x59a   :  { %4655 = vmatprep.mubr.bf16.mxu0 %v12109_v1  ;;  %4698 = vmatprep.mubr.bf16.mxu1 %v12109_v1 }
 0x59c   :  { %4626 = vmatpush1.bf16.msra.mxu0 %v10401_v47  ;;  %4669 = vmatpush1.bf16.msra.mxu1 %v10406_v53  ;;  %v12320_v47 = vld [vmem:[#allocation14_spill] sm:$0xff]  ;;  %v12321_v53 = vld [vmem:[#allocation15_spill] sm:$0xff] }
 0x59d   :  { %4627 = vmatprep.subr.bf16.mxu0 %v10413_v49  ;;  %4670 = vmatprep.subr.bf16.mxu1 %v10418_v44  ;;  %v12322_v49 = vld [vmem:[#allocation16_spill] sm:$0xff]  ;;  %v12323_v44 = vld [vmem:[#allocation17_spill] sm:$0xff] }
 0x5a0   :  { %4628 = vmatpush1.bf16.msra.mxu0 %v10427_v51  ;;  %4671 = vmatpush1.bf16.msra.mxu1 %v10432_v52  ;;  %v12324_v51 = vld [vmem:[#allocation18_spill] sm:$0xff]  ;;  %v12325_v52 = vld [vmem:[#allocation19_spill] sm:$0xff] }
 0x5a1   :  { %4629 = vmatprep.subr.bf16.mxu0 %v10439_v48  ;;  %4672 = vmatprep.subr.bf16.mxu1 %v10444_v54  ;;  %v12326_v48 = vld [vmem:[#allocation20_spill] sm:$0xff]  ;;  %v12327_v54 = vld [vmem:[#allocation21_spill] sm:$0xff] }
 0x5a4   :  { %4630 = vmatpush1.bf16.msra.mxu0 %v10451_v41  ;;  %4673 = vmatpush1.bf16.msra.mxu1 %v10456_v35  ;;  %v12328_v41 = vld [vmem:[#allocation22_spill] sm:$0xff]  ;;  %v12329_v35 = vld [vmem:[#allocation23_spill] sm:$0xff] }
 0x5a5   :  { %4631 = vmatprep.subr.bf16.mxu0 %v10463_v33  ;;  %4674 = vmatprep.subr.bf16.mxu1 %v10468_v36  ;;  %v12330_v33 = vld [vmem:[#allocation24_spill] sm:$0xff]  ;;  %v12331_v36 = vld [vmem:[#allocation25_spill] sm:$0xff] }
 0x5a8   :  { %4632 = vmatpush1.bf16.msra.mxu0 %v10475_v37  ;;  %4675 = vmatpush1.bf16.msra.mxu1 %v10480_v55  ;;  %v12332_v37 = vld [vmem:[#allocation26_spill] sm:$0xff]  ;;  %v12333_v55 = vld [vmem:[#allocation27_spill] sm:$0xff] }
 0x5a9   :  { %4633 = vmatprep.subr.bf16.mxu0 %v10487_v45  ;;  %4676 = vmatprep.subr.bf16.mxu1 %v10492_v7  ;;  %v12334_v45 = vld [vmem:[#allocation31_spill] sm:$0xff]  ;;  %v12335_v7 = vld [vmem:[#allocation30_spill] sm:$0xff] }
 0x5ac   :  { %4634 = vmatpush1.bf16.msra.mxu0 %v10499_v15  ;;  %4677 = vmatpush1.bf16.msra.mxu1 %v10504_v34  ;;  %v12336_v15 = vld [vmem:[#allocation29_spill] sm:$0xff]  ;;  %v12337_v34 = vld [vmem:[#allocation28_spill] sm:$0xff] }
 0x5ad   :  { %4635 = vmatprep.subr.bf16.mxu0 %v10511_v59  ;;  %4678 = vmatprep.subr.bf16.mxu1 %v10516_v17  ;;  %v12338_v59 = vld [vmem:[#allocation32_spill] sm:$0xff]  ;;  %v12339_v17 = vld [vmem:[#allocation33_spill] sm:$0xff] }
 0x5b0   :  { %4636 = vmatpush1.bf16.msra.mxu0 %v10523_v8  ;;  %4679 = vmatpush1.bf16.msra.mxu1 %v10528_v61  ;;  %v12340_v8 = vld [vmem:[#allocation34_spill] sm:$0xff]  ;;  %v12341_v61 = vld [vmem:[#allocation35_spill] sm:$0xff] }
 0x5b1   :  { %4637 = vmatprep.subr.bf16.mxu0 %v10535_v0  ;;  %4680 = vmatprep.subr.bf16.mxu1 %v10540_v10  ;;  %v12342_v0 = vld [vmem:[#allocation36_spill] sm:$0xff]  ;;  %v12343_v10 = vld [vmem:[#allocation37_spill] sm:$0xff] }
 0x5b4   :  { %4638 = vmatpush1.bf16.msra.mxu0 %v10547_v56  ;;  %4681 = vmatpush1.bf16.msra.mxu1 %v10552_v5  ;;  %v12344_v56 = vld [vmem:[#allocation38_spill] sm:$0xff]  ;;  %v12345_v5 = vld [vmem:[#allocation39_spill] sm:$0xff] }
 0x5b5   :  { %5149 = vmatprep.subr.bf16.mxu0 %v10563_v12  ;;  %5192 = vmatprep.subr.bf16.mxu1 %v12315_v19  ;;  %v12346_v12 = vld [vmem:[#allocation40_spill] sm:$0xff]  ;;  %v12376_v19 = vld [vmem:[#allocation70_spill] sm:$0xff] }
 0x5b7   :  { %4656 = vmatmul.mubr.bf16.vlgmr.msra.gmra.mrb[40].mxu0 %v3890_v30  ;;  %4699 = vmatmul.mubr.bf16.vlgmr.msra.gmra.mrb[40].mxu1 %v3890_v30  ;;  %v12375_v30 = vld [vmem:[#allocation69_spill] sm:$0xff] }
 0x5b8   :  { %5150 = vmatpush1.bf16.msra.mxu0 %v12316_v58  ;;  %5193 = vmatpush1.bf16.msra.mxu1 %v12317_v32  ;;  %v12377_v58 = vld [vmem:[#allocation71_spill] sm:$0xff] }
 0x5b9   :  { %5151 = vmatprep.subr.bf16.mxu0 %v12318_v40  ;;  %5194 = vmatprep.subr.bf16.mxu1 %v12319_v42  ;;  %v11084_v32 = vld [vmem:[%s11887_s1 + $0x4] ss:$16 sps:$4 sm:$0xff]   ;;  %v11089_v40 = vld [vmem:[%s11887_s1 + $0xc] ss:$16 sps:$4 sm:$0xff]  }
 0x5bc   :  { %5152 = vmatpush1.bf16.msra.mxu0 %v12320_v47  ;;  %5195 = vmatpush1.bf16.msra.mxu1 %v12321_v53  ;;  %v12378_v53 = vld [vmem:[#allocation5_spill] sm:$0xff] }
 0x5bd   :  { %5153 = vmatprep.subr.bf16.mxu0 %v12322_v49  ;;  %5196 = vmatprep.subr.bf16.mxu1 %v12323_v44 }
 0x5c0   :  { %5154 = vmatpush1.bf16.msra.mxu0 %v12324_v51  ;;  %5197 = vmatpush1.bf16.msra.mxu1 %v12325_v52  ;;  %v12379_v52 = vld [vmem:[#allocation6_spill] sm:$0xff] }
 0x5c1   :  { %5155 = vmatprep.subr.bf16.mxu0 %v12326_v48  ;;  %5198 = vmatprep.subr.bf16.mxu1 %v12327_v54 }
 0x5c4   :  { %5156 = vmatpush1.bf16.msra.mxu0 %v12328_v41  ;;  %5199 = vmatpush1.bf16.msra.mxu1 %v12329_v35 }
 0x5c5   :  { %5157 = vmatprep.subr.bf16.mxu0 %v12330_v33  ;;  %5200 = vmatprep.subr.bf16.mxu1 %v12331_v36 }
 0x5c8   :  { %5158 = vmatpush1.bf16.msra.mxu0 %v12332_v37  ;;  %5201 = vmatpush1.bf16.msra.mxu1 %v12333_v55 }
 0x5c9   :  { %5159 = vmatprep.subr.bf16.mxu0 %v12334_v45  ;;  %5202 = vmatprep.subr.bf16.mxu1 %v12335_v7  ;;  %v12380_v7 = vld [vmem:[#allocation7_spill] sm:$0xff] }
 0x5cc   :  { %5160 = vmatpush1.bf16.msra.mxu0 %v12336_v15  ;;  %5203 = vmatpush1.bf16.msra.mxu1 %v12337_v34 }
 0x5cd   :  { %5161 = vmatprep.subr.bf16.mxu0 %v12338_v59  ;;  %5204 = vmatprep.subr.bf16.mxu1 %v12339_v17 }
 0x5d0   :  { %5162 = vmatpush1.bf16.msra.mxu0 %v12340_v8  ;;  %5205 = vmatpush1.bf16.msra.mxu1 %v12341_v61  ;;  %v12381_v8 = vld [vmem:[#allocation8_spill] sm:$0xff] }
 0x5d1   :  { %5163 = vmatprep.subr.bf16.mxu0 %v12342_v0  ;;  %5206 = vmatprep.subr.bf16.mxu1 %v12343_v10 }
 0x5d4   :  { %5164 = vmatpush1.bf16.msra.mxu0 %v12344_v56  ;;  %5207 = vmatpush1.bf16.msra.mxu1 %v12345_v5 }
 0x5d5   :  { %5165 = vmatprep.subr.bf16.mxu0 %v12346_v12  ;;  %5208 = vmatprep.subr.bf16.mxu1 %v12347_v60 }
 0x5d8   :  { %5166 = vmatpush1.bf16.msra.mxu0 %v12348_v63  ;;  %5209 = vmatpush1.bf16.msra.mxu1 %v12349_v11 }
 0x5d9   :  { %5167 = vmatprep.subr.bf16.mxu0 %v12350_v62  ;;  %5210 = vmatprep.subr.bf16.mxu1 %v12351_v13 }
 0x5dc   :  { %5168 = vmatpush1.bf16.msra.mxu0 %v12352_v22  ;;  %5211 = vmatpush1.bf16.msra.mxu1 %v12353_v31 }
 0x5dd   :  { %5169 = vmatprep.subr.bf16.mxu0 %v12354_v2  ;;  %5212 = vmatprep.subr.bf16.mxu1 %v12355_v16 }
 0x5e0   :  { %5170 = vmatpush1.bf16.msra.mxu0 %v12356_v38  ;;  %5213 = vmatpush1.bf16.msra.mxu1 %v12357_v23  ;;  %v12382_v38 = vld [vmem:[#allocation72_spill] sm:$0xff] }
 0x5e1   :  { %5171 = vmatprep.subr.bf16.mxu0 %v12358_v25  ;;  %5214 = vmatprep.subr.bf16.mxu1 %v12359_v4 }
 0x5e4   :  { %5172 = vmatpush1.bf16.msra.mxu0 %v12360_v24  ;;  %5215 = vmatpush1.bf16.msra.mxu1 %v12361_v46 }
 0x5e5   :  { %5173 = vmatprep.subr.bf16.mxu0 %v12362_v9  ;;  %5216 = vmatprep.subr.bf16.mxu1 %v12363_v26 }
 0x5e8   :  { %5174 = vmatpush1.bf16.msra.mxu0 %v12364_v28  ;;  %5217 = vmatpush1.bf16.msra.mxu1 %v12365_v43  ;;  %v12383_v28 = vld [vmem:[#allocation73_spill] sm:$0xff] }
 0x5e9   :  { %5175 = vmatprep.subr.bf16.mxu0 %v12366_v29  ;;  %5218 = vmatprep.subr.bf16.mxu1 %v12367_v18  ;;  %v7552_v29 = vld [vmem:[%s11889_s0 + $0xa0] sm:$0xff] }
 0x5ec   :  { %5176 = vmatpush1.bf16.msra.mxu0 %v12368_v57  ;;  %5219 = vmatpush1.bf16.msra.mxu1 %v12369_v14  ;;  %v7554_v57 = vld [vmem:[%s11889_s0 + $0xb0] sm:$0xff]  ;;  %v4420_v14 = vunpack.c.l.bf16 %v7552_v29 }
 0x5ed   :  { %5177 = vmatprep.subr.bf16.mxu0 %v12370_v27  ;;  %5220 = vmatprep.subr.bf16.mxu1 %v12371_v3  ;;  %v7553_v3 = vld [vmem:[%s11889_s0 + $0xa8] sm:$0xff] }
 0x5f0   :  { %5178 = vmatpush1.bf16.msra.mxu0 %v12372_v20  ;;  %5221 = vmatpush1.bf16.msra.mxu1 %v12373_v50  ;;  %v4421_v20 = vunpack.c.h.bf16 %v7552_v29 }
 0x5f1   :  { %5179 = vmatprep.subr.bf16.mxu0 %v12374_v39  ;;  %5222 = vmatprep.subr.bf16.mxu1 %v12375_v30  ;;  %v4424_v39 = vunpack.c.l.bf16 %v7554_v57 }
 0x5f4   :  { %5180 = vmatpush1.bf16.msra.mxu0 %v12376_v19  ;;  %5223 = vmatpush1.bf16.msra.mxu1 %v12377_v58  ;;  %v4425_v58 = vunpack.c.h.bf16 %v7554_v57 }
 0x5f5   :  { %5496 = vmatprep.subr.bf16.mxu0 %v11084_v32  ;;  %5539 = vmatprep.subr.bf16.mxu1 %v11089_v40 }
 0x66a   :  { %v4310_v42 = vpop.f32.mrb[36].mxu0  ;;  %v4353_v47 = vpop.f32.mrb[36].mxu1 }
 0x66b   :  { %v4311_v49 = vadd.f32 %v4310_v42, %v12378_v53  ;;  %v4312_v44 = vpop.f32.mrb[37].mxu0  ;;  %v4355_v51 = vpop.f32.mrb[37].mxu1  ;;  %v4354_v15 = vadd.f32 %v4353_v47, %v12380_v7  ;;  %v4422_v47 = vunpack.c.l.bf16 %v7553_v3 }
 0x66c   :  { %v4313_v48 = vadd.f32 %v4312_v44, %v12379_v52  ;;  %v4314_v54 = vpop.f32.mrb[38].mxu0  ;;  %v4357_v41 = vpop.f32.mrb[38].mxu1  ;;  %v4356_v61 = vadd.f32 %v4355_v51, %v12381_v8  ;;  %v7555_v51 = vld [vmem:[%s11889_s0 + $0xb8] sm:$0xff] }
 0x66d   :  { %v4362_v35 = vmul.f32 0.5, %v4311_v49  ;;  %v4315_v33 = vadd.f32 %v4314_v54, %v12378_v53  ;;  %v4316_v36 = vpop.f32.mrb[39].mxu0  ;;  %v4359_v37 = vpop.f32.mrb[39].mxu1  ;;  %v4358_v17 = vadd.f32 %v4357_v41, %v12380_v7 }
 0x66e   :  { %v4370_v55 = vmul.f32 0.5, %v4313_v48  ;;  %v4317_v45 = vadd.f32 %v4316_v36, %v12379_v52  ;;  %v4360_v0 = vadd.f32 %v4359_v37, %v12381_v8  ;;  %v4380_v12 = vmul.f32 0.5, %v4356_v61 }
 0x66f   :  { %8685 = vtanh.f32 %v4362_v35  ;;  %v4363_v34 = vmul.f32 0.5, %v4315_v33 }
 0x670   :  { %8687 = vtanh.f32 %v4370_v55  ;;  %v4371_v59 = vmul.f32 0.5, %v4317_v45  ;;  %v4381_v63 = vmul.f32 0.5, %v4360_v0 }
 0x671   :  { %8689 = vtanh.f32 %v4363_v34  ;;  %v4426_v34 = vunpack.c.l.bf16 %v7555_v51 }
 0x672   :  { %8691 = vtanh.f32 %v4354_v15 }
 0x673   :  { %8693 = vtanh.f32 %v4371_v59 }
 0x674   :  { %8695 = vtanh.f32 %v4358_v17 }
 0x675   :  { %8697 = vtanh.f32 %v4380_v12 }
 0x676   :  { %8699 = vtanh.f32 %v4381_v63 }
 0x679   :  { %v8686_v10 = vpop.eup %8685 }
 0x67a   :  { %v8688_v56 = vpop.eup %8687  ;;  %v4366_v5 = vmul.f32 0.5, %v8686_v10 }
 0x67b   :  { %v4374_v60 = vmul.f32 0.5, %v8688_v56  ;;  %v8690_v11 = vpop.eup %8689 }
 0x67c   :  { %v4368_v62 = vadd.f32 0.5, %v4366_v5  ;;  %v8692_v13 = vpop.eup %8691  ;;  %v4367_v31 = vmul.f32 0.5, %v8690_v11 }
 0x67d   :  { %v4376_v22 = vadd.f32 0.5, %v4374_v60  ;;  %v8694_v2 = vpop.eup %8693  ;;  %v4423_v60 = vunpack.c.h.bf16 %v7553_v3 }
 0x67e   :  { %v4392_v16 = vmul.f32 %v8692_v13, %v4368_v62  ;;  %v4369_v25 = vadd.f32 0.5, %v4367_v31  ;;  %v4375_v4 = vmul.f32 0.5, %v8694_v2  ;;  %v8696_v24 = vpop.eup %8695  ;;  %v4427_v13 = vunpack.c.h.bf16 %v7555_v51 }
 0x67f   :  { %v4390_v23 = vmul.f32 %v4376_v22, %v12382_v38  ;;  %v8698_v27 = vpop.eup %8697 }
 0x680   :  { %v4377_v9 = vadd.f32 0.5, %v4375_v4  ;;  %v4393_v26 = vmul.f32 %v8696_v24, %v4369_v25  ;;  %v8700_v50 = vpop.eup %8699  ;;  %v4384_v48 = vmul.f32 0.5, %v8698_v27 }
 0x681   :  { %v11102_v46 = vadd.f32 %v4392_v16, %v4390_v23  ;;  %v4385_v54 = vmul.f32 0.5, %v8700_v50 }
 0x682   :  { %v4391_v43 = vmul.f32 %v4377_v9, %v12383_v28  ;;  %v4386_v10 = vadd.f32 0.5, %v4384_v48 }
 0x683   :  { %8701 = vtanh.f32 %v11102_v46  ;;  %v4387_v56 = vadd.f32 0.5, %v4385_v54 }
 0x684   :  { %v11109_v18 = vadd.f32 %v4393_v26, %v4391_v43 }
 0x686   :  { %8703 = vtanh.f32 %v11109_v18 }
 0x68a   :  { %v4657_v30 = vpop.f32.mrb[40].mxu0  ;;  %v4700_v19 = vpop.f32.mrb[40].mxu1 }
 0x68b   :  { %v4709_v42 = vadd.f32 %v4657_v30, %v4420_v14  ;;  %v4659_v49 = vpop.f32.mrb[41].mxu0  ;;  %v4702_v44 = vpop.f32.mrb[41].mxu1  ;;  %v4711_v61 = vadd.f32 %v4700_v19, %v4422_v47 }
 0x68c   :  { %v4710_v41 = vadd.f32 %v4659_v49, %v4421_v20  ;;  %v4661_v35 = vpop.f32.mrb[42].mxu0  ;;  %v4704_v33 = vpop.f32.mrb[42].mxu1  ;;  %v4712_v31 = vadd.f32 %v4702_v44, %v4423_v60  ;;  %v11223_v60 = vld [vmem:[%s11887_s1 + $0x84] ss:$16 sps:$4 sm:$0xff]  }
 0x68d   :  { %v4717_v36 = vmul.f32 0.5, %v4709_v42  ;;  %v4713_v37 = vadd.f32 %v4661_v35, %v4424_v39  ;;  %v4663_v55 = vpop.f32.mrb[43].mxu0  ;;  %v4706_v45 = vpop.f32.mrb[43].mxu1  ;;  %v4715_v63 = vadd.f32 %v4704_v33, %v4426_v34  ;;  %v11166_v34 = vld [vmem:[%s11887_s1 + $0x28] ss:$16 sps:$4 sm:$0xff]  }
 0x68e   :  { %v4725_v15 = vmul.f32 0.5, %v4710_v41  ;;  %v4714_v59 = vadd.f32 %v4663_v55, %v4425_v58  ;;  %v8702_v17 = vpop.eup %8701  ;;  %v4716_v2 = vadd.f32 %v4706_v45, %v4427_v13  ;;  %v4735_v25 = vmul.f32 0.5, %v4712_v31  ;;  %v11147_v55 = vld [vmem:[%s11887_s1 + $0x24] ss:$16 sps:$4 sm:$0xff]   ;;  %v11152_v45 = vld [vmem:[%s11887_s1 + $0x2c] ss:$16 sps:$4 sm:$0xff]  }
 0x68f   :  { %8705 = vtanh.f32 %v4717_v36  ;;  %v4718_v0 = vmul.f32 0.5, %v4713_v37  ;;  %v4400_v11 = vmul.f32 %v8702_v17, %v4386_v10  ;;  %v11140_v36 = vld [vmem:[%s11887_s1 + $0x8] ss:$16 sps:$4 sm:$0xff]   ;;  %v11178_v17 = vld [vmem:[%s11887_s1 + $0x4c] ss:$16 sps:$4 sm:$0xff]  }
 0x690   :  { %8707 = vtanh.f32 %v4725_v15  ;;  %v4726_v5 = vmul.f32 0.5, %v4714_v59  ;;  %v8704_v12 = vpop.eup %8703  ;;  %v4736_v24 = vmul.f32 0.5, %v4716_v2  ;;  %v11161_v15 = vld [vmem:[%s11887_s1 + $0x20] ss:$16 sps:$4 sm:$0xff]   ;;  %v11173_v59 = vld [vmem:[%s11887_s1 + $0x44] ss:$16 sps:$4 sm:$0xff]  }
 0x691   :  { %8709 = vtanh.f32 %v4718_v0  ;;  %v4401_v62 = vmul.f32 %v8704_v12, %v4387_v56  ;;  %v11192_v0 = vld [vmem:[%s11887_s1 + $0x48] ss:$16 sps:$4 sm:$0xff]   ;;  %v11199_v10 = vld [vmem:[%s11887_s1 + $0x64] ss:$16 sps:$4 sm:$0xff]   ;;  %v11204_v56 = vld [vmem:[%s11887_s1 + $0x6c] ss:$16 sps:$4 sm:$0xff]  }
 0x692   :  { %8711 = vtanh.f32 %v4711_v61  ;;  %v11187_v61 = vld [vmem:[%s11887_s1 + $0x40] ss:$16 sps:$4 sm:$0xff]   ;;  %v11216_v12 = vld [vmem:[%s11887_s1 + $0x68] ss:$16 sps:$4 sm:$0xff]   ;;  %v11247_v13 = vld [vmem:[%s11887_s1 + $0xa4] ss:$16 sps:$4 sm:$0xff]  }
 0x693   :  { %8713 = vtanh.f32 %v4726_v5  ;;  %v7903_v22 = vpack.c.bf16 %v4401_v62, %v4400_v11  ;;  %v11211_v5 = vld [vmem:[%s11887_s1 + $0x60] ss:$16 sps:$4 sm:$0xff]   ;;  %v11240_v62 = vld [vmem:[%s11887_s1 + $0x88] ss:$16 sps:$4 sm:$0xff]  }
 0x694   :  { %8715 = vtanh.f32 %v4715_v63  ;;  %v11228_v63 = vld [vmem:[%s11887_s1 + $0x8c] ss:$16 sps:$4 sm:$0xff]   ;;  %v11235_v11 = vld [vmem:[%s11887_s1 + $0x80] ss:$16 sps:$4 sm:$0xff]   ;;  %v11264_v2 = vld [vmem:[%s11887_s1 + $0xa8] ss:$16 sps:$4 sm:$0xff]  }
 0x695   :  { %7923 = vst [vmem:[%s11891_s4 + $0x20] sm:$0xff] %v7903_v22   ;;  %5181 = vmatprep.mubr.bf16.mxu0 %v7903_v22  ;;  %5224 = vmatprep.mubr.bf16.mxu1 %v7903_v22  ;;  %8717 = vtanh.f32 %v4735_v25  ;;  %v11252_v22 = vld [vmem:[%s11887_s1 + $0xac] ss:$16 sps:$4 sm:$0xff]   ;;  %v11259_v31 = vld [vmem:[%s11887_s1 + $0xa0] ss:$16 sps:$4 sm:$0xff]  }
 0x696   :  { %8719 = vtanh.f32 %v4736_v24  ;;  %v11288_v25 = vld [vmem:[%s11887_s1 + $0xc8] ss:$16 sps:$4 sm:$0xff]   ;;  %v11300_v24 = vld [vmem:[%s11887_s1 + $0xec] ss:$16 sps:$4 sm:$0xff]  }
 0x699   :  { %v8706_v16 = vpop.eup %8705 }
 0x69a   :  { %v8708_v38 = vpop.eup %8707  ;;  %v4721_v23 = vmul.f32 0.5, %v8706_v16  ;;  %v11271_v16 = vld [vmem:[%s11887_s1 + $0xc4] ss:$16 sps:$4 sm:$0xff]  }
 0x69b   :  { %v4729_v4 = vmul.f32 0.5, %v8708_v38  ;;  %v8710_v9 = vpop.eup %8709  ;;  %v11276_v38 = vld [vmem:[%s11887_s1 + $0xcc] ss:$16 sps:$4 sm:$0xff]  }
 0x69c   :  { %v4723_v26 = vadd.f32 0.5, %v4721_v23  ;;  %v8712_v28 = vpop.eup %8711  ;;  %v4722_v29 = vmul.f32 0.5, %v8710_v9  ;;  %v11283_v23 = vld [vmem:[%s11887_s1 + $0xc0] ss:$16 sps:$4 sm:$0xff]  }
 0x69d   :  { %v4731_v43 = vadd.f32 0.5, %v4729_v4  ;;  %v8714_v57 = vpop.eup %8713  ;;  %v11295_v4 = vld [vmem:[%s11887_s1 + $0xe4] ss:$16 sps:$4 sm:$0xff]   ;;  %v11307_v9 = vld [vmem:[%s11887_s1 + $0xe0] ss:$16 sps:$4 sm:$0xff]  }
 0x69e   :  { %v4747_v14 = vmul.f32 %v8712_v28, %v4723_v26  ;;  %v4724_v3 = vadd.f32 0.5, %v4722_v29  ;;  %v4730_v20 = vmul.f32 0.5, %v8714_v57  ;;  %v8716_v50 = vpop.eup %8715  ;;  %v11312_v26 = vld [vmem:[%s11887_s1 + $0xe8] ss:$16 sps:$4 sm:$0xff]   ;;  %v11323_v28 = vld [vmem:[%s11888_s2 + $0x4] ss:$16 sps:$4 sm:$0xff]  }
 0x69f   :  { %v4745_v27 = vmul.f32 %v4731_v43, %v10978_v21  ;;  %v8718_v47 = vpop.eup %8717  ;;  %v11328_v43 = vld [vmem:[%s11888_s2 + $0xc] ss:$16 sps:$4 sm:$0xff]   ;;  %v11333_v29 = vld [vmem:[%s11888_s2] ss:$16 sps:$4 sm:$0xff]   ;;  %v11338_v57 = vld [vmem:[%s11888_s2 + $0x8] ss:$16 sps:$4 sm:$0xff]  }
 0x6a0   :  { %v4732_v30 = vadd.f32 0.5, %v4730_v20  ;;  %v4748_v19 = vmul.f32 %v8716_v50, %v4724_v3  ;;  %v8720_v49 = vpop.eup %8719  ;;  %v4739_v44 = vmul.f32 0.5, %v8718_v47  ;;  %12384 = vst [vmem:[#allocation9_spill] sm:$0xff] %v11328_v43  ;;  %12385 = vst [vmem:[#allocation10_spill] sm:$0xff] %v11333_v29  ;;  %v11357_v3 = vld [vmem:[%s11888_s2 + $0x20] ss:$16 sps:$4 sm:$0xff]  }
 0x6a1   :  { %v11125_v39 = vadd.f32 %v4747_v14, %v4745_v27  ;;  %v4740_v21 = vmul.f32 0.5, %v8720_v49  ;;  %12386 = vst [vmem:[#allocation11_spill] sm:$0xff] %v11338_v57  ;;  %v11347_v14 = vld [vmem:[%s11888_s2 + $0x24] ss:$16 sps:$4 sm:$0xff]   ;;  %v11352_v27 = vld [vmem:[%s11888_s2 + $0x2c] ss:$16 sps:$4 sm:$0xff]  }
 0x6a2   :  { %v4746_v58 = vmul.f32 %v4732_v30, %v10982_v6  ;;  %v4741_v48 = vadd.f32 0.5, %v4739_v44  ;;  %v11135_v6 = vld [vmem:[%s11887_s1] ss:$16 sps:$4 sm:$0xff]   ;;  %12387 = vst [vmem:[#allocation12_spill] sm:$0xff] %v11347_v14  ;;  %12388 = vst [vmem:[#allocation13_spill] sm:$0xff] %v11352_v27 }
 0x6a3   :  { %8721 = vtanh.f32 %v11125_v39  ;;  %v4742_v54 = vadd.f32 0.5, %v4740_v21  ;;  %12389 = vst [vmem:[#allocation14_spill] sm:$0xff] %v11357_v3  ;;  %v11362_v20 = vld [vmem:[%s11888_s2 + $0x28] ss:$16 sps:$4 sm:$0xff]   ;;  %v11371_v50 = vld [vmem:[%s11888_s2 + $0x44] ss:$16 sps:$4 sm:$0xff]  }
 0x6a4   :  { %v11129_v42 = vadd.f32 %v4748_v19, %v4746_v58  ;;  %12390 = vst [vmem:[#allocation15_spill] sm:$0xff] %v11362_v20  ;;  %12391 = vst [vmem:[#allocation16_spill] sm:$0xff] %v11371_v50  ;;  %v11376_v30 = vld [vmem:[%s11888_s2 + $0x4c] ss:$16 sps:$4 sm:$0xff]   ;;  %v11381_v19 = vld [vmem:[%s11888_s2 + $0x40] ss:$16 sps:$4 sm:$0xff]  }
 0x6a5   :  { %12392 = vst [vmem:[#allocation17_spill] sm:$0xff] %v11376_v30  ;;  %12393 = vst [vmem:[#allocation18_spill] sm:$0xff] %v11381_v19  ;;  %v11386_v58 = vld [vmem:[%s11888_s2 + $0x48] ss:$16 sps:$4 sm:$0xff]   ;;  %v11395_v47 = vld [vmem:[%s11888_s2 + $0x64] ss:$16 sps:$4 sm:$0xff]  }
 0x6a6   :  { %8723 = vtanh.f32 %v11129_v42  ;;  %12394 = vst [vmem:[#allocation19_spill] sm:$0xff] %v11386_v58  ;;  %12395 = vst [vmem:[#allocation20_spill] sm:$0xff] %v11395_v47  ;;  %v11400_v49 = vld [vmem:[%s11888_s2 + $0x6c] ss:$16 sps:$4 sm:$0xff]   ;;  %v11405_v44 = vld [vmem:[%s11888_s2 + $0x60] ss:$16 sps:$4 sm:$0xff]  }
 0x6a7   :  { %12396 = vst [vmem:[#allocation21_spill] sm:$0xff] %v11400_v49  ;;  %12397 = vst [vmem:[#allocation22_spill] sm:$0xff] %v11405_v44  ;;  %v11410_v21 = vld [vmem:[%s11888_s2 + $0x68] ss:$16 sps:$4 sm:$0xff]  }
 0x6a8   :  { %12398 = vst [vmem:[#allocation23_spill] sm:$0xff] %v11410_v21 }
 0x6ad   :  { %v8722_v51 = vpop.eup %8721 }
 0x6ae   :  { %v4755_v35 = vmul.f32 %v8722_v51, %v4741_v48  ;;  %v11419_v51 = vld [vmem:[%s11888_s2 + $0x84] ss:$16 sps:$4 sm:$0xff]   ;;  %v11424_v48 = vld [vmem:[%s11888_s2 + $0x8c] ss:$16 sps:$4 sm:$0xff]  }
 0x6af   :  { %12399 = vst [vmem:[#allocation24_spill] sm:$0xff] %v11419_v51  ;;  %12400 = vst [vmem:[#allocation25_spill] sm:$0xff] %v11424_v48 }
 0x6b0   :  { %v8724_v41 = vpop.eup %8723 }
 0x6b1   :  { %v4756_v33 = vmul.f32 %v8724_v41, %v4742_v54  ;;  %v11429_v54 = vld [vmem:[%s11888_s2 + $0x80] ss:$16 sps:$4 sm:$0xff]   ;;  %v11434_v41 = vld [vmem:[%s11888_s2 + $0x88] ss:$16 sps:$4 sm:$0xff]  }
 0x6b2   :  { %12401 = vst [vmem:[#allocation26_spill] sm:$0xff] %v11429_v54  ;;  %12402 = vst [vmem:[#allocation27_spill] sm:$0xff] %v11434_v41 }
 0x6b3   :  { %v11142_v37 = vpack.c.bf16 %v4756_v33, %v4755_v35  ;;  %v11443_v35 = vld [vmem:[%s11888_s2 + $0xa0] ss:$16 sps:$4 sm:$0xff]   ;;  %v11448_v33 = vld [vmem:[%s11888_s2 + $0xa4] ss:$16 sps:$4 sm:$0xff]  }
 0x6b4   :  { %12403 = vst [vmem:[#allocation31_spill] sm:$0xff] %v11443_v35  ;;  %12404 = vst [vmem:[#allocation30_spill] sm:$0xff] %v11448_v33 }
 0x6b5   :  { %5182 = vmatmul.mubr.bf16.vlgmr.msra.gmra.mrb[44].mxu0 %v11142_v37  ;;  %5225 = vmatmul.mubr.bf16.vlgmr.msra.gmra.mrb[44].mxu1 %v11142_v37 }
 0x6b6   :  { %5497 = vmatpush1.bf16.msra.mxu0 %v11135_v6  ;;  %5540 = vmatpush1.bf16.msra.mxu1 %v11140_v36 }
 0x6b7   :  { %5498 = vmatprep.subr.bf16.mxu0 %v11147_v55  ;;  %5541 = vmatprep.subr.bf16.mxu1 %v11152_v45 }
 0x6b8   :  { %5528 = vmatprep.mubr.bf16.mxu0 %v12109_v1  ;;  %5571 = vmatprep.mubr.bf16.mxu1 %v12109_v1 }
 0x6ba   :  { %5499 = vmatpush1.bf16.msra.mxu0 %v11161_v15  ;;  %5542 = vmatpush1.bf16.msra.mxu1 %v11166_v34 }
 0x6bb   :  { %5500 = vmatprep.subr.bf16.mxu0 %v11173_v59  ;;  %5543 = vmatprep.subr.bf16.mxu1 %v11178_v17 }
 0x6be   :  { %5501 = vmatpush1.bf16.msra.mxu0 %v11187_v61  ;;  %5544 = vmatpush1.bf16.msra.mxu1 %v11192_v0 }
 0x6bf   :  { %5502 = vmatprep.subr.bf16.mxu0 %v11199_v10  ;;  %5545 = vmatprep.subr.bf16.mxu1 %v11204_v56 }
 0x6c2   :  { %5503 = vmatpush1.bf16.msra.mxu0 %v11211_v5  ;;  %5546 = vmatpush1.bf16.msra.mxu1 %v11216_v12 }
 0x6c3   :  { %5504 = vmatprep.subr.bf16.mxu0 %v11223_v60  ;;  %5547 = vmatprep.subr.bf16.mxu1 %v11228_v63 }
 0x6c6   :  { %5505 = vmatpush1.bf16.msra.mxu0 %v11235_v11  ;;  %5548 = vmatpush1.bf16.msra.mxu1 %v11240_v62 }
 0x6c7   :  { %5506 = vmatprep.subr.bf16.mxu0 %v11247_v13  ;;  %5549 = vmatprep.subr.bf16.mxu1 %v11252_v22 }
 0x6ca   :  { %5507 = vmatpush1.bf16.msra.mxu0 %v11259_v31  ;;  %5550 = vmatpush1.bf16.msra.mxu1 %v11264_v2 }
 0x6cb   :  { %5508 = vmatprep.subr.bf16.mxu0 %v11271_v16  ;;  %5551 = vmatprep.subr.bf16.mxu1 %v11276_v38 }
 0x6ce   :  { %5509 = vmatpush1.bf16.msra.mxu0 %v11283_v23  ;;  %5552 = vmatpush1.bf16.msra.mxu1 %v11288_v25 }
 0x6cf   :  { %5510 = vmatprep.subr.bf16.mxu0 %v11295_v4  ;;  %5553 = vmatprep.subr.bf16.mxu1 %v11300_v24 }
 0x6d2   :  { %5511 = vmatpush1.bf16.msra.mxu0 %v11307_v9  ;;  %5554 = vmatpush1.bf16.msra.mxu1 %v11312_v26 }
 0x6d3   :  { %6022 = vmatprep.subr.bf16.mxu0 %v11323_v28  ;;  %6065 = vmatprep.subr.bf16.mxu1 %v11328_v43 }
 0x6d5   :  { %5529 = vmatmul.mubr.bf16.vlgmr.msra.gmra.mrb[48].mxu0 %v11142_v37  ;;  %5572 = vmatmul.mubr.bf16.vlgmr.msra.gmra.mrb[48].mxu1 %v11142_v37  ;;  %v11453_v37 = vld [vmem:[%s11888_s2 + $0xa8] ss:$16 sps:$4 sm:$0xff]  }
 0x6d6   :  { %6023 = vmatpush1.bf16.msra.mxu0 %v11333_v29  ;;  %6066 = vmatpush1.bf16.msra.mxu1 %v11338_v57  ;;  %12405 = vst [vmem:[#allocation29_spill] sm:$0xff] %v11453_v37 }
 0x6d7   :  { %6024 = vmatprep.subr.bf16.mxu0 %v11347_v14  ;;  %6067 = vmatprep.subr.bf16.mxu1 %v11352_v27 }
 0x6da   :  { %6025 = vmatpush1.bf16.msra.mxu0 %v11357_v3  ;;  %6068 = vmatpush1.bf16.msra.mxu1 %v11362_v20 }
 0x6db   :  { %6026 = vmatprep.subr.bf16.mxu0 %v11371_v50  ;;  %6069 = vmatprep.subr.bf16.mxu1 %v11376_v30 }
 0x6de   :  { %6027 = vmatpush1.bf16.msra.mxu0 %v11381_v19  ;;  %6070 = vmatpush1.bf16.msra.mxu1 %v11386_v58 }
 0x6df   :  { %6028 = vmatprep.subr.bf16.mxu0 %v11395_v47  ;;  %6071 = vmatprep.subr.bf16.mxu1 %v11400_v49 }
 0x6e2   :  { %6029 = vmatpush1.bf16.msra.mxu0 %v11405_v44  ;;  %6072 = vmatpush1.bf16.msra.mxu1 %v11410_v21 }
 0x6e3   :  { %6030 = vmatprep.subr.bf16.mxu0 %v11419_v51  ;;  %6073 = vmatprep.subr.bf16.mxu1 %v11424_v48  ;;  %v11472_v48 = vld [vmem:[%s11888_s2 + $0xcc] ss:$16 sps:$4 sm:$0xff]  }
 0x6e4   :  { %12408 = vst [vmem:[#allocation33_spill] sm:$0xff] %v11472_v48 }
 0x6e6   :  { %6031 = vmatpush1.bf16.msra.mxu0 %v11429_v54  ;;  %6074 = vmatpush1.bf16.msra.mxu1 %v11434_v41  ;;  %v11458_v54 = vld [vmem:[%s11888_s2 + $0xac] ss:$16 sps:$4 sm:$0xff]   ;;  %v11467_v41 = vld [vmem:[%s11888_s2 + $0xc4] ss:$16 sps:$4 sm:$0xff]  }
 0x6e7   :  { %12406 = vst [vmem:[#allocation28_spill] sm:$0xff] %v11458_v54  ;;  %6032 = vmatprep.subr.bf16.mxu0 %v11448_v33  ;;  %6075 = vmatprep.subr.bf16.mxu1 %v11458_v54  ;;  %12407 = vst [vmem:[#allocation32_spill] sm:$0xff] %v11467_v41  ;;  %v11477_v33 = vld [vmem:[%s11888_s2 + $0xc0] ss:$16 sps:$4 sm:$0xff]   ;;  %v11496_v54 = vld [vmem:[%s11888_s2 + $0xec] ss:$16 sps:$4 sm:$0xff]  }
 0x6e8   :  { %12409 = vst [vmem:[#allocation34_spill] sm:$0xff] %v11477_v33  ;;  %12412 = vst [vmem:[#allocation37_spill] sm:$0xff] %v11496_v54 }
 0x6ea   :  { %6033 = vmatpush1.bf16.msra.mxu0 %v11443_v35  ;;  %6076 = vmatpush1.bf16.msra.mxu1 %v11453_v37  ;;  %v11482_v35 = vld [vmem:[%s11888_s2 + $0xc8] ss:$16 sps:$4 sm:$0xff]   ;;  %v11491_v37 = vld [vmem:[%s11888_s2 + $0xe4] ss:$16 sps:$4 sm:$0xff]  }
 0x6eb   :  { %12410 = vst [vmem:[#allocation35_spill] sm:$0xff] %v11482_v35  ;;  %6034 = vmatprep.subr.bf16.mxu0 %v11467_v41  ;;  %6077 = vmatprep.subr.bf16.mxu1 %v11472_v48  ;;  %12411 = vst [vmem:[#allocation36_spill] sm:$0xff] %v11491_v37  ;;  %v11501_v41 = vld [vmem:[%s11888_s2 + $0xe0] ss:$16 sps:$4 sm:$0xff]   ;;  %v11520_v48 = vld [vmem:[%s11888_s2 + $0x10c] ss:$16 sps:$4 sm:$0xff]  }
 0x6ec   :  { %12413 = vst [vmem:[#allocation38_spill] sm:$0xff] %v11501_v41  ;;  %12416 = vst [vmem:[#allocation41_spill] sm:$0xff] %v11520_v48 }
 0x6ee   :  { %6035 = vmatpush1.bf16.msra.mxu0 %v11477_v33  ;;  %6078 = vmatpush1.bf16.msra.mxu1 %v11482_v35  ;;  %v11506_v33 = vld [vmem:[%s11888_s2 + $0xe8] ss:$16 sps:$4 sm:$0xff]   ;;  %v11515_v35 = vld [vmem:[%s11888_s2 + $0x104] ss:$16 sps:$4 sm:$0xff]  }
 0x6ef   :  { %12414 = vst [vmem:[#allocation39_spill] sm:$0xff] %v11506_v33  ;;  %6036 = vmatprep.subr.bf16.mxu0 %v11491_v37  ;;  %6079 = vmatprep.subr.bf16.mxu1 %v11496_v54  ;;  %12415 = vst [vmem:[#allocation40_spill] sm:$0xff] %v11515_v35  ;;  %v11525_v37 = vld [vmem:[%s11888_s2 + $0x100] ss:$16 sps:$4 sm:$0xff]   ;;  %v11544_v54 = vld [vmem:[%s11888_s2 + $0x12c] ss:$16 sps:$4 sm:$0xff]  }
 0x6f0   :  { %12417 = vst [vmem:[#allocation42_spill] sm:$0xff] %v11525_v37  ;;  %12420 = vst [vmem:[#allocation45_spill] sm:$0xff] %v11544_v54 }
 0x6f2   :  { %6037 = vmatpush1.bf16.msra.mxu0 %v11501_v41  ;;  %6080 = vmatpush1.bf16.msra.mxu1 %v11506_v33  ;;  %v11530_v41 = vld [vmem:[%s11888_s2 + $0x108] ss:$16 sps:$4 sm:$0xff]   ;;  %v11539_v33 = vld [vmem:[%s11888_s2 + $0x124] ss:$16 sps:$4 sm:$0xff]  }
 0x6f3   :  { %12418 = vst [vmem:[#allocation43_spill] sm:$0xff] %v11530_v41  ;;  %6038 = vmatprep.subr.bf16.mxu0 %v11515_v35  ;;  %6081 = vmatprep.subr.bf16.mxu1 %v11520_v48  ;;  %12419 = vst [vmem:[#allocation44_spill] sm:$0xff] %v11539_v33  ;;  %v11549_v35 = vld [vmem:[%s11888_s2 + $0x120] ss:$16 sps:$4 sm:$0xff]   ;;  %v11568_v48 = vld [vmem:[%s11888_s2 + $0x14c] ss:$16 sps:$4 sm:$0xff]  }
 0x6f4   :  { %12421 = vst [vmem:[#allocation46_spill] sm:$0xff] %v11549_v35  ;;  %12424 = vst [vmem:[#allocation49_spill] sm:$0xff] %v11568_v48 }
 0x6f6   :  { %6039 = vmatpush1.bf16.msra.mxu0 %v11525_v37  ;;  %6082 = vmatpush1.bf16.msra.mxu1 %v11530_v41  ;;  %v11554_v37 = vld [vmem:[%s11888_s2 + $0x128] ss:$16 sps:$4 sm:$0xff]   ;;  %v11563_v41 = vld [vmem:[%s11888_s2 + $0x144] ss:$16 sps:$4 sm:$0xff]  }
 0x6f7   :  { %12422 = vst [vmem:[#allocation47_spill] sm:$0xff] %v11554_v37  ;;  %6040 = vmatprep.subr.bf16.mxu0 %v11539_v33  ;;  %6083 = vmatprep.subr.bf16.mxu1 %v11544_v54  ;;  %12423 = vst [vmem:[#allocation48_spill] sm:$0xff] %v11563_v41  ;;  %v11573_v33 = vld [vmem:[%s11888_s2 + $0x140] ss:$16 sps:$4 sm:$0xff]   ;;  %v11592_v54 = vld [vmem:[%s11888_s2 + $0x16c] ss:$16 sps:$4 sm:$0xff]  }
 0x6f8   :  { %12425 = vst [vmem:[#allocation50_spill] sm:$0xff] %v11573_v33  ;;  %12428 = vst [vmem:[#allocation53_spill] sm:$0xff] %v11592_v54 }
 0x6fa   :  { %6041 = vmatpush1.bf16.msra.mxu0 %v11549_v35  ;;  %6084 = vmatpush1.bf16.msra.mxu1 %v11554_v37  ;;  %v11578_v35 = vld [vmem:[%s11888_s2 + $0x148] ss:$16 sps:$4 sm:$0xff]   ;;  %v11587_v37 = vld [vmem:[%s11888_s2 + $0x164] ss:$16 sps:$4 sm:$0xff]  }
 0x6fb   :  { %12426 = vst [vmem:[#allocation51_spill] sm:$0xff] %v11578_v35  ;;  %6042 = vmatprep.subr.bf16.mxu0 %v11563_v41  ;;  %6085 = vmatprep.subr.bf16.mxu1 %v11568_v48  ;;  %12427 = vst [vmem:[#allocation52_spill] sm:$0xff] %v11587_v37  ;;  %v11597_v41 = vld [vmem:[%s11888_s2 + $0x160] ss:$16 sps:$4 sm:$0xff]   ;;  %v11616_v48 = vld [vmem:[%s11888_s2 + $0x18c] ss:$16 sps:$4 sm:$0xff]  }
 0x6fc   :  { %12429 = vst [vmem:[#allocation54_spill] sm:$0xff] %v11597_v41  ;;  %12432 = vst [vmem:[#allocation57_spill] sm:$0xff] %v11616_v48 }
 0x6fe   :  { %6043 = vmatpush1.bf16.msra.mxu0 %v11573_v33  ;;  %6086 = vmatpush1.bf16.msra.mxu1 %v11578_v35  ;;  %v11602_v33 = vld [vmem:[%s11888_s2 + $0x168] ss:$16 sps:$4 sm:$0xff]   ;;  %v11611_v35 = vld [vmem:[%s11888_s2 + $0x184] ss:$16 sps:$4 sm:$0xff]  }
 0x6ff   :  { %12430 = vst [vmem:[#allocation55_spill] sm:$0xff] %v11602_v33  ;;  %6044 = vmatprep.subr.bf16.mxu0 %v11587_v37  ;;  %6087 = vmatprep.subr.bf16.mxu1 %v11592_v54  ;;  %12431 = vst [vmem:[#allocation56_spill] sm:$0xff] %v11611_v35  ;;  %v11621_v37 = vld [vmem:[%s11888_s2 + $0x180] ss:$16 sps:$4 sm:$0xff]   ;;  %v11640_v54 = vld [vmem:[%s11888_s2 + $0x1ac] ss:$16 sps:$4 sm:$0xff]  }
 0x700   :  { %12433 = vst [vmem:[#allocation58_spill] sm:$0xff] %v11621_v37  ;;  %12436 = vst [vmem:[#allocation61_spill] sm:$0xff] %v11640_v54 }
 0x702   :  { %6045 = vmatpush1.bf16.msra.mxu0 %v11597_v41  ;;  %6088 = vmatpush1.bf16.msra.mxu1 %v11602_v33  ;;  %v11626_v41 = vld [vmem:[%s11888_s2 + $0x188] ss:$16 sps:$4 sm:$0xff]   ;;  %v11635_v33 = vld [vmem:[%s11888_s2 + $0x1a4] ss:$16 sps:$4 sm:$0xff]  }
 0x703   :  { %12434 = vst [vmem:[#allocation59_spill] sm:$0xff] %v11626_v41  ;;  %6046 = vmatprep.subr.bf16.mxu0 %v11611_v35  ;;  %6089 = vmatprep.subr.bf16.mxu1 %v11616_v48  ;;  %12435 = vst [vmem:[#allocation60_spill] sm:$0xff] %v11635_v33  ;;  %v11645_v35 = vld [vmem:[%s11888_s2 + $0x1a0] ss:$16 sps:$4 sm:$0xff]   ;;  %v11664_v48 = vld [vmem:[%s11888_s2 + $0x1cc] ss:$16 sps:$4 sm:$0xff]  }
 0x704   :  { %12437 = vst [vmem:[#allocation62_spill] sm:$0xff] %v11645_v35  ;;  %12440 = vst [vmem:[#allocation65_spill] sm:$0xff] %v11664_v48 }
 0x706   :  { %6047 = vmatpush1.bf16.msra.mxu0 %v11621_v37  ;;  %6090 = vmatpush1.bf16.msra.mxu1 %v11626_v41  ;;  %v11650_v37 = vld [vmem:[%s11888_s2 + $0x1a8] ss:$16 sps:$4 sm:$0xff]   ;;  %v11659_v41 = vld [vmem:[%s11888_s2 + $0x1c4] ss:$16 sps:$4 sm:$0xff]  }
 0x707   :  { %12438 = vst [vmem:[#allocation63_spill] sm:$0xff] %v11650_v37  ;;  %6048 = vmatprep.subr.bf16.mxu0 %v11635_v33  ;;  %6091 = vmatprep.subr.bf16.mxu1 %v11640_v54  ;;  %12439 = vst [vmem:[#allocation64_spill] sm:$0xff] %v11659_v41  ;;  %v11669_v33 = vld [vmem:[%s11888_s2 + $0x1c0] ss:$16 sps:$4 sm:$0xff]   ;;  %v11688_v54 = vld [vmem:[%s11888_s2 + $0x1ec] ss:$16 sps:$4 sm:$0xff]  }
 0x708   :  { %12441 = vst [vmem:[#allocation66_spill] sm:$0xff] %v11669_v33  ;;  %12444 = vst [vmem:[#allocation69_spill] sm:$0xff] %v11688_v54 }
 0x70a   :  { %6049 = vmatpush1.bf16.msra.mxu0 %v11645_v35  ;;  %6092 = vmatpush1.bf16.msra.mxu1 %v11650_v37  ;;  %v11674_v35 = vld [vmem:[%s11888_s2 + $0x1c8] ss:$16 sps:$4 sm:$0xff]   ;;  %v11683_v37 = vld [vmem:[%s11888_s2 + $0x1e4] ss:$16 sps:$4 sm:$0xff]  }
 0x70b   :  { %12442 = vst [vmem:[#allocation67_spill] sm:$0xff] %v11674_v35  ;;  %6050 = vmatprep.subr.bf16.mxu0 %v11659_v41  ;;  %6093 = vmatprep.subr.bf16.mxu1 %v11664_v48  ;;  %12443 = vst [vmem:[#allocation68_spill] sm:$0xff] %v11683_v37  ;;  %v11693_v41 = vld [vmem:[%s11888_s2 + $0x1e0] ss:$16 sps:$4 sm:$0xff]  }
 0x70c   :  { %12445 = vst [vmem:[#allocation70_spill] sm:$0xff] %v11693_v41 }
 0x70e   :  { %6051 = vmatpush1.bf16.msra.mxu0 %v11669_v33  ;;  %6094 = vmatpush1.bf16.msra.mxu1 %v11674_v35  ;;  %v11698_v33 = vld [vmem:[%s11888_s2 + $0x1e8] ss:$16 sps:$4 sm:$0xff]  }
 0x70f   :  { %12446 = vst [vmem:[#allocation71_spill] sm:$0xff] %v11698_v33  ;;  %6052 = vmatprep.subr.bf16.mxu0 %v11683_v37  ;;  %6095 = vmatprep.subr.bf16.mxu1 %v11688_v54 }
 0x712   :  { %6053 = vmatpush1.bf16.msra.mxu0 %v11693_v41  ;;  %6096 = vmatpush1.bf16.msra.mxu1 %v11698_v33 }
 0x713   :  { %6369 = vmatprep.subr.bf16.mxu0 %v11084_v32  ;;  %6412 = vmatprep.subr.bf16.mxu1 %v11089_v40 }
 0x788   :  { %v5183_v35 = vpop.f32.mrb[44].mxu0  ;;  %v5226_v48 = vpop.f32.mrb[44].mxu1 }
 0x789   :  { %v5184_v51 = vadd.f32 %v5183_v35, %v12378_v53  ;;  %v5185_v21 = vpop.f32.mrb[45].mxu0  ;;  %v5228_v44 = vpop.f32.mrb[45].mxu1  ;;  %v5227_v40 = vadd.f32 %v5226_v48, %v12380_v7 }
 0x78a   :  { %v5186_v49 = vadd.f32 %v5185_v21, %v12379_v52  ;;  %v5187_v47 = vpop.f32.mrb[46].mxu0  ;;  %v5230_v37 = vpop.f32.mrb[46].mxu1  ;;  %v5229_v21 = vadd.f32 %v5228_v44, %v12381_v8 }
 0x78b   :  { %v5235_v58 = vmul.f32 0.5, %v5184_v51  ;;  %v5188_v54 = vadd.f32 %v5187_v47, %v12378_v53  ;;  %v5189_v41 = vpop.f32.mrb[47].mxu0  ;;  %v5232_v19 = vpop.f32.mrb[47].mxu1  ;;  %v5231_v50 = vadd.f32 %v5230_v37, %v12380_v7 }
 0x78c   :  { %v5243_v33 = vmul.f32 0.5, %v5186_v49  ;;  %v5190_v32 = vadd.f32 %v5189_v41, %v12379_v52  ;;  %v5233_v47 = vadd.f32 %v5232_v19, %v12381_v8  ;;  %v5253_v41 = vmul.f32 0.5, %v5229_v21 }
 0x78d   :  { %8725 = vtanh.f32 %v5235_v58  ;;  %v5236_v30 = vmul.f32 0.5, %v5188_v54 }
 0x78e   :  { %8727 = vtanh.f32 %v5243_v33  ;;  %v5244_v35 = vmul.f32 0.5, %v5190_v32  ;;  %v5254_v52 = vmul.f32 0.5, %v5233_v47 }
 0x78f   :  { %8729 = vtanh.f32 %v5236_v30 }
 0x790   :  { %8731 = vtanh.f32 %v5227_v40 }
 0x791   :  { %8733 = vtanh.f32 %v5244_v35 }
 0x792   :  { %8735 = vtanh.f32 %v5231_v50 }
 0x793   :  { %8737 = vtanh.f32 %v5253_v41 }
 0x794   :  { %8739 = vtanh.f32 %v5254_v52 }
 0x797   :  { %v8726_v51 = vpop.eup %8725 }
 0x798   :  { %v8728_v49 = vpop.eup %8727  ;;  %v5239_v53 = vmul.f32 0.5, %v8726_v51 }
 0x799   :  { %v5247_v58 = vmul.f32 0.5, %v8728_v49  ;;  %v8730_v48 = vpop.eup %8729 }
 0x79a   :  { %v5241_v54 = vadd.f32 0.5, %v5239_v53  ;;  %v8732_v33 = vpop.eup %8731  ;;  %v5240_v30 = vmul.f32 0.5, %v8730_v48  ;;  %v7656_v53 = vld [vmem:[%s11889_s0 + $0xc0] sm:$0xff] }
 0x79b   :  { %v5249_v32 = vadd.f32 0.5, %v5247_v58  ;;  %v8734_v20 = vpop.eup %8733  ;;  %v5293_v52 = vunpack.c.l.bf16 %v7656_v53  ;;  %v5294_v41 = vunpack.c.h.bf16 %v7656_v53 }
 0x79c   :  { %v5265_v37 = vmul.f32 %v8732_v33, %v5241_v54  ;;  %v5242_v44 = vadd.f32 0.5, %v5240_v30  ;;  %v5248_v50 = vmul.f32 0.5, %v8734_v20  ;;  %v8736_v19 = vpop.eup %8735 }
 0x79d   :  { %v5263_v40 = vmul.f32 %v5249_v32, %v11102_v46  ;;  %v7658_v46 = vld [vmem:[%s11889_s0 + $0xd0] sm:$0xff]  ;;  %v8738_v20 = vpop.eup %8737 }
 0x79e   :  { %v5250_v51 = vadd.f32 0.5, %v5248_v50  ;;  %v5266_v21 = vmul.f32 %v8736_v19, %v5242_v44  ;;  %v8740_v58 = vpop.eup %8739  ;;  %v5297_v48 = vunpack.c.l.bf16 %v7658_v46  ;;  %v5298_v32 = vunpack.c.h.bf16 %v7658_v46  ;;  %v7659_v50 = vld [vmem:[%s11889_s0 + $0xd8] sm:$0xff] }
 0x79f   :  { %v11715_v35 = vadd.f32 %v5265_v37, %v5263_v40  ;;  %v5257_v19 = vmul.f32 0.5, %v8738_v20  ;;  %v5299_v27 = vunpack.c.l.bf16 %v7659_v50 }
 0x7a0   :  { %v5264_v47 = vmul.f32 %v5250_v51, %v11109_v18  ;;  %v7657_v18 = vld [vmem:[%s11889_s0 + $0xc8] sm:$0xff]  ;;  %v5258_v51 = vmul.f32 0.5, %v8740_v58 }
 0x7a1   :  { %12447 = vst [vmem:[#allocation72_spill] sm:$0xff] %v11715_v35  ;;  %8741 = vtanh.f32 %v11715_v35  ;;  %v5295_v37 = vunpack.c.l.bf16 %v7657_v18  ;;  %v5259_v57 = vadd.f32 0.5, %v5257_v19  ;;  %v5296_v58 = vunpack.c.h.bf16 %v7657_v18 }
 0x7a2   :  { %v11722_v49 = vadd.f32 %v5266_v21, %v5264_v47  ;;  %v5260_v29 = vadd.f32 0.5, %v5258_v51 }
 0x7a4   :  { %12448 = vst [vmem:[#allocation73_spill] sm:$0xff] %v11722_v49  ;;  %8743 = vtanh.f32 %v11722_v49 }
 0x7a8   :  { %v5530_v54 = vpop.f32.mrb[48].mxu0  ;;  %v5573_v33 = vpop.f32.mrb[48].mxu1 }
 0x7a9   :  { %v5582_v30 = vadd.f32 %v5530_v54, %v5293_v52  ;;  %v5532_v40 = vpop.f32.mrb[49].mxu0  ;;  %v5575_v44 = vpop.f32.mrb[49].mxu1  ;;  %v5584_v54 = vadd.f32 %v5573_v33, %v5295_v37 }
 0x7aa   :  { %v5583_v21 = vadd.f32 %v5532_v40, %v5294_v41  ;;  %v5534_v47 = vpop.f32.mrb[50].mxu0  ;;  %v5577_v49 = vpop.f32.mrb[50].mxu1 }
 0x7ab   :  { %v5590_v35 = vmul.f32 0.5, %v5582_v30  ;;  %v5586_v53 = vadd.f32 %v5534_v47, %v5297_v48  ;;  %v5536_v8 = vpop.f32.mrb[51].mxu0  ;;  %v5579_v7 = vpop.f32.mrb[51].mxu1  ;;  %v5588_v41 = vadd.f32 %v5577_v49, %v5299_v27  ;;  %v5300_v48 = vunpack.c.h.bf16 %v7659_v50 }
 0x7ac   :  { %v5598_v3 = vmul.f32 0.5, %v5583_v21  ;;  %v5587_v46 = vadd.f32 %v5536_v8, %v5298_v32  ;;  %v8742_v52 = vpop.eup %8741  ;;  %v5585_v47 = vadd.f32 %v5575_v44, %v5296_v58 }
 0x7ad   :  { %8745 = vtanh.f32 %v5590_v35  ;;  %v5591_v14 = vmul.f32 0.5, %v5586_v53  ;;  %v5273_v40 = vmul.f32 %v8742_v52, %v5259_v57  ;;  %v5589_v8 = vadd.f32 %v5579_v7, %v5300_v48 }
 0x7ae   :  { %8747 = vtanh.f32 %v5598_v3  ;;  %v5599_v43 = vmul.f32 0.5, %v5587_v46  ;;  %v8744_v20 = vpop.eup %8743 }
 0x7af   :  { %8749 = vtanh.f32 %v5591_v14  ;;  %v5274_v30 = vmul.f32 %v8744_v20, %v5260_v29  ;;  %v5608_v14 = vmul.f32 0.5, %v5585_v47  ;;  %v5609_v57 = vmul.f32 0.5, %v5589_v8 }
 0x7b0   :  { %8751 = vtanh.f32 %v5584_v54 }
 0x7b1   :  { %8753 = vtanh.f32 %v5599_v43  ;;  %v7908_v21 = vpack.c.bf16 %v5274_v30, %v5273_v40 }
 0x7b2   :  { %8755 = vtanh.f32 %v5588_v41 }
 0x7b3   :  { %7924 = vst [vmem:[%s11891_s4 + $0x28] sm:$0xff] %v7908_v21   ;;  %6054 = vmatprep.mubr.bf16.mxu0 %v7908_v21  ;;  %6097 = vmatprep.mubr.bf16.mxu1 %v7908_v21  ;;  %8757 = vtanh.f32 %v5608_v14  ;;  %v12483_v14 = vld [vmem:[#allocation43_spill] sm:$0xff] }
 0x7b4   :  { %8759 = vtanh.f32 %v5609_v57  ;;  %v12485_v57 = vld [vmem:[#allocation45_spill] sm:$0xff] }
 0x7b7   :  { %v8746_v3 = vpop.eup %8745 }
 0x7b8   :  { %v8748_v35 = vpop.eup %8747  ;;  %v5594_v18 = vmul.f32 0.5, %v8746_v3 }
 0x7b9   :  { %v5602_v27 = vmul.f32 0.5, %v8748_v35  ;;  %v8750_v29 = vpop.eup %8749 }
 0x7ba   :  { %v5596_v49 = vadd.f32 0.5, %v5594_v18  ;;  %v8752_v33 = vpop.eup %8751  ;;  %v5595_v32 = vmul.f32 0.5, %v8750_v29  ;;  %v12482_v18 = vld [vmem:[#allocation42_spill] sm:$0xff] }
 0x7bb   :  { %v5604_v43 = vadd.f32 0.5, %v5602_v27  ;;  %v8754_v37 = vpop.eup %8753  ;;  %v12484_v27 = vld [vmem:[#allocation44_spill] sm:$0xff]  ;;  %v12486_v29 = vld [vmem:[#allocation46_spill] sm:$0xff] }
 0x7bc   :  { %v5620_v44 = vmul.f32 %v8752_v33, %v5596_v49  ;;  %v5597_v19 = vadd.f32 0.5, %v5595_v32  ;;  %v5603_v51 = vmul.f32 0.5, %v8754_v37  ;;  %v8756_v7 = vpop.eup %8755  ;;  %v12487_v49 = vld [vmem:[#allocation47_spill] sm:$0xff]  ;;  %v12488_v33 = vld [vmem:[#allocation48_spill] sm:$0xff]  ;;  %v12490_v32 = vld [vmem:[#allocation50_spill] sm:$0xff] }
 0x7bd   :  { %v5618_v50 = vmul.f32 %v5604_v43, %v11125_v39  ;;  %v8758_v58 = vpop.eup %8757  ;;  %v12489_v43 = vld [vmem:[#allocation49_spill] sm:$0xff]  ;;  %v12491_v37 = vld [vmem:[#allocation51_spill] sm:$0xff] }
 0x7be   :  { %v5605_v46 = vadd.f32 0.5, %v5603_v51  ;;  %v5621_v52 = vmul.f32 %v8756_v7, %v5597_v19  ;;  %v8760_v41 = vpop.eup %8759  ;;  %v5612_v40 = vmul.f32 0.5, %v8758_v58  ;;  %v12494_v19 = vld [vmem:[#allocation54_spill] sm:$0xff]  ;;  %v12495_v51 = vld [vmem:[#allocation55_spill] sm:$0xff]  ;;  %v12496_v7 = vld [vmem:[#allocation56_spill] sm:$0xff] }
 0x7bf   :  { %v11738_v53 = vadd.f32 %v5620_v44, %v5618_v50  ;;  %v5613_v39 = vmul.f32 0.5, %v8760_v41  ;;  %v12492_v44 = vld [vmem:[#allocation52_spill] sm:$0xff]  ;;  %v12493_v50 = vld [vmem:[#allocation53_spill] sm:$0xff] }
 0x7c0   :  { %v5619_v54 = vmul.f32 %v5605_v46, %v11129_v42  ;;  %v5614_v48 = vadd.f32 0.5, %v5612_v40  ;;  %v12450_v42 = vld [vmem:[#allocation10_spill] sm:$0xff]  ;;  %v12497_v46 = vld [vmem:[#allocation57_spill] sm:$0xff]  ;;  %v12500_v58 = vld [vmem:[#allocation60_spill] sm:$0xff] }
 0x7c1   :  { %8761 = vtanh.f32 %v11738_v53  ;;  %v5615_v21 = vadd.f32 0.5, %v5613_v39  ;;  %v12501_v41 = vld [vmem:[#allocation61_spill] sm:$0xff]  ;;  %v12502_v40 = vld [vmem:[#allocation62_spill] sm:$0xff]  ;;  %v12503_v39 = vld [vmem:[#allocation63_spill] sm:$0xff] }
 0x7c2   :  { %v11742_v20 = vadd.f32 %v5621_v52, %v5619_v54  ;;  %v12498_v52 = vld [vmem:[#allocation58_spill] sm:$0xff]  ;;  %v12499_v54 = vld [vmem:[#allocation59_spill] sm:$0xff] }
 0x7c4   :  { %8763 = vtanh.f32 %v11742_v20 }
 0x7cb   :  { %v8762_v30 = vpop.eup %8761 }
 0x7cc   :  { %v5628_v8 = vmul.f32 %v8762_v30, %v5614_v48  ;;  %v12504_v30 = vld [vmem:[#allocation64_spill] sm:$0xff]  ;;  %v12505_v48 = vld [vmem:[#allocation65_spill] sm:$0xff] }
 0x7ce   :  { %v8764_v47 = vpop.eup %8763 }
 0x7cf   :  { %v5629_v3 = vmul.f32 %v8764_v47, %v5615_v21  ;;  %v12506_v21 = vld [vmem:[#allocation66_spill] sm:$0xff]  ;;  %v12507_v47 = vld [vmem:[#allocation67_spill] sm:$0xff] }
 0x7d1   :  { %v5636_v35 = vpack.c.bf16 %v5629_v3, %v5628_v8  ;;  %v12508_v8 = vld [vmem:[#allocation68_spill] sm:$0xff]  ;;  %v12509_v3 = vld [vmem:[#allocation69_spill] sm:$0xff] }
 0x7d3   :  { %6055 = vmatmul.mubr.bf16.vlgmr.msra.gmra.mrb[52].mxu0 %v5636_v35  ;;  %6098 = vmatmul.mubr.bf16.vlgmr.msra.gmra.mrb[52].mxu1 %v5636_v35 }
 0x7d4   :  { %6370 = vmatpush1.bf16.msra.mxu0 %v11135_v6  ;;  %6413 = vmatpush1.bf16.msra.mxu1 %v11140_v36  ;;  %v12451_v6 = vld [vmem:[#allocation11_spill] sm:$0xff]  ;;  %v12452_v36 = vld [vmem:[#allocation12_spill] sm:$0xff] }
 0x7d5   :  { %6371 = vmatprep.subr.bf16.mxu0 %v11147_v55  ;;  %6414 = vmatprep.subr.bf16.mxu1 %v11152_v45  ;;  %v12453_v55 = vld [vmem:[#allocation13_spill] sm:$0xff]  ;;  %v12454_v45 = vld [vmem:[#allocation14_spill] sm:$0xff] }
 0x7d6   :  { %6401 = vmatprep.mubr.bf16.mxu0 %v12109_v1  ;;  %6444 = vmatprep.mubr.bf16.mxu1 %v12109_v1  ;;  %v12449_v1 = vld [vmem:[#allocation9_spill] sm:$0xff] }
 0x7d8   :  { %6372 = vmatpush1.bf16.msra.mxu0 %v11161_v15  ;;  %6415 = vmatpush1.bf16.msra.mxu1 %v11166_v34  ;;  %v12455_v15 = vld [vmem:[#allocation15_spill] sm:$0xff]  ;;  %v12456_v34 = vld [vmem:[#allocation16_spill] sm:$0xff] }
 0x7d9   :  { %6373 = vmatprep.subr.bf16.mxu0 %v11173_v59  ;;  %6416 = vmatprep.subr.bf16.mxu1 %v11178_v17  ;;  %v12457_v59 = vld [vmem:[#allocation17_spill] sm:$0xff]  ;;  %v12458_v17 = vld [vmem:[#allocation18_spill] sm:$0xff] }
 0x7dc   :  { %6374 = vmatpush1.bf16.msra.mxu0 %v11187_v61  ;;  %6417 = vmatpush1.bf16.msra.mxu1 %v11192_v0  ;;  %v12459_v61 = vld [vmem:[#allocation19_spill] sm:$0xff]  ;;  %v12460_v0 = vld [vmem:[#allocation20_spill] sm:$0xff] }
 0x7dd   :  { %6375 = vmatprep.subr.bf16.mxu0 %v11199_v10  ;;  %6418 = vmatprep.subr.bf16.mxu1 %v11204_v56  ;;  %v12461_v10 = vld [vmem:[#allocation21_spill] sm:$0xff]  ;;  %v12462_v56 = vld [vmem:[#allocation22_spill] sm:$0xff] }
 0x7e0   :  { %6376 = vmatpush1.bf16.msra.mxu0 %v11211_v5  ;;  %6419 = vmatpush1.bf16.msra.mxu1 %v11216_v12  ;;  %v12463_v5 = vld [vmem:[#allocation23_spill] sm:$0xff]  ;;  %v12464_v12 = vld [vmem:[#allocation24_spill] sm:$0xff] }
 0x7e1   :  { %6377 = vmatprep.subr.bf16.mxu0 %v11223_v60  ;;  %6420 = vmatprep.subr.bf16.mxu1 %v11228_v63  ;;  %v12465_v60 = vld [vmem:[#allocation25_spill] sm:$0xff]  ;;  %v12466_v63 = vld [vmem:[#allocation26_spill] sm:$0xff] }
 0x7e4   :  { %6378 = vmatpush1.bf16.msra.mxu0 %v11235_v11  ;;  %6421 = vmatpush1.bf16.msra.mxu1 %v11240_v62  ;;  %v12467_v11 = vld [vmem:[#allocation27_spill] sm:$0xff]  ;;  %v12468_v62 = vld [vmem:[#allocation30_spill] sm:$0xff] }
 0x7e5   :  { %6379 = vmatprep.subr.bf16.mxu0 %v11247_v13  ;;  %6422 = vmatprep.subr.bf16.mxu1 %v11252_v22  ;;  %v12469_v13 = vld [vmem:[#allocation28_spill] sm:$0xff]  ;;  %v12470_v22 = vld [vmem:[#allocation31_spill] sm:$0xff] }
 0x7e8   :  { %6380 = vmatpush1.bf16.msra.mxu0 %v11259_v31  ;;  %6423 = vmatpush1.bf16.msra.mxu1 %v11264_v2  ;;  %v12471_v31 = vld [vmem:[#allocation29_spill] sm:$0xff]  ;;  %v12472_v2 = vld [vmem:[#allocation32_spill] sm:$0xff] }
 0x7e9   :  { %6381 = vmatprep.subr.bf16.mxu0 %v11271_v16  ;;  %6424 = vmatprep.subr.bf16.mxu1 %v11276_v38  ;;  %v12473_v16 = vld [vmem:[#allocation33_spill] sm:$0xff]  ;;  %v12474_v38 = vld [vmem:[#allocation34_spill] sm:$0xff] }
 0x7ec   :  { %6382 = vmatpush1.bf16.msra.mxu0 %v11283_v23  ;;  %6425 = vmatpush1.bf16.msra.mxu1 %v11288_v25  ;;  %v12475_v23 = vld [vmem:[#allocation35_spill] sm:$0xff]  ;;  %v12476_v25 = vld [vmem:[#allocation36_spill] sm:$0xff] }
 0x7ed   :  { %6383 = vmatprep.subr.bf16.mxu0 %v11295_v4  ;;  %6426 = vmatprep.subr.bf16.mxu1 %v11300_v24  ;;  %v12477_v4 = vld [vmem:[#allocation37_spill] sm:$0xff]  ;;  %v12478_v24 = vld [vmem:[#allocation38_spill] sm:$0xff] }
 0x7f0   :  { %6384 = vmatpush1.bf16.msra.mxu0 %v11307_v9  ;;  %6427 = vmatpush1.bf16.msra.mxu1 %v11312_v26  ;;  %v12479_v9 = vld [vmem:[#allocation39_spill] sm:$0xff]  ;;  %v12480_v26 = vld [vmem:[#allocation40_spill] sm:$0xff] }
 0x7f1   :  { %6895 = vmatprep.subr.bf16.mxu0 %v11323_v28  ;;  %6938 = vmatprep.subr.bf16.mxu1 %v12449_v1  ;;  %v12481_v28 = vld [vmem:[#allocation41_spill] sm:$0xff]  ;;  %v12511_v1 = vld [vmem:[#allocation71_spill] sm:$0xff] }
 0x7f3   :  { %6402 = vmatmul.mubr.bf16.vlgmr.msra.gmra.mrb[56].mxu0 %v5636_v35  ;;  %6445 = vmatmul.mubr.bf16.vlgmr.msra.gmra.mrb[56].mxu1 %v5636_v35  ;;  %v12510_v35 = vld [vmem:[#allocation70_spill] sm:$0xff] }
 0x7f4   :  { %6896 = vmatpush1.bf16.msra.mxu0 %v12450_v42  ;;  %6939 = vmatpush1.bf16.msra.mxu1 %v12451_v6 }
 0x7f5   :  { %6897 = vmatprep.subr.bf16.mxu0 %v12452_v36  ;;  %6940 = vmatprep.subr.bf16.mxu1 %v12453_v55  ;;  %v12512_v36 = vld [vmem:[#allocation5_spill] sm:$0xff] }
 0x7f8   :  { %6898 = vmatpush1.bf16.msra.mxu0 %v12454_v45  ;;  %6941 = vmatpush1.bf16.msra.mxu1 %v12455_v15 }
 0x7f9   :  { %6899 = vmatprep.subr.bf16.mxu0 %v12456_v34  ;;  %6942 = vmatprep.subr.bf16.mxu1 %v12457_v59  ;;  %v12513_v34 = vld [vmem:[#allocation6_spill] sm:$0xff] }
 0x7fc   :  { %6900 = vmatpush1.bf16.msra.mxu0 %v12458_v17  ;;  %6943 = vmatpush1.bf16.msra.mxu1 %v12459_v61 }
 0x7fd   :  { %6901 = vmatprep.subr.bf16.mxu0 %v12460_v0  ;;  %6944 = vmatprep.subr.bf16.mxu1 %v12461_v10 }
 0x800   :  { %6902 = vmatpush1.bf16.msra.mxu0 %v12462_v56  ;;  %6945 = vmatpush1.bf16.msra.mxu1 %v12463_v5 }
 0x801   :  { %6903 = vmatprep.subr.bf16.mxu0 %v12464_v12  ;;  %6946 = vmatprep.subr.bf16.mxu1 %v12465_v60 }
 0x804   :  { %6904 = vmatpush1.bf16.msra.mxu0 %v12466_v63  ;;  %6947 = vmatpush1.bf16.msra.mxu1 %v12467_v11  ;;  %v12514_v63 = vld [vmem:[#allocation7_spill] sm:$0xff] }
 0x805   :  { %6905 = vmatprep.subr.bf16.mxu0 %v12468_v62  ;;  %6948 = vmatprep.subr.bf16.mxu1 %v12469_v13 }
 0x808   :  { %6906 = vmatpush1.bf16.msra.mxu0 %v12470_v22  ;;  %6949 = vmatpush1.bf16.msra.mxu1 %v12471_v31  ;;  %v12515_v31 = vld [vmem:[#allocation8_spill] sm:$0xff] }
 0x809   :  { %6907 = vmatprep.subr.bf16.mxu0 %v12472_v2  ;;  %6950 = vmatprep.subr.bf16.mxu1 %v12473_v16 }
 0x80c   :  { %6908 = vmatpush1.bf16.msra.mxu0 %v12474_v38  ;;  %6951 = vmatpush1.bf16.msra.mxu1 %v12475_v23 }
 0x80d   :  { %6909 = vmatprep.subr.bf16.mxu0 %v12476_v25  ;;  %6952 = vmatprep.subr.bf16.mxu1 %v12477_v4 }
 0x810   :  { %6910 = vmatpush1.bf16.msra.mxu0 %v12478_v24  ;;  %6953 = vmatpush1.bf16.msra.mxu1 %v12479_v9 }
 0x811   :  { %6911 = vmatprep.subr.bf16.mxu0 %v12480_v26  ;;  %6954 = vmatprep.subr.bf16.mxu1 %v12481_v28 }
 0x814   :  { %6912 = vmatpush1.bf16.msra.mxu0 %v12482_v18  ;;  %6955 = vmatpush1.bf16.msra.mxu1 %v12483_v14 }
 0x815   :  { %6913 = vmatprep.subr.bf16.mxu0 %v12484_v27  ;;  %6956 = vmatprep.subr.bf16.mxu1 %v12485_v57 }
 0x818   :  { %6914 = vmatpush1.bf16.msra.mxu0 %v12486_v29  ;;  %6957 = vmatpush1.bf16.msra.mxu1 %v12487_v49  ;;  %v12516_v49 = vld [vmem:[#allocation72_spill] sm:$0xff] }
 0x819   :  { %6915 = vmatprep.subr.bf16.mxu0 %v12488_v33  ;;  %6958 = vmatprep.subr.bf16.mxu1 %v12489_v43 }
 0x81c   :  { %6916 = vmatpush1.bf16.msra.mxu0 %v12490_v32  ;;  %6959 = vmatpush1.bf16.msra.mxu1 %v12491_v37 }
 0x81d   :  { %6917 = vmatprep.subr.bf16.mxu0 %v12492_v44  ;;  %6960 = vmatprep.subr.bf16.mxu1 %v12493_v50 }
 0x820   :  { %6918 = vmatpush1.bf16.msra.mxu0 %v12494_v19  ;;  %6961 = vmatpush1.bf16.msra.mxu1 %v12495_v51  ;;  %v12517_v51 = vld [vmem:[#allocation73_spill] sm:$0xff] }
 0x821   :  { %6919 = vmatprep.subr.bf16.mxu0 %v12496_v7  ;;  %6962 = vmatprep.subr.bf16.mxu1 %v12497_v46  ;;  %v7760_v46 = vld [vmem:[%s11889_s0 + $0xe0] sm:$0xff] }
 0x824   :  { %6920 = vmatpush1.bf16.msra.mxu0 %v12498_v52  ;;  %6963 = vmatpush1.bf16.msra.mxu1 %v12499_v54  ;;  %v7762_v54 = vld [vmem:[%s11889_s0 + $0xf0] sm:$0xff] }
 0x825   :  { %6921 = vmatprep.subr.bf16.mxu0 %v12500_v58  ;;  %6964 = vmatprep.subr.bf16.mxu1 %v12501_v41  ;;  %v6166_v58 = vunpack.c.l.bf16 %v7760_v46 }
 0x828   :  { %6922 = vmatpush1.bf16.msra.mxu0 %v12502_v40  ;;  %6965 = vmatpush1.bf16.msra.mxu1 %v12503_v39  ;;  %v7761_v40 = vld [vmem:[%s11889_s0 + $0xe8] sm:$0xff]  ;;  %v6167_v39 = vunpack.c.h.bf16 %v7760_v46 }
 0x829   :  { %6923 = vmatprep.subr.bf16.mxu0 %v12504_v30  ;;  %6966 = vmatprep.subr.bf16.mxu1 %v12505_v48  ;;  %v6170_v48 = vunpack.c.l.bf16 %v7762_v54 }
 0x82c   :  { %6924 = vmatpush1.bf16.msra.mxu0 %v12506_v21  ;;  %6967 = vmatpush1.bf16.msra.mxu1 %v12507_v47 }
 0x82d   :  { %6925 = vmatprep.subr.bf16.mxu0 %v12508_v8  ;;  %6968 = vmatprep.subr.bf16.mxu1 %v12509_v3  ;;  %v6171_v8 = vunpack.c.h.bf16 %v7762_v54 }
 0x830   :  { %6926 = vmatpush1.bf16.msra.mxu0 %v12510_v35  ;;  %6969 = vmatpush1.bf16.msra.mxu1 %v12511_v1  ;;  %v6168_v35 = vunpack.c.l.bf16 %v7761_v40 }
 0x8a6   :  { %v6056_v42 = vpop.f32.mrb[52].mxu0  ;;  %v6099_v6 = vpop.f32.mrb[52].mxu1 }
 0x8a7   :  { %v6057_v55 = vadd.f32 %v6056_v42, %v12512_v36  ;;  %v6058_v45 = vpop.f32.mrb[53].mxu0  ;;  %v6101_v15 = vpop.f32.mrb[53].mxu1  ;;  %v6100_v11 = vadd.f32 %v6099_v6, %v12514_v63  ;;  %v7763_v6 = vld [vmem:[%s11889_s0 + $0xf8] sm:$0xff] }
 0x8a8   :  { %v6059_v59 = vadd.f32 %v6058_v45, %v12513_v34  ;;  %v6060_v17 = vpop.f32.mrb[54].mxu0  ;;  %v6103_v61 = vpop.f32.mrb[54].mxu1  ;;  %v6102_v2 = vadd.f32 %v6101_v15, %v12515_v31 }
 0x8a9   :  { %v6108_v0 = vmul.f32 0.5, %v6057_v55  ;;  %v6061_v10 = vadd.f32 %v6060_v17, %v12512_v36  ;;  %v6062_v56 = vpop.f32.mrb[55].mxu0  ;;  %v6105_v5 = vpop.f32.mrb[55].mxu1  ;;  %v6104_v22 = vadd.f32 %v6103_v61, %v12514_v63 }
 0x8aa   :  { %v6116_v12 = vmul.f32 0.5, %v6059_v59  ;;  %v6063_v60 = vadd.f32 %v6062_v56, %v12513_v34  ;;  %v6106_v16 = vadd.f32 %v6105_v5, %v12515_v31  ;;  %v6126_v4 = vmul.f32 0.5, %v6102_v2 }
 0x8ab   :  { %8765 = vtanh.f32 %v6108_v0  ;;  %v6109_v62 = vmul.f32 0.5, %v6061_v10 }
 0x8ac   :  { %8767 = vtanh.f32 %v6116_v12  ;;  %v6117_v13 = vmul.f32 0.5, %v6063_v60  ;;  %v6127_v9 = vmul.f32 0.5, %v6106_v16  ;;  %v6172_v12 = vunpack.c.l.bf16 %v7763_v6 }
 0x8ad   :  { %8769 = vtanh.f32 %v6109_v62 }
 0x8ae   :  { %8771 = vtanh.f32 %v6100_v11 }
 0x8af   :  { %8773 = vtanh.f32 %v6117_v13  ;;  %v6169_v13 = vunpack.c.h.bf16 %v7761_v40 }
 0x8b0   :  { %8775 = vtanh.f32 %v6104_v22 }
 0x8b1   :  { %8777 = vtanh.f32 %v6126_v4 }
 0x8b2   :  { %8779 = vtanh.f32 %v6127_v9 }
 0x8b5   :  { %v8766_v38 = vpop.eup %8765 }
 0x8b6   :  { %v8768_v23 = vpop.eup %8767  ;;  %v6112_v25 = vmul.f32 0.5, %v8766_v38 }
 0x8b7   :  { %v6120_v24 = vmul.f32 0.5, %v8768_v23  ;;  %v8770_v26 = vpop.eup %8769 }
 0x8b8   :  { %v6114_v28 = vadd.f32 0.5, %v6112_v25  ;;  %v8772_v18 = vpop.eup %8771  ;;  %v6113_v27 = vmul.f32 0.5, %v8770_v26  ;;  %v6173_v26 = vunpack.c.h.bf16 %v7763_v6 }
 0x8b9   :  { %v6122_v14 = vadd.f32 0.5, %v6120_v24  ;;  %v8774_v57 = vpop.eup %8773 }
 0x8ba   :  { %v6138_v29 = vmul.f32 %v8772_v18, %v6114_v28  ;;  %v6115_v43 = vadd.f32 0.5, %v6113_v27  ;;  %v6121_v32 = vmul.f32 0.5, %v8774_v57  ;;  %v8776_v37 = vpop.eup %8775 }
 0x8bb   :  { %v6136_v33 = vmul.f32 %v6122_v14, %v12516_v49  ;;  %v8778_v41 = vpop.eup %8777 }
 0x8bc   :  { %v6123_v50 = vadd.f32 0.5, %v6121_v32  ;;  %v6139_v19 = vmul.f32 %v8776_v37, %v6115_v43  ;;  %v8780_v30 = vpop.eup %8779  ;;  %v6130_v55 = vmul.f32 0.5, %v8778_v41 }
 0x8bd   :  { %v11850_v44 = vadd.f32 %v6138_v29, %v6136_v33  ;;  %v6131_v45 = vmul.f32 0.5, %v8780_v30 }
 0x8be   :  { %v6137_v7 = vmul.f32 %v6123_v50, %v12517_v51  ;;  %v6132_v2 = vadd.f32 0.5, %v6130_v55 }
 0x8bf   :  { %8781 = vtanh.f32 %v11850_v44  ;;  %v6133_v16 = vadd.f32 0.5, %v6131_v45 }
 0x8c0   :  { %v11857_v52 = vadd.f32 %v6139_v19, %v6137_v7 }
 0x8c2   :  { %8783 = vtanh.f32 %v11857_v52 }
 0x8c6   :  { %v6403_v21 = vpop.f32.mrb[56].mxu0  ;;  %v6446_v47 = vpop.f32.mrb[56].mxu1 }
 0x8c7   :  { %v6455_v3 = vadd.f32 %v6403_v21, %v6166_v58  ;;  %v6405_v1 = vpop.f32.mrb[57].mxu0  ;;  %v6448_v42 = vpop.f32.mrb[57].mxu1  ;;  %v6457_v62 = vadd.f32 %v6446_v47, %v6168_v35 }
 0x8c8   :  { %v6456_v15 = vadd.f32 %v6405_v1, %v6167_v39  ;;  %v6407_v59 = vpop.f32.mrb[58].mxu0  ;;  %v6450_v17 = vpop.f32.mrb[58].mxu1  ;;  %v6458_v9 = vadd.f32 %v6448_v42, %v6169_v13 }
 0x8c9   :  { %v6463_v61 = vmul.f32 0.5, %v6455_v3  ;;  %v6459_v0 = vadd.f32 %v6407_v59, %v6170_v48  ;;  %v6409_v10 = vpop.f32.mrb[59].mxu0  ;;  %v6452_v56 = vpop.f32.mrb[59].mxu1  ;;  %v6461_v25 = vadd.f32 %v6450_v17, %v6172_v12 }
 0x8ca   :  { %v6471_v5 = vmul.f32 0.5, %v6456_v15  ;;  %v6460_v60 = vadd.f32 %v6409_v10, %v6171_v8  ;;  %v8782_v11 = vpop.eup %8781  ;;  %v6481_v18 = vmul.f32 0.5, %v6458_v9  ;;  %v6462_v14 = vadd.f32 %v6452_v56, %v6173_v26 }
 0x8cb   :  { %8785 = vtanh.f32 %v6463_v61  ;;  %v6464_v22 = vmul.f32 0.5, %v6459_v0  ;;  %v6146_v4 = vmul.f32 %v8782_v11, %v6132_v2 }
 0x8cc   :  { %8787 = vtanh.f32 %v6471_v5  ;;  %v6472_v38 = vmul.f32 0.5, %v6460_v60  ;;  %v8784_v23 = vpop.eup %8783  ;;  %v6482_v33 = vmul.f32 0.5, %v6462_v14 }
 0x8cd   :  { %8789 = vtanh.f32 %v6464_v22  ;;  %v6147_v24 = vmul.f32 %v8784_v23, %v6133_v16 }
 0x8ce   :  { %8791 = vtanh.f32 %v6457_v62 }
 0x8cf   :  { %8793 = vtanh.f32 %v6472_v38  ;;  %v7913_v28 = vpack.c.bf16 %v6147_v24, %v6146_v4 }
 0x8d0   :  { %8795 = vtanh.f32 %v6461_v25 }
 0x8d1   :  { %7925 = vst [vmem:[%s11891_s4 + $0x30] sm:$0xff] %v7913_v28   ;;  %6927 = vmatprep.mubr.bf16.mxu0 %v7913_v28  ;;  %6970 = vmatprep.mubr.bf16.mxu1 %v7913_v28  ;;  %8797 = vtanh.f32 %v6481_v18 }
 0x8d2   :  { %8799 = vtanh.f32 %v6482_v33 }
 0x8d5   :  { %v8786_v27 = vpop.eup %8785 }
 0x8d6   :  { %v8788_v57 = vpop.eup %8787  ;;  %v6467_v29 = vmul.f32 0.5, %v8786_v27 }
 0x8d7   :  { %v6475_v49 = vmul.f32 0.5, %v8788_v57  ;;  %v8790_v43 = vpop.eup %8789 }
 0x8d8   :  { %v6469_v32 = vadd.f32 0.5, %v6467_v29  ;;  %v8792_v37 = vpop.eup %8791  ;;  %v6468_v19 = vmul.f32 0.5, %v8790_v43 }
 0x8d9   :  { %v6477_v50 = vadd.f32 0.5, %v6475_v49  ;;  %v8794_v51 = vpop.eup %8793 }
 0x8da   :  { %v6493_v7 = vmul.f32 %v8792_v37, %v6469_v32  ;;  %v6470_v54 = vadd.f32 0.5, %v6468_v19  ;;  %v6476_v58 = vmul.f32 0.5, %v8794_v51  ;;  %v8796_v41 = vpop.eup %8795 }
 0x8db   :  { %v6491_v46 = vmul.f32 %v6477_v50, %v11738_v53  ;;  %v8798_v21 = vpop.eup %8797 }
 0x8dc   :  { %v6478_v39 = vadd.f32 0.5, %v6476_v58  ;;  %v6494_v30 = vmul.f32 %v8796_v41, %v6470_v54  ;;  %v6485_v8 = vmul.f32 0.5, %v8798_v21  ;;  %v8800_v3 = vpop.eup %8799 }
 0x8dd   :  { %v6495_v40 = vadd.f32 %v6493_v7, %v6491_v46  ;;  %v6486_v1 = vmul.f32 0.5, %v8800_v3 }
 0x8de   :  { %v6492_v48 = vmul.f32 %v6478_v39, %v11742_v20  ;;  %v6487_v35 = vadd.f32 0.5, %v6485_v8 }
 0x8df   :  { %8801 = vtanh.f32 %v6495_v40  ;;  %v6488_v53 = vadd.f32 0.5, %v6486_v1 }
 0x8e0   :  { %v6496_v47 = vadd.f32 %v6494_v30, %v6492_v48 }
 0x8e2   :  { %8803 = vtanh.f32 %v6496_v47 }
 0x8e9   :  { %v8802_v42 = vpop.eup %8801 }
 0x8ea   :  { %v6501_v6 = vmul.f32 %v8802_v42, %v6487_v35 }
 0x8ec   :  { %v8804_v55 = vpop.eup %8803 }
 0x8ed   :  { %v6502_v45 = vmul.f32 %v8804_v55, %v6488_v53 }
 0x8ef   :  { %v6509_v15 = vpack.c.bf16 %v6502_v45, %v6501_v6 }
 0x8f1   :  { %6928 = vmatmul.mubr.bf16.vlgmr.msra.gmra.mrb[60].mxu0 %v6509_v15  ;;  %6971 = vmatmul.mubr.bf16.vlgmr.msra.gmra.mrb[60].mxu1 %v6509_v15 }
 0x9c4   :  { %v6929_v59 = vpop.f32.mrb[60].mxu0  ;;  %v6972_v17 = vpop.f32.mrb[60].mxu1 }
 0x9c5   :  { %v6930_v61 = vadd.f32 %v6929_v59, %v12512_v36  ;;  %v6931_v20 = vpop.f32.mrb[61].mxu0  ;;  %v6974_v0 = vpop.f32.mrb[61].mxu1  ;;  %v6973_v2 = vadd.f32 %v6972_v17, %v12514_v63 }
 0x9c6   :  { %v6932_v10 = vadd.f32 %v6931_v20, %v12513_v34  ;;  %v6933_v56 = vpop.f32.mrb[62].mxu0  ;;  %v6976_v5 = vpop.f32.mrb[62].mxu1  ;;  %v6975_v25 = vadd.f32 %v6974_v0, %v12515_v31 }
 0x9c7   :  { %v6981_v12 = vmul.f32 0.5, %v6930_v61  ;;  %v6934_v60 = vadd.f32 %v6933_v56, %v12512_v36  ;;  %v6935_v11 = vpop.f32.mrb[63].mxu0  ;;  %v6978_v62 = vpop.f32.mrb[63].mxu1  ;;  %v6977_v23 = vadd.f32 %v6976_v5, %v12514_v63 }
 0x9c8   :  { %v6989_v13 = vmul.f32 0.5, %v6932_v10  ;;  %v6936_v22 = vadd.f32 %v6935_v11, %v12513_v34  ;;  %v6999_v36 = vmul.f32 0.5, %v6975_v25  ;;  %v6979_v4 = vadd.f32 %v6978_v62, %v12515_v31 }
 0x9c9   :  { %8805 = vtanh.f32 %v6981_v12  ;;  %v6982_v16 = vmul.f32 0.5, %v6934_v60 }
 0x9ca   :  { %8807 = vtanh.f32 %v6989_v13  ;;  %v6990_v38 = vmul.f32 0.5, %v6936_v22  ;;  %v7000_v28 = vmul.f32 0.5, %v6979_v4 }
 0x9cb   :  { %8809 = vtanh.f32 %v6982_v16 }
 0x9cc   :  { %8811 = vtanh.f32 %v6973_v2 }
 0x9cd   :  { %8813 = vtanh.f32 %v6990_v38 }
 0x9ce   :  { %8815 = vtanh.f32 %v6977_v23 }
 0x9cf   :  { %8817 = vtanh.f32 %v6999_v36 }
 0x9d0   :  { %8819 = vtanh.f32 %v7000_v28 }
 0x9d3   :  { %v8806_v24 = vpop.eup %8805 }
 0x9d4   :  { %v8808_v9 = vpop.eup %8807  ;;  %v6985_v34 = vmul.f32 0.5, %v8806_v24 }
 0x9d5   :  { %v6993_v26 = vmul.f32 0.5, %v8808_v9  ;;  %v8810_v18 = vpop.eup %8809 }
 0x9d6   :  { %v6987_v14 = vadd.f32 0.5, %v6985_v34  ;;  %v8812_v27 = vpop.eup %8811  ;;  %v6986_v29 = vmul.f32 0.5, %v8810_v18 }
 0x9d7   :  { %v6995_v57 = vadd.f32 0.5, %v6993_v26  ;;  %v8814_v63 = vpop.eup %8813 }
 0x9d8   :  { %v7011_v49 = vmul.f32 %v8812_v27, %v6987_v14  ;;  %v6988_v43 = vadd.f32 0.5, %v6986_v29  ;;  %v6994_v32 = vmul.f32 0.5, %v8814_v63  ;;  %v8816_v37 = vpop.eup %8815 }
 0x9d9   :  { %v7009_v33 = vmul.f32 %v6995_v57, %v11850_v44  ;;  %v8818_v7 = vpop.eup %8817 }
 0x9da   :  { %v6996_v50 = vadd.f32 0.5, %v6994_v32  ;;  %v7012_v19 = vmul.f32 %v8816_v37, %v6988_v43  ;;  %v7003_v54 = vmul.f32 0.5, %v8818_v7  ;;  %v8820_v58 = vpop.eup %8819 }
 0x9db   :  { %v7013_v31 = vadd.f32 %v7011_v49, %v7009_v33  ;;  %v7004_v40 = vmul.f32 0.5, %v8820_v58 }
 0x9dc   :  { %v7010_v51 = vmul.f32 %v6996_v50, %v11857_v52  ;;  %v7005_v41 = vadd.f32 0.5, %v7003_v54 }
 0x9dd   :  { %8821 = vtanh.f32 %v7013_v31  ;;  %v7006_v44 = vadd.f32 0.5, %v7004_v40 }
 0x9de   :  { %v7014_v46 = vadd.f32 %v7012_v19, %v7010_v51 }
 0x9e0   :  { %8823 = vtanh.f32 %v7014_v46 }
 0x9e7   :  { %v8822_v39 = vpop.eup %8821 }
 0x9e8   :  { %v7019_v30 = vmul.f32 %v8822_v39, %v7005_v41 }
 0x9ea   :  { %v8824_v48 = vpop.eup %8823 }
 0x9eb   :  { %v7020_v21 = vmul.f32 %v8824_v48, %v7006_v44 }
 0x9ed   :  { %v7918_v47 = vpack.c.bf16 %v7020_v21, %v7019_v30 }
 0x9ef   :  { %7926 = vst [vmem:[%s11891_s4 + $0x38] sm:$0xff] %v7918_v47  }

</bundles_post_ra>
